<compile_context>
chip_gen: v7x
topology: tpu7x:2x2x1
jax: 0.10.0
libtpu: 0.0.40
codegen_flags: <defaults>
</compile_context>

<pallas_src>
import functools

import jax
import jax.numpy as jnp
from jax.experimental import pallas as pl
from jax.experimental.pallas import tpu as pltpu


# ---------------------------------------------------------------------------
# Fused kernel: conv3x3 -> LeakyReLU -> conv3x3 -> LeakyReLU -> +1x1 identity
# ---------------------------------------------------------------------------
def _fused_unet_conv_block_kernel(slope, tile_h, pitch,
                                  x_ref, mask_ref, w1_ref, b1_ref,
                                  w2_ref, b2_ref, wid_ref, bid_ref, o_ref):
    """One grid step = one (batch, row-tile) of the image.

    x_ref    : (1, 1, (TH+6)*P, Cin)  zero-padded input slab, flattened rows
               (pitch P = W+4, 2 halo rows above, >=2 below, 2 cols each side)
    mask_ref : (1, (TH+3)*P, 1)       1.0 where the h1 entry lies inside image
    w1_ref   : (9*Cin,  Cout)         conv_1 taps, (kh, kw, ci) row ordering
    w2_ref   : (9*Cout, Cout)         conv_2 taps
    wid_ref  : (Cin, Cout)            1x1 identity conv
    b*_ref   : (1, Cout)              biases (f32)
    o_ref    : (1, 1, TH*P, Cout)     output tile (cols >= W stripped by caller)
    """
    P = pitch
    TH = tile_h
    G = TH * P                 # flat output rows (incl. pitch-padding cols)
    H1 = (TH + 3) * P          # flat rows of the intermediate h1
    cin = wid_ref.shape[0]
    cout = wid_ref.shape[1]

    xs = x_ref[0, 0]                              # ((TH+6)*P, Cin)
    mask = mask_ref[0]                            # (H1, 1) f32, 0/1

    # ---- conv_1: nine shifted taps accumulated on the MXU (f32 acc) ----
    acc1 = jnp.zeros((H1, cout), jnp.float32)
    for kh in range(3):
        for kw in range(3):
            off = kh * P + kw
            tap = xs[off:off + H1, :]
            wk = w1_ref[(kh * 3 + kw) * cin:(kh * 3 + kw + 1) * cin, :]
            acc1 += jnp.dot(tap, wk, preferred_element_type=jnp.float32)
    acc1 = acc1 + b1_ref[...]
    # LeakyReLU, then zero everything outside the true image so conv_2 sees
    # the same zero padding nn.Conv2d(padding=1) would.
    h1 = (jnp.maximum(acc1, slope * acc1) * mask).astype(xs.dtype)

    # ---- conv_2: nine shifted taps over h1 (same flat-pitch trick) ----
    acc2 = jnp.zeros((G, cout), jnp.float32)
    for kh in range(3):
        for kw in range(3):
            off = kh * P + kw
            tap = h1[off:off + G, :]
            wk = w2_ref[(kh * 3 + kw) * cout:(kh * 3 + kw + 1) * cout, :]
            acc2 += jnp.dot(tap, wk, preferred_element_type=jnp.float32)
    acc2 = acc2 + b2_ref[...]
    acc2 = jnp.maximum(acc2, slope * acc2)        # LeakyReLU

    # ---- fused 1x1 identity-conv residual (reads the slab centre) ----
    ctr = xs[2 * P + 2:2 * P + 2 + G, :]
    acc2 = acc2 + jnp.dot(ctr, wid_ref[...],
                          preferred_element_type=jnp.float32) + bid_ref[...]

    o_ref[0, 0] = acc2.astype(o_ref.dtype)


def _choose_tile_h(H, W, cin, cout, compute_bytes=2, budget=12 * 1024 * 1024):
    """Largest divisor of H (<=512) whose working set fits a conservative VMEM budget."""
    P = W + 4

    def vmem_bytes(th):
        L = (th + 6) * P
        h1 = (th + 3) * P
        g = th * P
        return (2 * L * cin * compute_bytes        # input slab (double-buffered)
                + 2 * g * cout * 4                 # output tile (double-buffered)
                + h1 * cout * (4 + compute_bytes)  # conv_1 accumulator + h1
                + g * cout * 4                     # conv_2 accumulator
                + 2 * h1 * 4)                      # mask (double-buffered)

    best = None
    for th in range(1, H + 1):
        if H % th:
            continue
        if th > 512:
            break
        if vmem_bytes(th) <= budget:
            best = th
    if best is None:
        best = min(d for d in range(1, H + 1) if H % d == 0)
    return best


def unet_conv_block_forward(x_nchw, params, relu_slope=0.2,
                            compute_dtype=jnp.bfloat16, tile_h=None):
    """UNetConvBlock forward (downsample=False, no csff/HIN). NCHW in/out."""
    N, Cin, H, W = x_nchw.shape
    Cout = params["conv1_w"].shape[0]
    out_dtype = x_nchw.dtype

    x = jnp.transpose(x_nchw, (0, 2, 3, 1))                 # NHWC
    P = W + 4                                               # flat row pitch

    if tile_h is None:
        tile_h = _choose_tile_h(H, W, Cin, Cout,
                                jnp.dtype(compute_dtype).itemsize)
    assert H % tile_h == 0, "tile_h must divide H"
    TH = tile_h
    n_tiles = H // TH
    G = TH * P
    H1L = (TH + 3) * P
    L = (TH + 6) * P

    # Zero-pad (2 rows top / 4 bottom, 2 cols each side) and cut overlapping
    # row slabs (2-row halo above, extra rows below for the flat-pitch taps).
    xp = jnp.pad(x, ((0, 0), (2, 4), (2, 2), (0, 0)))
    if n_tiles == 1:
        slabs = xp[:, None]                                  # (N,1,H+6,P,Cin)
    else:
        rows = jnp.arange(n_tiles)[:, None] * TH + jnp.arange(TH + 6)[None, :]
        slabs = xp[:, rows]                                  # (N,nt,TH+6,P,Cin)
    slabs = slabs.reshape(N, n_tiles, L, Cin).astype(compute_dtype)

    # Per-tile validity mask for h1 (implements conv_2's zero padding):
    # h1 flat index f = r1*P + c1 maps to image row (t*TH + r1 - 1), col (c1-1).
    col = jnp.arange(H1L, dtype=jnp.int32) % P
    row = jnp.arange(H1L, dtype=jnp.int32) // P
    col_ok = (col >= 1) & (col <= W)
    img_row = jnp.arange(n_tiles, dtype=jnp.int32)[:, None] * TH + row[None, :] - 1
    row_ok = (img_row >= 0) & (img_row < H)
    mask = (col_ok[None, :] & row_ok).astype(jnp.float32).reshape(n_tiles, H1L, 1)

    # Weights as (tap*C, Cout) matmul operands; (kh, kw, ci) tap ordering.
    w1 = params["conv1_w"].transpose(2, 3, 1, 0).reshape(9 * Cin, Cout)
    w2 = params["conv2_w"].transpose(2, 3, 1, 0).reshape(9 * Cout, Cout)
    wid = params["id_w"][:, :, 0, 0].T                       # (Cin, Cout)
    w1 = w1.astype(compute_dtype)
    w2 = w2.astype(compute_dtype)
    wid = wid.astype(compute_dtype)
    b1 = params["conv1_b"].reshape(1, Cout).astype(jnp.float32)
    b2 = params["conv2_b"].reshape(1, Cout).astype(jnp.float32)
    bid = params["id_b"].reshape(1, Cout).astype(jnp.float32)

    kernel = functools.partial(_fused_unet_conv_block_kernel,
                               float(relu_slope), TH, P)

    flops = 2 * N * H * W * Cout * (9 * Cin + 9 * Cout + Cin)
    bytes_accessed = (slabs.size * slabs.dtype.itemsize
                      + mask.size * 4
                      + (w1.size + w2.size + wid.size) * w1.dtype.itemsize
                      + N * n_tiles * G * Cout * jnp.dtype(out_dtype).itemsize)

    out_flat = pl.pallas_call(
        kernel,
        out_shape=jax.ShapeDtypeStruct((N, n_tiles, G, Cout), out_dtype),
        grid=(N, n_tiles),
        in_specs=[
            pl.BlockSpec((1, 1, L, Cin), lambda n, t: (n, t, 0, 0)),   # slab
            pl.BlockSpec((1, H1L, 1), lambda n, t: (t, 0, 0)),         # mask
            pl.BlockSpec((9 * Cin, Cout), lambda n, t: (0, 0)),        # conv_1 W
            pl.BlockSpec((1, Cout), lambda n, t: (0, 0)),              # conv_1 b
            pl.BlockSpec((9 * Cout, Cout), lambda n, t: (0, 0)),       # conv_2 W
            pl.BlockSpec((1, Cout), lambda n, t: (0, 0)),              # conv_2 b
            pl.BlockSpec((Cin, Cout), lambda n, t: (0, 0)),            # identity W
            pl.BlockSpec((1, Cout), lambda n, t: (0, 0)),              # identity b
        ],
        out_specs=pl.BlockSpec((1, 1, G, Cout), lambda n, t: (n, t, 0, 0)),
        compiler_params=pltpu.CompilerParams(
            dimension_semantics=("parallel", "parallel"),
            vmem_limit_bytes=48 * 1024 * 1024),
        cost_estimate=pl.CostEstimate(flops=flops, transcendentals=0,
                                      bytes_accessed=bytes_accessed),
    )(slabs, mask, w1, b1, w2, b2, wid, bid)

    # Strip the pitch-padding columns and restore NCHW.
    out = out_flat.reshape(N, n_tiles, TH, P, Cout)[:, :, :, :W, :]
    out = out.reshape(N, H, W, Cout).transpose(0, 3, 1, 2)
    return out


# ---------------------------------------------------------------------------
# Parameters + pure-JAX reference (for a correctness self-check)
# ---------------------------------------------------------------------------
def init_params(key, in_size, out_size):
    ks = jax.random.split(key, 6)
    s = 0.1
    return {
        "conv1_w": jax.random.normal(ks[0], (out_size, in_size, 3, 3), jnp.float32) * s,
        "conv1_b": jax.random.normal(ks[1], (out_size,), jnp.float32) * s,
        "conv2_w": jax.random.normal(ks[2], (out_size, out_size, 3, 3), jnp.float32) * s,
        "conv2_b": jax.random.normal(ks[3], (out_size,), jnp.float32) * s,
        "id_w": jax.random.normal(ks[4], (out_size, in_size, 1, 1), jnp.float32) * s,
        "id_b": jax.random.normal(ks[5], (out_size,), jnp.float32) * s,
    }


def _reference_forward(x_nchw, p, relu_slope):
    dn = ("NCHW", "OIHW", "NCHW")

    def conv(x, w, pad):
        return jax.lax.conv_general_dilated(
            x, w, window_strides=(1, 1), padding=[(pad, pad), (pad, pad)],
            dimension_numbers=dn)

    def lrelu(v):
        return jnp.where(v >= 0, v, relu_slope * v)

    h = lrelu(conv(x_nchw, p["conv1_w"], 1) + p["conv1_b"][None, :, None, None])
    o = lrelu(conv(h, p["conv2_w"], 1) + p["conv2_b"][None, :, None, None])
    return o + conv(x_nchw, p["id_w"], 0) + p["id_b"][None, :, None, None]


if __name__ == "__main__":
    key = jax.random.PRNGKey(0)
    in_size, out_size = 4, 8
    N, H, W = 2, 16, 16
    relu_slope = 0.2

    k1, k2 = jax.random.split(key)
    x = jax.random.normal(k1, (N, in_size, H, W), jnp.float32)
    params = init_params(k2, in_size, out_size)

    out = unet_conv_block_forward(x, params, relu_slope)
    jax.block_until_ready(out)
    assert out.shape == (N, out_size, H, W), out.shape
    assert out.dtype == jnp.float32

    ref = _reference_forward(x, params, relu_slope)
    err = float(jnp.max(jnp.abs(out - ref)))
    assert err < 7.5e-2, f"max abs err {err}"

    # Also exercise the multi-row-tile path (halo slabs + boundary masking).
    out_tiled = unet_conv_block_forward(x, params, relu_slope, tile_h=8)
    jax.block_until_ready(out_tiled)
    err_t = float(jnp.max(jnp.abs(out_tiled - ref)))
    assert err_t < 7.5e-2, f"max abs err (tiled) {err_t}"

    # Smallest-tile path (TH=4, 4 tiles) to stress per-tile row masking.
    out_t4 = unet_conv_block_forward(x, params, relu_slope, tile_h=4)
    jax.block_until_ready(out_t4)
    err_t4 = float(jnp.max(jnp.abs(out_t4 - ref)))
    assert err_t4 < 7.5e-2, f"max abs err (tile_h=4) {err_t4}"

    print("KERNEL_OK")
</pallas_src>

<mosaic_0001>
module attributes {stable_mosaic.version = 11 : i64} {
  func.func @_fused_unet_conv_block_kernel(%arg0: i32, %arg1: i32, %arg2: memref<1x1x440x4xbf16, #tpu.memory_space<vmem>>, %arg3: memref<1x380x1xf32, #tpu.memory_space<vmem>>, %arg4: memref<36x8xbf16, #tpu.memory_space<vmem>>, %arg5: memref<1x8xf32, #tpu.memory_space<vmem>>, %arg6: memref<72x8xbf16, #tpu.memory_space<vmem>>, %arg7: memref<1x8xf32, #tpu.memory_space<vmem>>, %arg8: memref<4x8xbf16, #tpu.memory_space<vmem>>, %arg9: memref<1x8xf32, #tpu.memory_space<vmem>>, %arg10: memref<1x1x320x8xf32, #tpu.memory_space<vmem>>) attributes {dimension_semantics = [#tpu.dimension_semantics<parallel>, #tpu.dimension_semantics<parallel>], iteration_bounds = array<i64: 2, 1>, scalar_prefetch = 0 : i64, scratch_operands = 0 : i64, tpu.core_type = #tpu.core_type<tc>, window_params = [{transform_indices = @transform_0, window_bounds = array<i64: 1, 1, 440, 4>}, {transform_indices = @transform_1, window_bounds = array<i64: 1, 380, 1>}, {pipeline_mode = #tpu.pipeline_mode<synchronous>, transform_indices = @transform_2, window_bounds = array<i64: 36, 8>}, {pipeline_mode = #tpu.pipeline_mode<synchronous>, transform_indices = @transform_3, window_bounds = array<i64: 1, 8>}, {pipeline_mode = #tpu.pipeline_mode<synchronous>, transform_indices = @transform_4, window_bounds = array<i64: 72, 8>}, {pipeline_mode = #tpu.pipeline_mode<synchronous>, transform_indices = @transform_5, window_bounds = array<i64: 1, 8>}, {pipeline_mode = #tpu.pipeline_mode<synchronous>, transform_indices = @transform_6, window_bounds = array<i64: 4, 8>}, {pipeline_mode = #tpu.pipeline_mode<synchronous>, transform_indices = @transform_7, window_bounds = array<i64: 1, 8>}, {transform_indices = @transform_8, window_bounds = array<i64: 1, 1, 320, 8>}]} {
    %c0 = arith.constant 0 : index
    %c0_0 = arith.constant 0 : index
    %c0_1 = arith.constant 0 : index
    %c0_2 = arith.constant 0 : index
    %0 = vector.load %arg2[%c0, %c0_0, %c0_1, %c0_2] : memref<1x1x440x4xbf16, #tpu.memory_space<vmem>>, vector<1x1x440x4xbf16>
    %1 = vector.shape_cast %0 : vector<1x1x440x4xbf16> to vector<440x4xbf16>
    %c0_3 = arith.constant 0 : index
    %c0_4 = arith.constant 0 : index
    %c0_5 = arith.constant 0 : index
    %2 = vector.load %arg3[%c0_3, %c0_4, %c0_5] : memref<1x380x1xf32, #tpu.memory_space<vmem>>, vector<1x380x1xf32>
    %3 = vector.shape_cast %2 : vector<1x380x1xf32> to vector<380x1xf32>
    %cst = arith.constant 0.000000e+00 : f32
    %4 = vector.broadcast %cst : f32 to vector<380x8xf32>
    %5 = vector.extract_strided_slice %1 {offsets = [0, 0], sizes = [380, 4], strides = [1, 1]} : vector<440x4xbf16> to vector<380x4xbf16>
    %c0_6 = arith.constant 0 : index
    %c0_7 = arith.constant 0 : index
    %6 = vector.load %arg4[%c0_6, %c0_7] : memref<36x8xbf16, #tpu.memory_space<vmem>>, vector<4x8xbf16>
    %cst_8 = arith.constant dense<0.000000e+00> : vector<380x8xf32>
    %7 = tpu.matmul %5, %6, %cst_8 {dimension_numbers = #tpu.dot_dimension_numbers<[1], [0], [0], [1], [0, 0, 1, 1], [], []>} : vector<380x4xbf16>, vector<4x8xbf16>, vector<380x8xf32> -> vector<380x8xf32>
    %8 = arith.addf %4, %7 : vector<380x8xf32>
    %9 = vector.extract_strided_slice %1 {offsets = [1, 0], sizes = [380, 4], strides = [1, 1]} : vector<440x4xbf16> to vector<380x4xbf16>
    %c4 = arith.constant 4 : index
    %c0_9 = arith.constant 0 : index
    %10 = vector.load %arg4[%c4, %c0_9] : memref<36x8xbf16, #tpu.memory_space<vmem>>, vector<4x8xbf16>
    %cst_10 = arith.constant dense<0.000000e+00> : vector<380x8xf32>
    %11 = tpu.matmul %9, %10, %cst_10 {dimension_numbers = #tpu.dot_dimension_numbers<[1], [0], [0], [1], [0, 0, 1, 1], [], []>} : vector<380x4xbf16>, vector<4x8xbf16>, vector<380x8xf32> -> vector<380x8xf32>
    %12 = arith.addf %8, %11 : vector<380x8xf32>
    %13 = vector.extract_strided_slice %1 {offsets = [2, 0], sizes = [380, 4], strides = [1, 1]} : vector<440x4xbf16> to vector<380x4xbf16>
    %c8 = arith.constant 8 : index
    %c0_11 = arith.constant 0 : index
    %14 = vector.load %arg4[%c8, %c0_11] : memref<36x8xbf16, #tpu.memory_space<vmem>>, vector<4x8xbf16>
    %cst_12 = arith.constant dense<0.000000e+00> : vector<380x8xf32>
    %15 = tpu.matmul %13, %14, %cst_12 {dimension_numbers = #tpu.dot_dimension_numbers<[1], [0], [0], [1], [0, 0, 1, 1], [], []>} : vector<380x4xbf16>, vector<4x8xbf16>, vector<380x8xf32> -> vector<380x8xf32>
    %16 = arith.addf %12, %15 : vector<380x8xf32>
    %17 = vector.extract_strided_slice %1 {offsets = [20, 0], sizes = [380, 4], strides = [1, 1]} : vector<440x4xbf16> to vector<380x4xbf16>
    %c12 = arith.constant 12 : index
    %c0_13 = arith.constant 0 : index
    %18 = vector.load %arg4[%c12, %c0_13] : memref<36x8xbf16, #tpu.memory_space<vmem>>, vector<4x8xbf16>
    %cst_14 = arith.constant dense<0.000000e+00> : vector<380x8xf32>
    %19 = tpu.matmul %17, %18, %cst_14 {dimension_numbers = #tpu.dot_dimension_numbers<[1], [0], [0], [1], [0, 0, 1, 1], [], []>} : vector<380x4xbf16>, vector<4x8xbf16>, vector<380x8xf32> -> vector<380x8xf32>
    %20 = arith.addf %16, %19 : vector<380x8xf32>
    %21 = vector.extract_strided_slice %1 {offsets = [21, 0], sizes = [380, 4], strides = [1, 1]} : vector<440x4xbf16> to vector<380x4xbf16>
    %c16 = arith.constant 16 : index
    %c0_15 = arith.constant 0 : index
    %22 = vector.load %arg4[%c16, %c0_15] : memref<36x8xbf16, #tpu.memory_space<vmem>>, vector<4x8xbf16>
    %cst_16 = arith.constant dense<0.000000e+00> : vector<380x8xf32>
    %23 = tpu.matmul %21, %22, %cst_16 {dimension_numbers = #tpu.dot_dimension_numbers<[1], [0], [0], [1], [0, 0, 1, 1], [], []>} : vector<380x4xbf16>, vector<4x8xbf16>, vector<380x8xf32> -> vector<380x8xf32>
    %24 = arith.addf %20, %23 : vector<380x8xf32>
    %25 = vector.extract_strided_slice %1 {offsets = [22, 0], sizes = [380, 4], strides = [1, 1]} : vector<440x4xbf16> to vector<380x4xbf16>
    %c20 = arith.constant 20 : index
    %c0_17 = arith.constant 0 : index
    %26 = vector.load %arg4[%c20, %c0_17] : memref<36x8xbf16, #tpu.memory_space<vmem>>, vector<4x8xbf16>
    %cst_18 = arith.constant dense<0.000000e+00> : vector<380x8xf32>
    %27 = tpu.matmul %25, %26, %cst_18 {dimension_numbers = #tpu.dot_dimension_numbers<[1], [0], [0], [1], [0, 0, 1, 1], [], []>} : vector<380x4xbf16>, vector<4x8xbf16>, vector<380x8xf32> -> vector<380x8xf32>
    %28 = arith.addf %24, %27 : vector<380x8xf32>
    %29 = vector.extract_strided_slice %1 {offsets = [40, 0], sizes = [380, 4], strides = [1, 1]} : vector<440x4xbf16> to vector<380x4xbf16>
    %c24 = arith.constant 24 : index
    %c0_19 = arith.constant 0 : index
    %30 = vector.load %arg4[%c24, %c0_19] : memref<36x8xbf16, #tpu.memory_space<vmem>>, vector<4x8xbf16>
    %cst_20 = arith.constant dense<0.000000e+00> : vector<380x8xf32>
    %31 = tpu.matmul %29, %30, %cst_20 {dimension_numbers = #tpu.dot_dimension_numbers<[1], [0], [0], [1], [0, 0, 1, 1], [], []>} : vector<380x4xbf16>, vector<4x8xbf16>, vector<380x8xf32> -> vector<380x8xf32>
    %32 = arith.addf %28, %31 : vector<380x8xf32>
    %33 = vector.extract_strided_slice %1 {offsets = [41, 0], sizes = [380, 4], strides = [1, 1]} : vector<440x4xbf16> to vector<380x4xbf16>
    %c28 = arith.constant 28 : index
    %c0_21 = arith.constant 0 : index
    %34 = vector.load %arg4[%c28, %c0_21] : memref<36x8xbf16, #tpu.memory_space<vmem>>, vector<4x8xbf16>
    %cst_22 = arith.constant dense<0.000000e+00> : vector<380x8xf32>
    %35 = tpu.matmul %33, %34, %cst_22 {dimension_numbers = #tpu.dot_dimension_numbers<[1], [0], [0], [1], [0, 0, 1, 1], [], []>} : vector<380x4xbf16>, vector<4x8xbf16>, vector<380x8xf32> -> vector<380x8xf32>
    %36 = arith.addf %32, %35 : vector<380x8xf32>
    %37 = vector.extract_strided_slice %1 {offsets = [42, 0], sizes = [380, 4], strides = [1, 1]} : vector<440x4xbf16> to vector<380x4xbf16>
    %c32 = arith.constant 32 : index
    %c0_23 = arith.constant 0 : index
    %38 = vector.load %arg4[%c32, %c0_23] : memref<36x8xbf16, #tpu.memory_space<vmem>>, vector<4x8xbf16>
    %cst_24 = arith.constant dense<0.000000e+00> : vector<380x8xf32>
    %39 = tpu.matmul %37, %38, %cst_24 {dimension_numbers = #tpu.dot_dimension_numbers<[1], [0], [0], [1], [0, 0, 1, 1], [], []>} : vector<380x4xbf16>, vector<4x8xbf16>, vector<380x8xf32> -> vector<380x8xf32>
    %40 = arith.addf %36, %39 : vector<380x8xf32>
    %c0_25 = arith.constant 0 : index
    %c0_26 = arith.constant 0 : index
    %41 = vector.load %arg5[%c0_25, %c0_26] : memref<1x8xf32, #tpu.memory_space<vmem>>, vector<1x8xf32>
    %42 = vector.broadcast %41 : vector<1x8xf32> to vector<380x8xf32>
    %43 = arith.addf %40, %42 : vector<380x8xf32>
    %cst_27 = arith.constant 2.000000e-01 : f32
    %44 = vector.broadcast %cst_27 : f32 to vector<380x8xf32>
    %45 = arith.mulf %44, %43 : vector<380x8xf32>
    %46 = arith.maximumf %43, %45 : vector<380x8xf32>
    %47 = vector.broadcast %3 : vector<380x1xf32> to vector<380x8xf32>
    %48 = arith.mulf %46, %47 : vector<380x8xf32>
    %49 = arith.truncf %48 : vector<380x8xf32> to vector<380x8xbf16>
    %cst_28 = arith.constant 0.000000e+00 : f32
    %50 = vector.broadcast %cst_28 : f32 to vector<320x8xf32>
    %51 = vector.extract_strided_slice %49 {offsets = [0, 0], sizes = [320, 8], strides = [1, 1]} : vector<380x8xbf16> to vector<320x8xbf16>
    %c0_29 = arith.constant 0 : index
    %c0_30 = arith.constant 0 : index
    %52 = vector.load %arg6[%c0_29, %c0_30] : memref<72x8xbf16, #tpu.memory_space<vmem>>, vector<8x8xbf16>
    %cst_31 = arith.constant dense<0.000000e+00> : vector<320x8xf32>
    %53 = tpu.matmul %51, %52, %cst_31 {dimension_numbers = #tpu.dot_dimension_numbers<[1], [0], [0], [1], [0, 0, 1, 1], [], []>} : vector<320x8xbf16>, vector<8x8xbf16>, vector<320x8xf32> -> vector<320x8xf32>
    %54 = arith.addf %50, %53 : vector<320x8xf32>
    %55 = vector.extract_strided_slice %49 {offsets = [1, 0], sizes = [320, 8], strides = [1, 1]} : vector<380x8xbf16> to vector<320x8xbf16>
    %c8_32 = arith.constant 8 : index
    %c0_33 = arith.constant 0 : index
    %56 = vector.load %arg6[%c8_32, %c0_33] : memref<72x8xbf16, #tpu.memory_space<vmem>>, vector<8x8xbf16>
    %cst_34 = arith.constant dense<0.000000e+00> : vector<320x8xf32>
    %57 = tpu.matmul %55, %56, %cst_34 {dimension_numbers = #tpu.dot_dimension_numbers<[1], [0], [0], [1], [0, 0, 1, 1], [], []>} : vector<320x8xbf16>, vector<8x8xbf16>, vector<320x8xf32> -> vector<320x8xf32>
    %58 = arith.addf %54, %57 : vector<320x8xf32>
    %59 = vector.extract_strided_slice %49 {offsets = [2, 0], sizes = [320, 8], strides = [1, 1]} : vector<380x8xbf16> to vector<320x8xbf16>
    %c16_35 = arith.constant 16 : index
    %c0_36 = arith.constant 0 : index
    %60 = vector.load %arg6[%c16_35, %c0_36] : memref<72x8xbf16, #tpu.memory_space<vmem>>, vector<8x8xbf16>
    %cst_37 = arith.constant dense<0.000000e+00> : vector<320x8xf32>
    %61 = tpu.matmul %59, %60, %cst_37 {dimension_numbers = #tpu.dot_dimension_numbers<[1], [0], [0], [1], [0, 0, 1, 1], [], []>} : vector<320x8xbf16>, vector<8x8xbf16>, vector<320x8xf32> -> vector<320x8xf32>
    %62 = arith.addf %58, %61 : vector<320x8xf32>
    %63 = vector.extract_strided_slice %49 {offsets = [20, 0], sizes = [320, 8], strides = [1, 1]} : vector<380x8xbf16> to vector<320x8xbf16>
    %c24_38 = arith.constant 24 : index
    %c0_39 = arith.constant 0 : index
    %64 = vector.load %arg6[%c24_38, %c0_39] : memref<72x8xbf16, #tpu.memory_space<vmem>>, vector<8x8xbf16>
    %cst_40 = arith.constant dense<0.000000e+00> : vector<320x8xf32>
    %65 = tpu.matmul %63, %64, %cst_40 {dimension_numbers = #tpu.dot_dimension_numbers<[1], [0], [0], [1], [0, 0, 1, 1], [], []>} : vector<320x8xbf16>, vector<8x8xbf16>, vector<320x8xf32> -> vector<320x8xf32>
    %66 = arith.addf %62, %65 : vector<320x8xf32>
    %67 = vector.extract_strided_slice %49 {offsets = [21, 0], sizes = [320, 8], strides = [1, 1]} : vector<380x8xbf16> to vector<320x8xbf16>
    %c32_41 = arith.constant 32 : index
    %c0_42 = arith.constant 0 : index
    %68 = vector.load %arg6[%c32_41, %c0_42] : memref<72x8xbf16, #tpu.memory_space<vmem>>, vector<8x8xbf16>
    %cst_43 = arith.constant dense<0.000000e+00> : vector<320x8xf32>
    %69 = tpu.matmul %67, %68, %cst_43 {dimension_numbers = #tpu.dot_dimension_numbers<[1], [0], [0], [1], [0, 0, 1, 1], [], []>} : vector<320x8xbf16>, vector<8x8xbf16>, vector<320x8xf32> -> vector<320x8xf32>
    %70 = arith.addf %66, %69 : vector<320x8xf32>
    %71 = vector.extract_strided_slice %49 {offsets = [22, 0], sizes = [320, 8], strides = [1, 1]} : vector<380x8xbf16> to vector<320x8xbf16>
    %c40 = arith.constant 40 : index
    %c0_44 = arith.constant 0 : index
    %72 = vector.load %arg6[%c40, %c0_44] : memref<72x8xbf16, #tpu.memory_space<vmem>>, vector<8x8xbf16>
    %cst_45 = arith.constant dense<0.000000e+00> : vector<320x8xf32>
    %73 = tpu.matmul %71, %72, %cst_45 {dimension_numbers = #tpu.dot_dimension_numbers<[1], [0], [0], [1], [0, 0, 1, 1], [], []>} : vector<320x8xbf16>, vector<8x8xbf16>, vector<320x8xf32> -> vector<320x8xf32>
    %74 = arith.addf %70, %73 : vector<320x8xf32>
    %75 = vector.extract_strided_slice %49 {offsets = [40, 0], sizes = [320, 8], strides = [1, 1]} : vector<380x8xbf16> to vector<320x8xbf16>
    %c48 = arith.constant 48 : index
    %c0_46 = arith.constant 0 : index
    %76 = vector.load %arg6[%c48, %c0_46] : memref<72x8xbf16, #tpu.memory_space<vmem>>, vector<8x8xbf16>
    %cst_47 = arith.constant dense<0.000000e+00> : vector<320x8xf32>
    %77 = tpu.matmul %75, %76, %cst_47 {dimension_numbers = #tpu.dot_dimension_numbers<[1], [0], [0], [1], [0, 0, 1, 1], [], []>} : vector<320x8xbf16>, vector<8x8xbf16>, vector<320x8xf32> -> vector<320x8xf32>
    %78 = arith.addf %74, %77 : vector<320x8xf32>
    %79 = vector.extract_strided_slice %49 {offsets = [41, 0], sizes = [320, 8], strides = [1, 1]} : vector<380x8xbf16> to vector<320x8xbf16>
    %c56 = arith.constant 56 : index
    %c0_48 = arith.constant 0 : index
    %80 = vector.load %arg6[%c56, %c0_48] : memref<72x8xbf16, #tpu.memory_space<vmem>>, vector<8x8xbf16>
    %cst_49 = arith.constant dense<0.000000e+00> : vector<320x8xf32>
    %81 = tpu.matmul %79, %80, %cst_49 {dimension_numbers = #tpu.dot_dimension_numbers<[1], [0], [0], [1], [0, 0, 1, 1], [], []>} : vector<320x8xbf16>, vector<8x8xbf16>, vector<320x8xf32> -> vector<320x8xf32>
    %82 = arith.addf %78, %81 : vector<320x8xf32>
    %83 = vector.extract_strided_slice %49 {offsets = [42, 0], sizes = [320, 8], strides = [1, 1]} : vector<380x8xbf16> to vector<320x8xbf16>
    %c64 = arith.constant 64 : index
    %c0_50 = arith.constant 0 : index
    %84 = vector.load %arg6[%c64, %c0_50] : memref<72x8xbf16, #tpu.memory_space<vmem>>, vector<8x8xbf16>
    %cst_51 = arith.constant dense<0.000000e+00> : vector<320x8xf32>
    %85 = tpu.matmul %83, %84, %cst_51 {dimension_numbers = #tpu.dot_dimension_numbers<[1], [0], [0], [1], [0, 0, 1, 1], [], []>} : vector<320x8xbf16>, vector<8x8xbf16>, vector<320x8xf32> -> vector<320x8xf32>
    %86 = arith.addf %82, %85 : vector<320x8xf32>
    %c0_52 = arith.constant 0 : index
    %c0_53 = arith.constant 0 : index
    %87 = vector.load %arg7[%c0_52, %c0_53] : memref<1x8xf32, #tpu.memory_space<vmem>>, vector<1x8xf32>
    %88 = vector.broadcast %87 : vector<1x8xf32> to vector<320x8xf32>
    %89 = arith.addf %86, %88 : vector<320x8xf32>
    %cst_54 = arith.constant 2.000000e-01 : f32
    %90 = vector.broadcast %cst_54 : f32 to vector<320x8xf32>
    %91 = arith.mulf %90, %89 : vector<320x8xf32>
    %92 = arith.maximumf %89, %91 : vector<320x8xf32>
    %93 = vector.extract_strided_slice %1 {offsets = [42, 0], sizes = [320, 4], strides = [1, 1]} : vector<440x4xbf16> to vector<320x4xbf16>
    %c0_55 = arith.constant 0 : index
    %c0_56 = arith.constant 0 : index
    %94 = vector.load %arg8[%c0_55, %c0_56] : memref<4x8xbf16, #tpu.memory_space<vmem>>, vector<4x8xbf16>
    %cst_57 = arith.constant dense<0.000000e+00> : vector<320x8xf32>
    %95 = tpu.matmul %93, %94, %cst_57 {dimension_numbers = #tpu.dot_dimension_numbers<[1], [0], [0], [1], [0, 0, 1, 1], [], []>} : vector<320x4xbf16>, vector<4x8xbf16>, vector<320x8xf32> -> vector<320x8xf32>
    %96 = arith.addf %92, %95 : vector<320x8xf32>
    %c0_58 = arith.constant 0 : index
    %c0_59 = arith.constant 0 : index
    %97 = vector.load %arg9[%c0_58, %c0_59] : memref<1x8xf32, #tpu.memory_space<vmem>>, vector<1x8xf32>
    %98 = vector.broadcast %97 : vector<1x8xf32> to vector<320x8xf32>
    %99 = arith.addf %96, %98 : vector<320x8xf32>
    %c0_60 = arith.constant 0 : index
    %c0_61 = arith.constant 0 : index
    %c0_62 = arith.constant 0 : index
    %c0_63 = arith.constant 0 : index
    %100 = vector.load %arg10[%c0_60, %c0_61, %c0_62, %c0_63] : memref<1x1x320x8xf32, #tpu.memory_space<vmem>>, vector<1x1x320x8xf32>
    %101 = vector.shape_cast %100 : vector<1x1x320x8xf32> to vector<320x8xf32>
    %102 = vector.shape_cast %99 : vector<320x8xf32> to vector<1x1x320x8xf32>
    tpu.vector_store %arg10[%c0_60, %c0_61, %c0_62, %c0_63], %102 {strides = array<i32>} : memref<1x1x320x8xf32, #tpu.memory_space<vmem>>, vector<1x1x320x8xf32>,
    return
  }
  func.func @transform_0(%arg0: i32, %arg1: i32) -> (i32, i32, i32, i32) {
    %c0_i32 = arith.constant 0 : i32
    %c0_i32_0 = arith.constant 0 : i32
    %c0_i32_1 = arith.constant 0 : i32
    return %arg0, %arg1, %c0_i32, %c0_i32_0 : i32, i32, i32, i32
  }
  func.func @transform_1(%arg0: i32, %arg1: i32) -> (i32, i32, i32) {
    %c0_i32 = arith.constant 0 : i32
    %c0_i32_0 = arith.constant 0 : i32
    %c0_i32_1 = arith.constant 0 : i32
    return %arg1, %c0_i32, %c0_i32_0 : i32, i32, i32
  }
  func.func @transform_2(%arg0: i32, %arg1: i32) -> (i32, i32) {
    %c0_i32 = arith.constant 0 : i32
    %c0_i32_0 = arith.constant 0 : i32
    %c0_i32_1 = arith.constant 0 : i32
    return %c0_i32, %c0_i32_0 : i32, i32
  }
  func.func @transform_3(%arg0: i32, %arg1: i32) -> (i32, i32) {
    %c0_i32 = arith.constant 0 : i32
    %c0_i32_0 = arith.constant 0 : i32
    %c0_i32_1 = arith.constant 0 : i32
    return %c0_i32, %c0_i32_0 : i32, i32
  }
  func.func @transform_4(%arg0: i32, %arg1: i32) -> (i32, i32) {
    %c0_i32 = arith.constant 0 : i32
    %c0_i32_0 = arith.constant 0 : i32
    %c0_i32_1 = arith.constant 0 : i32
    return %c0_i32, %c0_i32_0 : i32, i32
  }
  func.func @transform_5(%arg0: i32, %arg1: i32) -> (i32, i32) {
    %c0_i32 = arith.constant 0 : i32
    %c0_i32_0 = arith.constant 0 : i32
    %c0_i32_1 = arith.constant 0 : i32
    return %c0_i32, %c0_i32_0 : i32, i32
  }
  func.func @transform_6(%arg0: i32, %arg1: i32) -> (i32, i32) {
    %c0_i32 = arith.constant 0 : i32
    %c0_i32_0 = arith.constant 0 : i32
    %c0_i32_1 = arith.constant 0 : i32
    return %c0_i32, %c0_i32_0 : i32, i32
  }
  func.func @transform_7(%arg0: i32, %arg1: i32) -> (i32, i32) {
    %c0_i32 = arith.constant 0 : i32
    %c0_i32_0 = arith.constant 0 : i32
    %c0_i32_1 = arith.constant 0 : i32
    return %c0_i32, %c0_i32_0 : i32, i32
  }
  func.func @transform_8(%arg0: i32, %arg1: i32) -> (i32, i32, i32, i32) {
    %c0_i32 = arith.constant 0 : i32
    %c0_i32_0 = arith.constant 0 : i32
    %c0_i32_1 = arith.constant 0 : i32
    return %arg0, %arg1, %c0_i32, %c0_i32_0 : i32, i32, i32, i32
  }
}

</mosaic_0001>

<bundles_post_ra>
// kernel: tpu_custom_call.1
= control target key start
LH: loop header
LB: loop body
LE: loop exit
PB: predicated region body
PF: predicated region fallthrough
CT: control target
= control target key end

     0   :  { %s11118_s27 = smov 0   ;;  %s11120_s28 = smov 0   ;;  %s13863_s0 = inlined_call_operand.vmem [shape: bf16[2,1,440,4], index: 0, kind: input, shape index: {}]   ;;  %s13864_s1 = inlined_call_operand.vmem [shape: f32[1,380,1], index: 1, kind: input, shape index: {}]   ;;  %s13865_s2 = inlined_call_operand.vmem [shape: bf16[36,8], index: 2, kind: input, shape index: {}]   ;;  %s13866_s3 = inlined_call_operand.vmem [shape: f32[1,8], index: 3, kind: input, shape index: {}]   ;;  %s13867_s4 = inlined_call_operand.vmem [shape: bf16[72,8], index: 4, kind: input, shape index: {}]   ;;  %s13868_s5 = inlined_call_operand.vmem [shape: f32[1,8], index: 5, kind: input, shape index: {}]   ;;  %s13869_s6 = inlined_call_operand.vmem [shape: bf16[4,8], index: 6, kind: input, shape index: {}]   ;;  %s13870_s7 = inlined_call_operand.vmem [shape: f32[1,8], index: 7, kind: input, shape index: {}]   ;;  %s13871_s8 = inlined_call_operand.vmem [shape: f32[2,1,320,8], index: 8, kind: output, shape index: {}]  }
   0x1   :  { %s11122_s29 = smov 0  }
   0x2 LB: > { %s30_s30 = sadd.s32 1, %s11066_s28  ;;  %p8445_p0 = scmp.ge.s32.totalorder %s11070_s29, 1  ;;  %s11070_s29 = sphi %s11122_s29, %s18_s29   ;;  %s11066_s28 = sphi %s11120_s28, %s14121_s28   ;;  %s11062_s27 = sphi %s11118_s27, %s14120_s27  }
   0x3   : > { %p32_p1 = scmp.ge.s32.totalorder %s30_s30, 2  ;;  %p292_p2 = scmp.lt.s32.totalorder %s11070_s29, 3 }
   0x5   : > { %s14123_s30 = smov (%p32_p1, %s30_s30), 0  ;;  %p293_p3 = pnand %p8445_p0, %p292_p2 }
   0x7   : > { %296 = sbr.rel (%p293_p3) target bundleno = 2017 (0x7e1), region = 52 }
   0xe   : > { %v10952_v0 = vld [vmem:[%s13865_s2] ss:$0 sps:$4 sm:$0xcc]   ;;  %vm853_vm0 = vcmask 1041408   ;;  %p339_p4 = scmp.lt.s32.totalorder %s11062_s27, 1  ;;  %vm780_vm2 = vcmask 31744  }
   0xf   : > { %v779_v1 = vrot.slane %v10952_v0, 2  ;;  %v462_v2 = vld [vmem:[%s13865_s2] sm:$0x3]  ;;  %vm584_vm1 = vsmask.f32 7424  ;;  %vm1355_vm3 = vcmask 1046528  }
  0x10   : > { %s14125_s27 = smov (!%p339_p4, %s11062_s27), 1  ;;  %v1129_v21 = vsel %vm853_vm0, %v462_v2, 0  ;;  %v11208_v43 = vld [vmem:[%s13865_s2 + $0x4] sm:$0x3]  ;;  %vm1753_vm4 = vcmask 1045504   ;;  %vm2604_vm6 = vcmask 1044480  }
  0x11   : > { %10903 = vmatprep.subr.msk.bf16.mxu0 %vm853_vm0, %v779_v1  ;;  %v855_v3 = vsel %vm853_vm0, %v779_v1, 0  ;;  %10904 = vmatprep.subr.msk.bf16.mxu1 %vm853_vm0, %v779_v1  ;;  %s10923_s13 = smul.u32 220, %s14125_s27  ;;  %vm2153_vm5 = vsmask.f32 5376  ;;  %vm4954_vm7 = vcmask 1043456   ;;  %vm4893_vm8 = vcmask 64512  }
  0x12   : > { %9360 = vmatpush3.bf16.msra.mxu0 %v855_v3  ;;  %10230 = vmatpush3.bf16.msra.mxu1 %v855_v3  ;;  %vm7151_vm9 = vsmask.f32 3328  ;;  %vm7537_vm10 = vcmask 1042432   ;;  %s10924_s9 = smul.u32 320, %s14125_s27 }
  0x13   : > { %10905 = vmatprep.subr.msk.bf16.mxu0 %vm853_vm0, %v462_v2  ;;  %s11152_s16 = scalar_lea.vmem %s13863_s0, %s10923_s13 }
  0x14   : > { %v11155_v4 = vld [vmem:[%s11152_s16] sm:$0xff]   ;;  %v11158_v5 = vld [vmem:[%s11152_s16 + $0x8] sm:$0xff]   ;;  %v367_v6 = vld [vmem:[%s11152_s16 + $0x10] sm:$0xf]  ;;  %s13668_s13 = scalar_lea.vmem %s13871_s8, %s10924_s9 }
  0x15   : > { %v368_v7 = vld [vmem:[%s11152_s16 + $0x14] sm:$0xf]  ;;  %v369_v8 = vld [vmem:[%s11152_s16 + $0x18] sm:$0xf]  ;;  %v586_v9 = vshrl.u32 %v11155_v4, 16  ;;  %v588_v10 = vshll.u32 %v11155_v4, 16 }
  0x16   : > { %v593_v11 = vshll.u32 %v11158_v5, 16  ;;  %v597_v12 = vshrl.u32 %v11158_v5, 16  ;;  %v370_v13 = vld [vmem:[%s11152_s16 + $0x1c] sm:$0xf]  ;;  %v11168_v14 = vcombine.low %v367_v6, %v368_v7  ;;  %v371_v16 = vld [vmem:[%s11152_s16 + $0x20] sm:$0xf] }
  0x17   : > { %v11170_v15 = vcombine.low %v369_v8, %v370_v13  ;;  %v372_v17 = vld [vmem:[%s11152_s16 + $0x24] sm:$0xf]  ;;  %v373_v18 = vld [vmem:[%s11152_s16 + $0x28] sm:$0xf]  ;;  %v590_v19 = vrot.slane %v588_v10, 1 }
  0x18   : > { %v595_v20 = vrot.slane %v593_v11, 1  ;;  %v11178_v22 = vcombine.low %v371_v16, %v372_v17  ;;  %v374_v23 = vld [vmem:[%s11152_s16 + $0x2c] sm:$0xf]  ;;  %v601_v24 = vshll.u32 %v11168_v14, 16  ;;  %v605_v25 = vshrl.u32 %v11168_v14, 16 }
  0x19   : > { %v609_v26 = vshll.u32 %v11170_v15, 16  ;;  %v613_v27 = vshrl.u32 %v11170_v15, 16  ;;  %v591_v28 = vor.u32 %v590_v19, %v586_v9  ;;  %v11188_v31 = vcombine.low %v373_v18, %v374_v23  ;;  %v375_v34 = vld [vmem:[%s11152_s16 + $0x30] sm:$0xf]  ;;  %v376_v35 = vld [vmem:[%s11152_s16 + $0x34] sm:$0xf] }
  0x1a   : > { %v599_v29 = vor.u32 %v597_v12, %v595_v20  ;;  %v13907_v30 = vshll.u32 %v11178_v22, 16  ;;  %v603_v32 = vrot.slane %v601_v24, 1  ;;  %v13908_v37 = vshrl.u32 %v11178_v22, 16  ;;  %v377_v39 = vld [vmem:[%s11152_s16 + $0x38] sm:$0xf] }
  0x1b   : > { %v611_v33 = vrot.slane %v609_v26, 1  ;;  %v596_v36 = vsel %vm584_vm1, %v591_v28, %v595_v20  ;;  %v13904_v38 = vshll.u32 %v11188_v31, 16  ;;  %v378_v40 = vld [vmem:[%s11152_s16 + $0x3c] sm:$0xf]  ;;  %v11213_v45 = vcombine.low %v375_v34, %v376_v35  ;;  %v379_v51 = vld [vmem:[%s11152_s16 + $0x40] sm:$0xf] }
  0x1c   : > { %9361 = vmatprep.mubr.msk.bf16.mxu0 %vm780_vm2, %v596_v36  ;;  %v604_v41 = vsel %vm584_vm1, %v599_v29, %v603_v32  ;;  %v607_v42 = vor.u32 %v605_v25, %v603_v32  ;;  %v619_v44 = vrot.slane %v13907_v30, 1  ;;  %v11218_v48 = vcombine.low %v377_v39, %v378_v40  ;;  %v380_v52 = vld [vmem:[%s11152_s16 + $0x44] sm:$0xf]  ;;  %v381_v53 = vld [vmem:[%s11152_s16 + $0x48] sm:$0xf] }
  0x1d   : > { %9362 = vmatmul.mubr.msk.bf16.vlgmr.msra.gmra.mrb[0].mxu0 %vm780_vm2, %v604_v41  ;;  %v615_v47 = vor.u32 %v613_v27, %v611_v33  ;;  %v627_v50 = vrot.slane %v13904_v38, 1  ;;  %v382_v54 = vld [vmem:[%s11152_s16 + $0x4c] sm:$0xf]  ;;  %v13878_v55 = vshll.u32 %v11213_v45, 16  ;;  %v13906_v57 = vshrl.u32 %v11188_v31, 16 }
  0x1e   : > { %9410 = vmatpush3.bf16.msra.mxu0 %v1129_v21  ;;  %v612_v46 = vsel %vm584_vm1, %v607_v42, %v611_v33  ;;  %v623_v49 = vor.u32 %v13908_v37, %v619_v44  ;;  %v13876_v58 = vshll.u32 %v11218_v48, 16  ;;  %v13903_v60 = vshrl.u32 %v11213_v45, 16  ;;  %v383_v0 = vld [vmem:[%s11152_s16 + $0x50] sm:$0xf]  ;;  %v384_v1 = vld [vmem:[%s11152_s16 + $0x54] sm:$0xf] }
  0x1f   : > { %9365 = vmatprep.mubr.msk.bf16.mxu0 %vm780_vm2, %v612_v46  ;;  %10906 = vmatprep.subr.msk.bf16.mxu0 %vm853_vm0, %v11208_v43  ;;  %v620_v56 = vsel %vm584_vm1, %v615_v47, %v619_v44  ;;  %v11237_v61 = vcombine.low %v379_v51, %v380_v52  ;;  %v11239_v62 = vcombine.low %v381_v53, %v382_v54  ;;  %v635_v63 = vrot.slane %v13878_v55, 1  ;;  %v385_v7 = vld [vmem:[%s11152_s16 + $0x58] sm:$0xf]  ;;  %v386_v16 = vld [vmem:[%s11152_s16 + $0x5c] sm:$0xf] }
  0x20   : > { %v628_v59 = vsel %vm584_vm1, %v623_v49, %v627_v50  ;;  %v631_v2 = vor.u32 %v13906_v57, %v627_v50  ;;  %v643_v3 = vrot.slane %v13876_v58, 1  ;;  %v13877_v6 = vshrl.u32 %v11218_v48, 16  ;;  %v395_v18 = vld [vmem:[%s11152_s16 + $0x80] sm:$0xf]  ;;  %v396_v19 = vld [vmem:[%s11152_s16 + $0x84] sm:$0xf] }
  0x21   : > { %v639_v8 = vor.u32 %v13903_v60, %v635_v63  ;;  %v13874_v9 = vshll.u32 %v11237_v61, 16  ;;  %v13875_v10 = vshrl.u32 %v11237_v61, 16  ;;  %v13873_v13 = vshll.u32 %v11239_v62, 16  ;;  %v397_v20 = vld [vmem:[%s11152_s16 + $0x88] sm:$0xf] }
  0x22   : > { %v11259_v17 = vcombine.low %v383_v0, %v384_v1  ;;  %v398_v21 = vld [vmem:[%s11152_s16 + $0x8c] sm:$0xf]  ;;  %v399_v23 = vld [vmem:[%s11152_s16 + $0x90] sm:$0xf]  ;;  %v400_v28 = vld [vmem:[%s11152_s16 + $0x94] sm:$0xf]  ;;  %v636_v29 = vsel %vm584_vm1, %v631_v2, %v635_v63  ;;  %v11269_v33 = vcombine.low %v385_v7, %v386_v16  ;;  %v647_v35 = vor.u32 %v13877_v6, %v643_v3 }
  0x23   : > { %v13902_v32 = vshrl.u32 %v11239_v62, 16  ;;  %v644_v34 = vsel %vm584_vm1, %v639_v8, %v643_v3  ;;  %v651_v36 = vrot.slane %v13874_v9, 1  ;;  %v11276_v39 = vcombine.low %v395_v18, %v396_v19  ;;  %v401_v46 = vld [vmem:[%s11152_s16 + $0x98] sm:$0xf]  ;;  %v402_v51 = vld [vmem:[%s11152_s16 + $0x9c] sm:$0xf] }
  0x24   : > { %v659_v40 = vrot.slane %v13873_v13, 1  ;;  %v13886_v41 = vshll.u32 %v11259_v17, 16  ;;  %v11281_v42 = vcombine.low %v397_v20, %v398_v21  ;;  %v11283_v44 = vcombine.low %v399_v23, %v400_v28  ;;  %v403_v52 = vld [vmem:[%s11152_s16 + $0xa0] sm:$0xf]  ;;  %v404_v63 = vld [vmem:[%s11152_s16 + $0xa4] sm:$0xf] }
  0x25   : > { %9366 = vmatmul.mubr.msk.bf16.gmra.mrb[4].mxu0 %vm780_vm2, %v620_v56  ;;  %v655_v47 = vor.u32 %v13875_v10, %v651_v36  ;;  %v713_v49 = vshll.u32 %v11276_v39, 16  ;;  %v717_v50 = vshrl.u32 %v11276_v39, 16  ;;  %v13893_v53 = vshrl.u32 %v11259_v17, 16  ;;  %v405_v2 = vld [vmem:[%s11152_s16 + $0xa8] sm:$0xf] }
  0x26   : > { %9369 = vmatprep.mubr.msk.bf16.mxu0 %vm780_vm2, %v628_v59  ;;  %v721_v54 = vshll.u32 %v11281_v42, 16  ;;  %v725_v56 = vshrl.u32 %v11281_v42, 16  ;;  %v13872_v59 = vshll.u32 %v11283_v44, 16  ;;  %v13885_v0 = vshll.u32 %v11269_v33, 16  ;;  %v406_v3 = vld [vmem:[%s11152_s16 + $0xac] sm:$0xf] }
  0x27   : > { %v11302_v1 = vrot.slane %v713_v49, 1  ;;  %v652_v7 = vsel %vm584_vm1, %v647_v35, %v651_v36  ;;  %v11311_v18 = vcombine.low %v401_v46, %v402_v51  ;;  %v660_v19 = vsel %vm584_vm1, %v655_v47, %v659_v40  ;;  %v387_v20 = vld [vmem:[%s11152_s16 + $0x60] sm:$0xf]  ;;  %v388_v21 = vld [vmem:[%s11152_s16 + $0x64] sm:$0xf] }
  0x28   : > { %v723_v8 = vrot.slane %v721_v54, 1  ;;  %v731_v16 = vrot.slane %v13872_v59, 1  ;;  %v13884_v28 = vshrl.u32 %v11283_v44, 16  ;;  %v11326_v46 = vcombine.low %v405_v2, %v406_v3  ;;  %v407_v47 = vld [vmem:[%s11152_s16 + $0xb0] sm:$0xf] }
  0x29   : > { %v719_v23 = vor.u32 %v717_v50, %v11302_v1  ;;  %v13880_v35 = vshll.u32 %v11311_v18, 16  ;;  %v13883_v36 = vshrl.u32 %v11311_v18, 16  ;;  %v408_v51 = vld [vmem:[%s11152_s16 + $0xb4] sm:$0xf]  ;;  %v389_v59 = vld [vmem:[%s11152_s16 + $0x68] sm:$0xf]  ;;  %v11337_v58 = vcombine.low %v387_v20, %v388_v21 }
  0x2a   : > { %v390_v13 = vld [vmem:[%s11152_s16 + $0x6c] sm:$0xf]  ;;  %v13882_v6 = vshll.u32 %v11326_v46, 16  ;;  %v409_v55 = vld [vmem:[%s11152_s16 + $0xb8] sm:$0xf]  ;;  %v667_v20 = vrot.slane %v13886_v41, 1 }
  0x2b   : > { %v724_v9 = vsel %vm584_vm1, %v719_v23, %v723_v8  ;;  %v739_v3 = vrot.slane %v13880_v35, 1  ;;  %v663_v23 = vor.u32 %v13902_v32, %v659_v40  ;;  %v675_v21 = vrot.slane %v13885_v0, 1  ;;  %v11380_v35 = vld [vmem:[%s11152_s16 + $0x70] sm:$0xf] }
  0x2c   : > { %9393 = vmatprep.mubr.msk.bf16.mxu1 %vm780_vm2, %v724_v9  ;;  %v2157_v30 = vrot.slane %v605_v25, 2 }
  0x2d   : > { %9370 = vmatmul.mubr.msk.bf16.gmra.mrb[8].mxu0 %vm780_vm2, %v636_v29  ;;  %v11320_v29 = vcombine.low %v403_v52, %v404_v63  ;;  %v735_v52 = vor.u32 %v13884_v28, %v731_v16  ;;  %v11392_v28 = vld [vmem:[%s11152_s16 + $0x7c] sm:$0xf] }
  0x2e   : > { %9373 = vmatprep.mubr.msk.bf16.mxu0 %vm780_vm2, %v644_v34  ;;  %v727_v34 = vor.u32 %v725_v56, %v723_v8  ;;  %v410_v8 = vld [vmem:[%s11152_s16 + $0xbc] sm:$0xf] }
  0x2f   : > { %v13879_v63 = vshll.u32 %v11320_v29, 16  ;;  %v13881_v10 = vshrl.u32 %v11320_v29, 16  ;;  %v740_v40 = vsel %vm584_vm1, %v735_v52, %v739_v3  ;;  %v13891_v52 = vshrl.u32 %v11337_v58, 16 }
  0x30   : > { %v732_v2 = vsel %vm584_vm1, %v727_v34, %v731_v16  ;;  %v11354_v16 = vcombine.low %v407_v47, %v408_v51  ;;  %v743_v34 = vor.u32 %v13883_v36, %v739_v3  ;;  %v755_v47 = vrot.slane %v13882_v6, 1  ;;  %v11389_v36 = vld [vmem:[%s11152_s16 + $0x78] sm:$0xf] }
  0x31   : > { %9394 = vmatmul.mubr.msk.bf16.vlgmr.msra.gmra.mrb[0].mxu1 %vm780_vm2, %v732_v2  ;;  %v747_v9 = vrot.slane %v13879_v63, 1  ;;  %v671_v2 = vor.u32 %v13893_v53, %v667_v20  ;;  %v13888_v51 = vshll.u32 %v11337_v58, 16  ;;  %v668_v63 = vsel %vm584_vm1, %v663_v23, %v667_v20 }
  0x32   : > { %9397 = vmatprep.mubr.msk.bf16.mxu1 %vm780_vm2, %v740_v40  ;;  %v13887_v3 = vshll.u32 %v11354_v16, 16  ;;  %v13896_v23 = vshrl.u32 %v11354_v16, 16 }
  0x33   : > { %v748_v6 = vsel %vm584_vm1, %v743_v34, %v747_v9  ;;  %v683_v41 = vrot.slane %v13888_v51, 1 }
  0x34   : > { %v763_v34 = vrot.slane %v13887_v3, 1 }
  0x35   : > { %9374 = vmatmul.mubr.msk.bf16.gmra.mrb[12].mxu0 %vm780_vm2, %v652_v7  ;;  %v11359_v7 = vcombine.low %v389_v59, %v390_v13  ;;  %v11371_v13 = vcombine.low %v409_v55, %v410_v8  ;;  %v13889_v59 = vshrl.u32 %v11269_v33, 16  ;;  %v13890_v55 = vshrl.u32 %v11326_v46, 16 }
  0x36   : > { %9377 = vmatprep.mubr.msk.bf16.mxu0 %vm780_vm2, %v660_v19  ;;  %v751_v19 = vor.u32 %v13881_v10, %v747_v9  ;;  %v11383_v10 = vld [vmem:[%s11152_s16 + $0x74] sm:$0xf]  ;;  %v676_v8 = vsel %vm584_vm1, %v671_v2, %v675_v21 }
  0x37   : > { %v13892_v40 = vshll.u32 %v11359_v7, 16  ;;  %v13894_v20 = vshll.u32 %v11371_v13, 16  ;;  %v11402_v9 = vcombine.low %v11380_v35, %v11383_v10  ;;  %v679_v2 = vor.u32 %v13889_v59, %v675_v21 }
  0x38   : > { %v756_v0 = vsel %vm584_vm1, %v751_v19, %v755_v47  ;;  %v759_v19 = vor.u32 %v13890_v55, %v755_v47 }
  0x39   : > { %9398 = vmatmul.mubr.msk.bf16.gmra.mrb[4].mxu1 %vm780_vm2, %v748_v6  ;;  %v687_v6 = vor.u32 %v13891_v52, %v683_v41  ;;  %v691_v3 = vrot.slane %v13892_v40, 1  ;;  %v771_v21 = vrot.slane %v13894_v20, 1  ;;  %v13899_v51 = vshll.u32 %v11402_v9, 16 }
  0x3a   : > { %9401 = vmatprep.mubr.msk.bf16.mxu1 %vm780_vm2, %v756_v0  ;;  %v684_v59 = vsel %vm584_vm1, %v679_v2, %v683_v41  ;;  %v13901_v0 = vshrl.u32 %v11359_v7, 16  ;;  %v764_v47 = vsel %vm584_vm1, %v759_v19, %v763_v34  ;;  %v13900_v52 = vshrl.u32 %v11402_v9, 16 }
  0x3b   : > { %v692_v55 = vsel %vm584_vm1, %v687_v6, %v691_v3  ;;  %v699_v20 = vrot.slane %v13899_v51, 1  ;;  %v13895_v41 = vshrl.u32 %v11371_v13, 16 }
  0x3d   : > { %9378 = vmatmul.mubr.msk.bf16.gmra.mrb[16].mxu0 %vm780_vm2, %v668_v63  ;;  %v11412_v63 = vcombine.low %v11389_v36, %v11392_v28  ;;  %v703_v2 = vor.u32 %v13900_v52, %v699_v20  ;;  %v775_v19 = vor.u32 %v13895_v41, %v771_v21  ;;  %v11623_v41 = vld [vmem:[%s13865_s2 + $0x8] ss:$0 sps:$4 sm:$0xcc]  }
  0x3e   : > { %9381 = vmatprep.mubr.msk.bf16.mxu0 %vm780_vm2, %v676_v8  ;;  %v767_v8 = vor.u32 %v13896_v23, %v763_v34  ;;  %v695_v34 = vor.u32 %v13901_v0, %v691_v3  ;;  %v13905_v51 = vrot.slane %v11623_v41, 2  ;;  %v1761_v0 = vrot.slane %v11188_v31, 2 }
  0x3f   : > { %v13897_v40 = vshll.u32 %v11412_v63, 16 }
  0x40   : > { %v772_v53 = vsel %vm584_vm1, %v767_v8, %v771_v21  ;;  %v700_v6 = vsel %vm584_vm1, %v695_v34, %v699_v20  ;;  %v13898_v8 = vshrl.u32 %v11412_v63, 16  ;;  %v10977_v20 = vld [vmem:[%s13865_s2 + $0x4] ss:$0 sps:$4 sm:$0xcc]   ;;  %v1476_v21 = vsel %vm853_vm0, %v11208_v43, 0 }
  0x41   : > { %9402 = vmatmul.mubr.msk.bf16.gmra.mrb[8].mxu1 %vm780_vm2, %v764_v47  ;;  %v1804_v47 = vrot.slane %v10977_v20, 2  ;;  %v1356_v43 = vrot.slane %v11155_v4, 1 }
  0x42   : > { %9405 = vmatprep.mubr.msk.bf16.mxu1 %vm780_vm2, %v772_v53 }
  0x45   : > { %9382 = vmatmul.mubr.msk.bf16.gmra.mrb[20].mxu0 %vm780_vm2, %v684_v59  ;;  %v707_v59 = vrot.slane %v13897_v40, 1 }
  0x46   : > { %9385 = vmatprep.mubr.msk.bf16.mxu0 %vm780_vm2, %v692_v55 }
  0x47   : > { %v708_v55 = vsel %vm584_vm1, %v703_v2, %v707_v59  ;;  %v711_v53 = vor.u32 %v13898_v8, %v707_v59  ;;  %v1359_v2 = vrot.slane %v11168_v14, 1  ;;  %v1361_v59 = vrot.slane %v11170_v15, 1 }
  0x49   : > { %9406 = vmatmul.mubr.msk.bf16.gmra.mrb[12].mxu1 %vm780_vm2, %v775_v19  ;;  %v716_v3 = vsel %vm584_vm1, %v711_v53, %v11302_v1  ;;  %v1357_v1 = vrot.slane %v11158_v5, 1  ;;  %v1363_v53 = vrot.slane %v11178_v22, 1 }
  0x4b   : > { %v1358_v34 = vsel %vm1355_vm3, %v1356_v43, %v1357_v1  ;;  %v1360_v19 = vsel %vm1355_vm3, %v1357_v1, %v1359_v2  ;;  %v1364_v20 = vsel %vm1355_vm3, %v1361_v59, %v1363_v53  ;;  %v1369_v43 = vrot.slane %v11218_v48, 1 }
  0x4d   : > { %9386 = vmatmul.mubr.msk.bf16.gmra.mrb[24].mxu0 %vm780_vm2, %v700_v6  ;;  %v1878_v6 = vsel %vm853_vm0, %v1804_v47, 0 }
  0x4e   : > { %9389 = vmatprep.mubr.msk.bf16.mxu0 %vm780_vm2, %v708_v55  ;;  %v11525_v55 = vld [vmem:[%s13865_s2 + $0x8] sm:$0x3] }
  0x55   : > { %9390 = vmatmul.mubr.msk.bf16.gmra.mrb[28].mxu0 %vm780_vm2, %v716_v3  ;;  %v1365_v3 = vrot.slane %v11188_v31, 1 }
  0x56   : > { %9411 = vmatprep.mubr.msk.bf16.mxu0 %vm780_vm2, %v11155_v4  ;;  %v1362_v4 = vsel %vm1355_vm3, %v1359_v2, %v1361_v59  ;;  %v1371_v2 = vrot.slane %v11237_v61, 1  ;;  %v1373_v59 = vrot.slane %v11239_v62, 1 }
  0x5d   : > { %9412 = vmatmul.mubr.msk.bf16.vlgmr.msra.gmra.mrb[0].mxu0 %vm780_vm2, %v11158_v5 }
  0x5e   : > { %9460 = vmatpush3.bf16.msra.mxu0 %v1476_v21  ;;  %9415 = vmatprep.mubr.msk.bf16.mxu0 %vm780_vm2, %v11168_v14  ;;  %v1366_v21 = vsel %vm1355_vm3, %v1363_v53, %v1365_v3  ;;  %v1377_v53 = vrot.slane %v11269_v33, 1 }
  0x5f   : > { %10907 = vmatprep.subr.msk.bf16.mxu0 %vm853_vm0, %v1804_v47  ;;  %v1367_v47 = vrot.slane %v11213_v45, 1 }
  0x61   : > { %v1368_v1 = vsel %vm1355_vm3, %v1365_v3, %v1367_v47 }
  0x65   : > { %9416 = vmatmul.mubr.msk.bf16.gmra.mrb[4].mxu0 %vm780_vm2, %v11170_v15 }
  0x66   : > { %9419 = vmatprep.mubr.msk.bf16.mxu0 %vm780_vm2, %v11178_v22 }
  0x6d   : > { %9420 = vmatmul.mubr.msk.bf16.gmra.mrb[8].mxu0 %vm780_vm2, %v11188_v31 }
  0x6e   : > { %9423 = vmatprep.mubr.msk.bf16.mxu0 %vm780_vm2, %v11213_v45 }
  0x75   : > { %9424 = vmatmul.mubr.msk.bf16.gmra.mrb[12].mxu0 %vm780_vm2, %v11218_v48 }
  0x76   : > { %9427 = vmatprep.mubr.msk.bf16.mxu0 %vm780_vm2, %v11237_v61 }
  0x7d   : > { %9428 = vmatmul.mubr.msk.bf16.gmra.mrb[16].mxu0 %vm780_vm2, %v11239_v62 }
  0x7e   : > { %9431 = vmatprep.mubr.msk.bf16.mxu0 %vm780_vm2, %v11259_v17 }
  0x85   : > { %9432 = vmatmul.mubr.msk.bf16.gmra.mrb[20].mxu0 %vm780_vm2, %v11269_v33 }
  0x86   : > { %9435 = vmatprep.mubr.msk.bf16.mxu0 %vm780_vm2, %v11337_v58 }
  0x8d   : > { %9436 = vmatmul.mubr.msk.bf16.gmra.mrb[24].mxu0 %vm780_vm2, %v11359_v7 }
  0x8e   : > { %9439 = vmatprep.mubr.msk.bf16.mxu0 %vm780_vm2, %v11402_v9 }
  0x95   : > { %9440 = vmatmul.mubr.msk.bf16.gmra.mrb[28].mxu0 %vm780_vm2, %v11412_v63 }
  0x96   : > { %9443 = vmatprep.mubr.msk.bf16.mxu0 %vm780_vm2, %v11276_v39 }
  0x9d   : > { %9444 = vmatmul.mubr.msk.bf16.gmra.mrb[32].mxu0 %vm780_vm2, %v11281_v42 }
  0x9e   : > { %9447 = vmatprep.mubr.msk.bf16.mxu0 %vm780_vm2, %v11283_v44 }
  0xa5   : > { %9448 = vmatmul.mubr.msk.bf16.gmra.mrb[36].mxu0 %vm780_vm2, %v11311_v18 }
  0xa6   : > { %9451 = vmatprep.mubr.msk.bf16.mxu0 %vm780_vm2, %v11320_v29 }
  0xad   : > { %9452 = vmatmul.mubr.msk.bf16.gmra.mrb[40].mxu0 %vm780_vm2, %v11326_v46 }
  0xae   : > { %9455 = vmatprep.mubr.msk.bf16.mxu0 %vm780_vm2, %v11354_v16 }
  0xb5   : > { %9456 = vmatmul.mubr.msk.bf16.gmra.mrb[44].mxu0 %vm780_vm2, %v11371_v13 }
  0xb6   : > { %9461 = vmatprep.mubr.msk.bf16.mxu0 %vm780_vm2, %v1358_v34  ;;  %v1370_v34 = vsel %vm1355_vm3, %v1367_v47, %v1369_v43  ;;  %v1381_v47 = vrot.slane %v11359_v7, 1 }
  0xbd   : > { %9462 = vmatmul.mubr.msk.bf16.vlgmr.msra.gmra.mrb[0].mxu0 %vm780_vm2, %v1360_v19  ;;  %v1372_v19 = vsel %vm1355_vm3, %v1369_v43, %v1371_v2 }
  0xbe   : > { %9510 = vmatpush3.bf16.msra.mxu0 %v1878_v6  ;;  %9465 = vmatprep.mubr.msk.bf16.mxu0 %vm780_vm2, %v1362_v4  ;;  %v1374_v6 = vsel %vm1355_vm3, %v1371_v2, %v1373_v59  ;;  %v1375_v4 = vrot.slane %v11259_v17, 1  ;;  %v1385_v2 = vrot.slane %v11412_v63, 1 }
  0xbf   : > { %10908 = vmatprep.subr.msk.bf16.mxu0 %vm853_vm0, %v11525_v55 }
  0xc0   : > { %v1376_v3 = vsel %vm1355_vm3, %v1373_v59, %v1375_v4 }
  0xc5   : > { %9466 = vmatmul.mubr.msk.bf16.gmra.mrb[4].mxu0 %vm780_vm2, %v1364_v20  ;;  %v1378_v20 = vsel %vm1355_vm3, %v1375_v4, %v1377_v53  ;;  %v1389_v4 = vrot.slane %v11281_v42, 1 }
  0xc6   : > { %9469 = vmatprep.mubr.msk.bf16.mxu0 %vm780_vm2, %v1366_v21  ;;  %v1379_v21 = vrot.slane %v11337_v58, 1 }
  0xc8   : > { %v1380_v43 = vsel %vm1355_vm3, %v1377_v53, %v1379_v21  ;;  %v2162_v53 = vrot.slane %v609_v26, 3 }
  0xcd   : > { %9470 = vmatmul.mubr.msk.bf16.gmra.mrb[8].mxu0 %vm780_vm2, %v1368_v1  ;;  %v1382_v1 = vsel %vm1355_vm3, %v1379_v21, %v1381_v47 }
  0xce   : > { %9473 = vmatprep.mubr.msk.bf16.mxu0 %vm780_vm2, %v1370_v34  ;;  %v1383_v34 = vrot.slane %v11402_v9, 1 }
  0xd0   : > { %v1384_v59 = vsel %vm1355_vm3, %v1381_v47, %v1383_v34  ;;  %v1391_v47 = vrot.slane %v11283_v44, 1 }
  0xd5   : > { %9474 = vmatmul.mubr.msk.bf16.gmra.mrb[12].mxu0 %vm780_vm2, %v1372_v19  ;;  %v1386_v19 = vsel %vm1355_vm3, %v1383_v34, %v1385_v2  ;;  %v1392_v34 = vsel %vm1355_vm3, %v1389_v4, %v1391_v47 }
  0xd6   : > { %9477 = vmatprep.mubr.msk.bf16.mxu0 %vm780_vm2, %v1374_v6  ;;  %v1387_v6 = vrot.slane %v11276_v39, 1 }
  0xd8   : > { %v1390_v21 = vsel %vm1355_vm3, %v1387_v6, %v1389_v4  ;;  %v1401_v4 = vrot.slane %v11371_v13, 1 }
  0xdd   : > { %9478 = vmatmul.mubr.msk.bf16.gmra.mrb[16].mxu0 %vm780_vm2, %v1376_v3  ;;  %v2161_v3 = vrot.slane %v613_v27, 2  ;;  %v1395_v27 = vrot.slane %v11320_v29, 1 }
  0xde   : > { %9481 = vmatprep.mubr.msk.bf16.mxu0 %vm780_vm2, %v1378_v20  ;;  %v1388_v20 = vsel %vm1355_vm3, %v1385_v2, %v1387_v6  ;;  %v1397_v2 = vrot.slane %v11326_v46, 1  ;;  %v1399_v6 = vrot.slane %v11354_v16, 1 }
  0xe5   : > { %9482 = vmatmul.mubr.msk.bf16.gmra.mrb[20].mxu0 %vm780_vm2, %v1380_v43  ;;  %v11578_v43 = vor.u32 %v2162_v53, %v2161_v3 }
  0xe6   : > { %9485 = vmatprep.mubr.msk.bf16.mxu0 %vm780_vm2, %v1382_v1  ;;  %v1393_v1 = vrot.slane %v11311_v18, 1 }
  0xe8   : > { %v1394_v26 = vsel %vm1355_vm3, %v1391_v47, %v1393_v1  ;;  %v1402_v47 = vsel %vm1355_vm3, %v1399_v6, %v1401_v4 }
  0xed   : > { %9486 = vmatmul.mubr.msk.bf16.gmra.mrb[24].mxu0 %vm780_vm2, %v1384_v59  ;;  %v1396_v59 = vsel %vm1355_vm3, %v1393_v1, %v1395_v27 }
  0xee   : > { %9489 = vmatprep.mubr.msk.bf16.mxu0 %vm780_vm2, %v1386_v19  ;;  %v1398_v19 = vsel %vm1355_vm3, %v1395_v27, %v1397_v2 }
  0xf5   : > { %9490 = vmatmul.mubr.msk.bf16.gmra.mrb[28].mxu0 %vm780_vm2, %v1388_v20  ;;  %v1400_v20 = vsel %vm1355_vm3, %v1397_v2, %v1399_v6 }
  0xf6   : > { %9493 = vmatprep.mubr.msk.bf16.mxu0 %vm780_vm2, %v1390_v21 }
  0xfd   : > { %9494 = vmatmul.mubr.msk.bf16.gmra.mrb[32].mxu0 %vm780_vm2, %v1392_v34  ;;  %v1754_v34 = vrot.slane %v11158_v5, 2  ;;  %v13977_v5 = vshll.u32 %v11178_v22, 16 }
  0xfe   : > { %9497 = vmatprep.mubr.msk.bf16.mxu0 %vm780_vm2, %v1394_v26  ;;  %v1755_v26 = vrot.slane %v11168_v14, 2 }
 0x104   : > { %v11593_v53 = vpop.f32.mrb[0].mxu1 }
 0x105   : > { %9498 = vmatmul.mubr.msk.bf16.gmra.mrb[36].mxu0 %vm780_vm2, %v1396_v59  ;;  %v11595_v3 = vpop.f32.mrb[1].mxu1 }
 0x106   : > { %9501 = vmatprep.mubr.msk.bf16.mxu0 %vm780_vm2, %v1398_v19  ;;  %v11598_v21 = vpop.f32.mrb[2].mxu1  ;;  %v1756_v19 = vsel %vm1753_vm4, %v1754_v34, %v1755_v26 }
 0x107   : > { %v11601_v1 = vpop.f32.mrb[3].mxu1 }
 0x10c   : > { %v11607_v27 = vpop.f32.mrb[4].mxu1 }
 0x10d   : > { %9502 = vmatmul.mubr.msk.bf16.gmra.mrb[40].mxu0 %vm780_vm2, %v1400_v20  ;;  %v11609_v59 = vpop.f32.mrb[5].mxu1  ;;  %v1757_v20 = vrot.slane %v11170_v15, 2 }
 0x10e   : > { %9505 = vmatprep.mubr.msk.bf16.mxu0 %vm780_vm2, %v1402_v47  ;;  %v11611_v2 = vpop.f32.mrb[6].mxu1  ;;  %v1759_v47 = vrot.slane %v11178_v22, 2 }
 0x10f   : > { %v11614_v6 = vpop.f32.mrb[7].mxu1  ;;  %v1758_v34 = vsel %vm1753_vm4, %v1755_v26, %v1757_v20  ;;  %v1763_v26 = vrot.slane %v11213_v45, 2 }
 0x111   : > { %v1764_v38 = vsel %vm1753_vm4, %v1761_v0, %v1763_v26 }
 0x114   : > { %v11625_v23 = vpop.f32.mrb[8].mxu1 }
 0x115   : > { %9506 = vmatmul.mubr.msk.bf16.gmra.mrb[48].mxu0 %vm780_vm2, %v1401_v4  ;;  %v11627_v40 = vpop.f32.mrb[9].mxu1  ;;  %v2332_v4 = vsel %vm853_vm0, %v11525_v55, 0 }
 0x116   : > { %9511 = vmatprep.mubr.msk.bf16.mxu0 %vm780_vm2, %v1756_v19  ;;  %v11630_v8 = vpop.f32.mrb[10].mxu1  ;;  %v1760_v19 = vsel %vm1753_vm4, %v1757_v20, %v1759_v47  ;;  %v1762_v20 = vsel %vm1753_vm4, %v1759_v47, %v1761_v0  ;;  %v2214_v0 = vrot.slane %v713_v49, 3 }
 0x117   : > { %13974 = vst [vmem:[#allocation2_spill] sm:$0xff] %v11630_v8  ;;  %v11636_v52 = vpop.f32.mrb[11].mxu1 }
 0x118   : > { %13975 = vst [vmem:[#allocation3_spill] sm:$0xff] %v11636_v52  ;;  %v13988_v52 = vshll.u32 %v11239_v62, 16 }
 0x11c   : > { %v9407_v55 = vpop.f32.mrb[12].mxu1 }
 0x11d   : > { %9512 = vmatmul.mubr.msk.bf16.vlgmr.msra.gmra.mrb[0].mxu0 %vm780_vm2, %v1758_v34  ;;  %v11645_v32 = vpop.f32.mrb[13].mxu1  ;;  %v2213_v55 = vrot.slane %v717_v50, 2 }
 0x11e   : > { %9560 = vmatpush3.bf16.msra.mxu0 %v2332_v4  ;;  %9515 = vmatprep.mubr.msk.bf16.mxu0 %vm780_vm2, %v1760_v19  ;;  %v9408_v60 = vpop.f32.mrb[14].mxu1  ;;  %v1765_v4 = vrot.slane %v11218_v48, 2  ;;  %v1767_v19 = vrot.slane %v11237_v61, 2 }
 0x11f   : > { %10909 = vmatprep.subr.msk.bf16.mxu0 %vm853_vm0, %v13905_v51  ;;  %v11649_v34 = vpop.f32.mrb[15].mxu1  ;;  %v2218_v60 = vrot.slane %v721_v54, 3  ;;  %v11669_v50 = vor.u32 %v2214_v0, %v2213_v55  ;;  %v1775_v55 = vrot.slane %v11337_v58, 2  ;;  %v1779_v0 = vrot.slane %v11402_v9, 2 }
 0x120   : > { %v1766_v51 = vsel %vm1753_vm4, %v1763_v26, %v1765_v4  ;;  %v1768_v47 = vsel %vm1753_vm4, %v1765_v4, %v1767_v19  ;;  %v2217_v26 = vrot.slane %v725_v56, 2  ;;  %v1773_v56 = vrot.slane %v11269_v33, 2 }
 0x122   : > { %v11671_v4 = vor.u32 %v2218_v60, %v2217_v26  ;;  %v1776_v60 = vsel %vm1753_vm4, %v1773_v56, %v1775_v55 }
 0x124   : > { %v11677_v49 = vsel %vm2153_vm5, %v11669_v50, %v11671_v4 }
 0x125   : > { %9516 = vmatmul.mubr.msk.bf16.gmra.mrb[4].mxu0 %vm780_vm2, %v1762_v20  ;;  %v1771_v20 = vrot.slane %v11259_v17, 2 }
 0x126   : > { %9519 = vmatprep.mubr.msk.bf16.mxu0 %vm780_vm2, %v1764_v38  ;;  %v1769_v38 = vrot.slane %v11239_v62, 2 }
 0x128   : > { %v1770_v54 = vsel %vm1753_vm4, %v1767_v19, %v1769_v38  ;;  %v1777_v19 = vrot.slane %v11359_v7, 2 }
 0x12a   : > { %v1780_v26 = vsel %vm1753_vm4, %v1777_v19, %v1779_v0 }
 0x12d   : > { %9520 = vmatmul.mubr.msk.bf16.gmra.mrb[8].mxu0 %vm780_vm2, %v1766_v51  ;;  %v1772_v51 = vsel %vm1753_vm4, %v1769_v38, %v1771_v20  ;;  %v1778_v38 = vsel %vm1753_vm4, %v1775_v55, %v1777_v19  ;;  %v1785_v55 = vrot.slane %v11281_v42, 2 }
 0x12e   : > { %9523 = vmatprep.mubr.msk.bf16.mxu0 %vm780_vm2, %v1768_v47  ;;  %v1774_v47 = vsel %vm1753_vm4, %v1771_v20, %v1773_v56  ;;  %v1781_v20 = vrot.slane %v11412_v63, 2 }
 0x135   : > { %9524 = vmatmul.mubr.msk.bf16.gmra.mrb[12].mxu0 %vm780_vm2, %v1770_v54  ;;  %v1783_v54 = vrot.slane %v11276_v39, 2 }
 0x136   : > { %9527 = vmatprep.mubr.msk.bf16.mxu0 %vm780_vm2, %v1772_v51  ;;  %v1782_v51 = vsel %vm1753_vm4, %v1779_v0, %v1781_v20  ;;  %v1789_v0 = vrot.slane %v11311_v18, 2 }
 0x137   : > { %v1784_v56 = vsel %vm1753_vm4, %v1781_v20, %v1783_v54 }
 0x13d   : > { %9528 = vmatmul.mubr.msk.bf16.gmra.mrb[16].mxu0 %vm780_vm2, %v1774_v47  ;;  %v1787_v47 = vrot.slane %v11283_v44, 2 }
 0x13e   : > { %9531 = vmatprep.mubr.msk.bf16.mxu0 %vm780_vm2, %v1776_v60  ;;  %v1786_v60 = vsel %vm1753_vm4, %v1783_v54, %v1785_v55  ;;  %v1793_v54 = vrot.slane %v11326_v46, 2 }
 0x13f   : > { %v1788_v19 = vsel %vm1753_vm4, %v1785_v55, %v1787_v47  ;;  %v11718_v55 = vld [vmem:[%s11152_s16 + $0xc4] sm:$0xf] }
 0x145   : > { %9532 = vmatmul.mubr.msk.bf16.gmra.mrb[20].mxu0 %vm780_vm2, %v1778_v38  ;;  %v1791_v38 = vrot.slane %v11320_v29, 2 }
 0x146   : > { %9535 = vmatprep.mubr.msk.bf16.mxu0 %vm780_vm2, %v1780_v26  ;;  %v1790_v26 = vsel %vm1753_vm4, %v1787_v47, %v1789_v0 }
 0x147   : > { %v1792_v20 = vsel %vm1753_vm4, %v1789_v0, %v1791_v38  ;;  %v1797_v0 = vrot.slane %v11371_v13, 2 }
 0x14d   : > { %9536 = vmatmul.mubr.msk.bf16.gmra.mrb[24].mxu0 %vm780_vm2, %v1782_v51  ;;  %v1795_v51 = vrot.slane %v11354_v16, 2 }
 0x14e   : > { %9539 = vmatprep.mubr.msk.bf16.mxu0 %vm780_vm2, %v1784_v56  ;;  %v11715_v56 = vld [vmem:[%s11152_s16 + $0xc0] sm:$0xf] }
 0x14f   : > { %v11724_v47 = vcombine.low %v11715_v56, %v11718_v55  ;;  %v1798_v57 = vsel %vm1753_vm4, %v1795_v51, %v1797_v0 }
 0x155   : > { %9540 = vmatmul.mubr.msk.bf16.gmra.mrb[28].mxu0 %vm780_vm2, %v1786_v60  ;;  %v1794_v60 = vsel %vm1753_vm4, %v1791_v38, %v1793_v54 }
 0x156   : > { %9543 = vmatprep.mubr.msk.bf16.mxu0 %vm780_vm2, %v1788_v19  ;;  %v1796_v19 = vsel %vm1753_vm4, %v1793_v54, %v1795_v51  ;;  %v2154_v54 = vrot.slane %v597_v12, 2  ;;  %v13976_v51 = vshrl.u32 %v11178_v22, 16  ;;  %v2166_v12 = vrot.slane %v13977_v5, 3 }
 0x15d   : > { %9544 = vmatmul.mubr.msk.bf16.gmra.mrb[32].mxu0 %vm780_vm2, %v1790_v26  ;;  %v1799_v26 = vrot.slane %v11724_v47, 2 }
 0x15e   : > { %9547 = vmatprep.mubr.msk.bf16.mxu0 %vm780_vm2, %v1792_v20  ;;  %v2155_v20 = vrot.slane %v593_v11, 3 }
 0x15f   : > { %v1800_v38 = vsel %vm1753_vm4, %v1797_v0, %v1799_v26  ;;  %v2165_v0 = vrot.slane %v13976_v51, 2  ;;  %v13982_v51 = vshll.u32 %v11213_v45, 16 }
 0x161   : > { %v2167_v25 = vor.u32 %v2166_v12, %v2165_v0  ;;  %v2174_v0 = vrot.slane %v13982_v51, 3  ;;  %v13983_v12 = vshrl.u32 %v11218_v48, 16 }
 0x165   : > { %9548 = vmatmul.mubr.msk.bf16.gmra.mrb[36].mxu0 %vm780_vm2, %v1794_v60  ;;  %v2158_v60 = vrot.slane %v601_v24, 3 }
 0x166   : > { %9551 = vmatprep.mubr.msk.bf16.mxu0 %vm780_vm2, %v1796_v19  ;;  %v2156_v19 = vor.u32 %v2155_v20, %v2154_v54  ;;  %v13980_v54 = vrot.slane %v11623_v41, 2 }
 0x167   : > { %v2159_v37 = vor.u32 %v2158_v60, %v2157_v30  ;;  %v13979_v30 = vshll.u32 %v11188_v31, 16 }
 0x168   : > { %v2731_v60 = vsel %vm853_vm0, %v13980_v54, 0 }
 0x169   : > { %v2160_v11 = vsel %vm2153_vm5, %v2156_v19, %v2159_v37  ;;  %v2164_v24 = vsel %vm2153_vm5, %v2159_v37, %v11578_v43  ;;  %v2168_v19 = vsel %vm2153_vm5, %v11578_v43, %v2167_v25  ;;  %v11767_v37 = vld [vmem:[%s13865_s2 + $0xc] sm:$0x3] }
 0x16d   : > { %9552 = vmatmul.mubr.msk.bf16.gmra.mrb[40].mxu0 %vm780_vm2, %v1798_v57  ;;  %v13978_v57 = vshrl.u32 %v11188_v31, 16 }
 0x16e   : > { %9555 = vmatprep.mubr.msk.bf16.mxu0 %vm780_vm2, %v1800_v38  ;;  %v2170_v38 = vrot.slane %v13979_v30, 3  ;;  %v13984_v30 = vshll.u32 %v11218_v48, 16 }
 0x16f   : > { %v2169_v20 = vrot.slane %v13978_v57, 2  ;;  %v2177_v57 = vrot.slane %v13983_v12, 2 }
 0x170   : > { %v2178_v54 = vrot.slane %v13984_v30, 3  ;;  %v13987_v30 = vshrl.u32 %v11239_v62, 16 }
 0x171   : > { %v2171_v41 = vor.u32 %v2170_v38, %v2169_v20 }
 0x172   : > { %v2179_v38 = vor.u32 %v2178_v54, %v2177_v57  ;;  %v13989_v57 = vshrl.u32 %v11259_v17, 16 }
 0x173   : > { %v2172_v43 = vsel %vm2153_vm5, %v2167_v25, %v2171_v41 }
 0x174   : > { %v2189_v54 = vrot.slane %v13989_v57, 2  ;;  %v13993_v57 = vshrl.u32 %v11337_v58, 16 }
 0x175   : > { %9556 = vmatmul.mubr.msk.bf16.gmra.mrb[52].mxu0 %vm780_vm2, %v1799_v26  ;;  %v13981_v26 = vshrl.u32 %v11213_v45, 16 }
 0x176   : > { %9561 = vmatprep.mubr.msk.bf16.mxu0 %vm780_vm2, %v2160_v11 }
 0x177   : > { %v2173_v11 = vrot.slane %v13981_v26, 2 }
 0x179   : > { %v2175_v5 = vor.u32 %v2174_v0, %v2173_v11 }
 0x17b   : > { %v2176_v26 = vsel %vm2153_vm5, %v2171_v41, %v2175_v5  ;;  %v2180_v41 = vsel %vm2153_vm5, %v2175_v5, %v2179_v38 }
 0x17d   : > { %9562 = vmatmul.mubr.msk.bf16.vlgmr.msra.gmra.mrb[0].mxu0 %vm780_vm2, %v2164_v24  ;;  %v13985_v24 = vshrl.u32 %v11237_v61, 16 }
 0x17e   : > { %9610 = vmatpush3.bf16.msra.mxu0 %v2731_v60  ;;  %9565 = vmatprep.mubr.msk.bf16.mxu0 %vm780_vm2, %v2168_v19  ;;  %v13986_v19 = vshll.u32 %v11237_v61, 16 }
 0x17f   : > { %10910 = vmatprep.subr.msk.bf16.mxu0 %vm853_vm0, %v11767_v37  ;;  %v2181_v60 = vrot.slane %v13985_v24, 2  ;;  %v2185_v24 = vrot.slane %v13987_v30, 2 }
 0x180   : > { %v2182_v20 = vrot.slane %v13986_v19, 3  ;;  %v2186_v19 = vrot.slane %v13988_v52, 3 }
 0x182   : > { %v2183_v25 = vor.u32 %v2182_v20, %v2181_v60  ;;  %v2187_v5 = vor.u32 %v2186_v19, %v2185_v24 }
 0x184   : > { %v2188_v52 = vsel %vm2153_vm5, %v2183_v25, %v2187_v5 }
 0x185   : > { %9566 = vmatmul.mubr.msk.bf16.gmra.mrb[4].mxu0 %vm780_vm2, %v2172_v43  ;;  %v2184_v43 = vsel %vm2153_vm5, %v2179_v38, %v2183_v25 }
 0x186   : > { %9569 = vmatprep.mubr.msk.bf16.mxu0 %vm780_vm2, %v2176_v26  ;;  %v13990_v26 = vshll.u32 %v11259_v17, 16 }
 0x188   : > { %v9457_v11 = vpop.f32.mrb[44].mxu0  ;;  %v2190_v60 = vrot.slane %v13990_v26, 3  ;;  %v13996_v26 = vshll.u32 %v11359_v7, 16 }
 0x189   : > { %v1341_v51 = vpop.f32.mrb[45].mxu0  ;;  %v13991_v11 = vshrl.u32 %v11269_v33, 16 }
 0x18a   : > { %v11786_v0 = vadd.f32 %v1341_v51, %v11645_v32  ;;  %v9458_v12 = vpop.f32.mrb[46].mxu0  ;;  %v2191_v20 = vor.u32 %v2190_v60, %v2189_v54  ;;  %v13992_v51 = vshll.u32 %v11269_v33, 16  ;;  %v2202_v60 = vrot.slane %v13996_v26, 3 }
 0x18b   : > { %v1344_v8 = vpop.f32.mrb[47].mxu0  ;;  %v2193_v38 = vrot.slane %v13991_v11, 2  ;;  %v13997_v11 = vshrl.u32 %v11402_v9, 16 }
 0x18c   : > { %v11799_v32 = vadd.f32 %v1344_v8, %v11649_v34  ;;  %v2194_v12 = vrot.slane %v13992_v51, 3  ;;  %v2192_v30 = vsel %vm2153_vm5, %v2187_v5, %v2191_v20  ;;  %v2197_v8 = vrot.slane %v13993_v57, 2 }
 0x18d   : > { %9570 = vmatmul.mubr.msk.bf16.gmra.mrb[8].mxu0 %vm780_vm2, %v2180_v41  ;;  %v13994_v34 = vshll.u32 %v11337_v58, 16  ;;  %v2205_v51 = vrot.slane %v13997_v11, 2  ;;  %v13998_v57 = vshll.u32 %v11402_v9, 16 }
 0x18e   : > { %9573 = vmatprep.mubr.msk.bf16.mxu0 %vm780_vm2, %v2184_v43  ;;  %v2195_v24 = vor.u32 %v2194_v12, %v2193_v38  ;;  %v13995_v43 = vshrl.u32 %v11359_v7, 16 }
 0x18f   : > { %v2198_v41 = vrot.slane %v13994_v34, 3  ;;  %v14000_v34 = vshll.u32 %v11412_v63, 16 }
 0x190   : > { %v2196_v19 = vsel %vm2153_vm5, %v2191_v20, %v2195_v24  ;;  %v2201_v54 = vrot.slane %v13995_v43, 2 }
 0x191   : > { %v2199_v25 = vor.u32 %v2198_v41, %v2197_v8  ;;  %v2210_v41 = vrot.slane %v14000_v34, 3 }
 0x192   : > { %v2203_v38 = vor.u32 %v2202_v60, %v2201_v54  ;;  %v14002_v60 = vshll.u32 %v11283_v44, 16 }
 0x193   : > { %v2200_v5 = vsel %vm2153_vm5, %v2195_v24, %v2199_v25 }
 0x194   : > { %v2204_v12 = vsel %vm2153_vm5, %v2199_v25, %v2203_v38  ;;  %v14001_v25 = vshrl.u32 %v11283_v44, 16 }
 0x195   : > { %9574 = vmatmul.mubr.msk.bf16.gmra.mrb[12].mxu0 %vm780_vm2, %v2188_v52  ;;  %v2206_v52 = vrot.slane %v13998_v57, 3 }
 0x196   : > { %9577 = vmatprep.mubr.msk.bf16.mxu0 %vm780_vm2, %v2192_v30  ;;  %v13999_v30 = vshrl.u32 %v11412_v63, 16  ;;  %v2221_v26 = vrot.slane %v14001_v25, 2 }
 0x197   : > { %v2207_v20 = vor.u32 %v2206_v52, %v2205_v51  ;;  %v14003_v51 = vshrl.u32 %v11311_v18, 16  ;;  %v14004_v52 = vshll.u32 %v11311_v18, 16 }
 0x198   : > { %v2209_v8 = vrot.slane %v13999_v30, 2  ;;  %v14006_v30 = vshll.u32 %v11320_v29, 16 }
 0x199   : > { %v2208_v24 = vsel %vm2153_vm5, %v2203_v38, %v2207_v20  ;;  %v2225_v57 = vrot.slane %v14003_v51, 2  ;;  %v2226_v38 = vrot.slane %v14004_v52, 3  ;;  %v2249_v52 = vshll.u32 %v11724_v47, 16 }
 0x19a   : > { %v2211_v43 = vor.u32 %v2210_v41, %v2209_v8  ;;  %v2230_v8 = vrot.slane %v14006_v30, 3 }
 0x19b   : > { %v2227_v34 = vor.u32 %v2226_v38, %v2225_v57  ;;  %v2246_v57 = vshrl.u32 %v11724_v47, 16 }
 0x19c   : > { %v2216_v54 = vsel %vm2153_vm5, %v2211_v43, %v11669_v50 }
 0x19d   : > { %9578 = vmatmul.mubr.msk.bf16.gmra.mrb[16].mxu0 %vm780_vm2, %v2196_v19  ;;  %v2212_v19 = vsel %vm2153_vm5, %v2207_v20, %v2211_v43  ;;  %v14005_v20 = vshrl.u32 %v11320_v29, 16  ;;  %v14007_v43 = vshrl.u32 %v11326_v46, 16 }
 0x19e   : > { %9581 = vmatprep.mubr.msk.bf16.mxu0 %vm780_vm2, %v2200_v5  ;;  %v2222_v5 = vrot.slane %v14002_v60, 3 }
 0x1a0   : > { %v2223_v11 = vor.u32 %v2222_v5, %v2221_v26  ;;  %v14009_v26 = vshrl.u32 %v11354_v16, 16 }
 0x1a2   : > { %v2224_v50 = vsel %vm2153_vm5, %v11671_v4, %v2223_v11  ;;  %v14008_v4 = vshll.u32 %v11326_v46, 16  ;;  %v2237_v60 = vrot.slane %v14009_v26, 2 }
 0x1a5   : > { %9582 = vmatmul.mubr.msk.bf16.gmra.mrb[20].mxu0 %vm780_vm2, %v2204_v12  ;;  %v2229_v12 = vrot.slane %v14005_v20, 2 }
 0x1a6   : > { %9585 = vmatprep.mubr.msk.bf16.mxu0 %vm780_vm2, %v2208_v24  ;;  %v2228_v24 = vsel %vm2153_vm5, %v2223_v11, %v2227_v34 }
 0x1a7   : > { %v2231_v41 = vor.u32 %v2230_v8, %v2229_v12  ;;  %v14012_v12 = vshll.u32 %v11371_v13, 16 }
 0x1a9   : > { %v2232_v25 = vsel %vm2153_vm5, %v2227_v34, %v2231_v41  ;;  %v2242_v30 = vrot.slane %v14012_v12, 3  ;;  %v2248_v34 = vrot.slane %v2246_v57, 2 }
 0x1ad   : > { %9586 = vmatmul.mubr.msk.bf16.gmra.mrb[24].mxu0 %vm780_vm2, %v2212_v19  ;;  %v2233_v19 = vrot.slane %v14007_v43, 2  ;;  %v11878_v43 = vld [vmem:[%s11152_s16 + $0xc8] sm:$0xf] }
 0x1ae   : > { %9589 = vmatprep.mubr.msk.bf16.mxu0 %vm780_vm2, %v2216_v54  ;;  %v2234_v54 = vrot.slane %v14008_v4, 3 }
 0x1b0   : > { %v2235_v11 = vor.u32 %v2234_v54, %v2233_v19 }
 0x1b2   : > { %v2236_v38 = vsel %vm2153_vm5, %v2231_v41, %v2235_v11  ;;  %v11884_v41 = vcombine.low %v11878_v43, %v11878_v43 }
 0x1b5   : > { %9590 = vmatmul.mubr.msk.bf16.gmra.mrb[28].mxu0 %vm780_vm2, %v11677_v49  ;;  %v14010_v49 = vshll.u32 %v11354_v16, 16 }
 0x1b6   : > { %9593 = vmatprep.mubr.msk.bf16.mxu0 %vm780_vm2, %v2224_v50  ;;  %v14011_v50 = vshrl.u32 %v11371_v13, 16 }
 0x1b7   : > { %v2238_v5 = vrot.slane %v14010_v49, 3  ;;  %v11007_v49 = vld [vmem:[%s11152_s16 + $0x8] sm:$0xff]  }
 0x1b8   : > { %v2241_v20 = vrot.slane %v14011_v50, 2  ;;  %v11902_v50 = vld [vmem:[%s13865_s2 + $0xc] ss:$0 sps:$4 sm:$0xcc]  }
 0x1b9   : > { %v2239_v51 = vor.u32 %v2238_v5, %v2237_v60  ;;  %v2605_v5 = vrot.slane %v11007_v49, 3 }
 0x1ba   : > { %v2243_v19 = vor.u32 %v2242_v30, %v2241_v20  ;;  %v3104_v20 = vsel %vm853_vm0, %v11767_v37, 0  ;;  %v3546_v30 = vrot.slane %v11902_v50, 2  ;;  %v11014_v50 = vld [vmem:[%s11152_s16 + $0x2c] sm:$0xf] }
 0x1bb   : > { %v2240_v8 = vsel %vm2153_vm5, %v2235_v11, %v2239_v51  ;;  %v2606_v11 = vrot.slane %v11168_v14, 3 }
 0x1bc   : > { %v2244_v54 = vsel %vm2153_vm5, %v2239_v51, %v2243_v19  ;;  %v2608_v51 = vrot.slane %v11170_v15, 3  ;;  %v2612_v15 = vrot.slane %v11188_v31, 3 }
 0x1bd   : > { %9594 = vmatmul.mubr.msk.bf16.gmra.mrb[32].mxu0 %vm780_vm2, %v2228_v24  ;;  %v2251_v24 = vrot.slane %v2249_v52, 3  ;;  %v2607_v52 = vsel %vm2604_vm6, %v2605_v5, %v2606_v11  ;;  %v2624_v5 = vrot.slane %v11269_v33, 3  ;;  %v2634_v33 = vrot.slane %v11276_v39, 3 }
 0x1be   : > { %9597 = vmatprep.mubr.msk.bf16.mxu0 %vm780_vm2, %v2232_v25  ;;  %v2255_v25 = vshll.u32 %v11884_v41, 16  ;;  %v2609_v14 = vsel %vm2604_vm6, %v2606_v11, %v2608_v51  ;;  %v2640_v39 = vrot.slane %v11311_v18, 3 }
 0x1bf   : > { %v2252_v4 = vor.u32 %v2251_v24, %v2248_v34  ;;  %v2616_v34 = vrot.slane %v11218_v48, 3  ;;  %v2618_v24 = vrot.slane %v11237_v61, 3  ;;  %v2620_v48 = vrot.slane %v11239_v62, 3 }
 0x1c0   : > { %v2257_v60 = vrot.slane %v2255_v25, 3  ;;  %v2622_v61 = vrot.slane %v11259_v17, 3  ;;  %v2628_v62 = vrot.slane %v11359_v7, 3  ;;  %v2630_v17 = vrot.slane %v11402_v9, 3 }
 0x1c1   : > { %v2253_v26 = vsel %vm2153_vm5, %v2243_v19, %v2252_v4  ;;  %v2636_v7 = vrot.slane %v11281_v42, 3  ;;  %v2638_v9 = vrot.slane %v11283_v44, 3  ;;  %v2644_v42 = vrot.slane %v11326_v46, 3 }
 0x1c2   : > { %v2258_v57 = vsel %vm2153_vm5, %v2252_v4, %v2257_v60  ;;  %v2623_v49 = vsel %vm2604_vm6, %v2620_v48, %v2622_v61  ;;  %v2625_v11 = vsel %vm2604_vm6, %v2622_v61, %v2624_v5  ;;  %v2646_v44 = vrot.slane %v11354_v16, 3  ;;  %v12003_v61 = vld [vmem:[%s13865_s2 + $0x10] sm:$0x3] }
 0x1c4   : > { %v2647_v18 = vsel %vm2604_vm6, %v2644_v42, %v2646_v44 }
 0x1c5   : > { %9598 = vmatmul.mubr.msk.bf16.gmra.mrb[36].mxu0 %vm780_vm2, %v2236_v38  ;;  %v2610_v38 = vrot.slane %v11178_v22, 3  ;;  %v2614_v22 = vrot.slane %v11213_v45, 3 }
 0x1c6   : > { %9601 = vmatprep.mubr.msk.bf16.mxu0 %vm780_vm2, %v2240_v8 }
 0x1c7   : > { %v2611_v12 = vsel %vm2604_vm6, %v2608_v51, %v2610_v38  ;;  %v2613_v8 = vsel %vm2604_vm6, %v2610_v38, %v2612_v15  ;;  %v2615_v37 = vsel %vm2604_vm6, %v2612_v15, %v2614_v22  ;;  %v2631_v51 = vsel %vm2604_vm6, %v2628_v62, %v2630_v17 }
 0x1c8   : > { %v2641_v15 = vsel %vm2604_vm6, %v2638_v9, %v2640_v39 }
 0x1cd   : > { %9602 = vmatmul.mubr.msk.bf16.gmra.mrb[40].mxu0 %vm780_vm2, %v2244_v54  ;;  %v2617_v54 = vsel %vm2604_vm6, %v2614_v22, %v2616_v34 }
 0x1ce   : > { %9605 = vmatprep.mubr.msk.bf16.mxu0 %vm780_vm2, %v2253_v26  ;;  %v2619_v26 = vsel %vm2604_vm6, %v2616_v34, %v2618_v24  ;;  %v2652_v34 = vrot.slane %v11884_v41, 3  ;;  %v11012_v41 = vld [vmem:[%s11152_s16 + $0x24] sm:$0xf] }
 0x1d5   : > { %9606 = vmatmul.mubr.msk.bf16.gmra.mrb[56].mxu0 %vm780_vm2, %v2258_v57 }
 0x1d6   : > { %9611 = vmatprep.mubr.msk.bf16.mxu0 %vm780_vm2, %v2607_v52 }
 0x1dd   : > { %9612 = vmatmul.mubr.msk.bf16.vlgmr.msra.gmra.mrb[0].mxu0 %vm780_vm2, %v2609_v14 }
 0x1de   : > { %9660 = vmatpush3.bf16.msra.mxu0 %v3104_v20  ;;  %9615 = vmatprep.mubr.msk.bf16.mxu0 %vm780_vm2, %v2611_v12  ;;  %v2637_v20 = vsel %vm2604_vm6, %v2634_v33, %v2636_v7  ;;  %v2639_v12 = vsel %vm2604_vm6, %v2636_v7, %v2638_v9 }
 0x1df   : > { %10911 = vmatprep.subr.msk.bf16.mxu0 %vm853_vm0, %v3546_v30 }
 0x1e5   : > { %9616 = vmatmul.mubr.msk.bf16.gmra.mrb[4].mxu0 %vm780_vm2, %v2613_v8 }
 0x1e6   : > { %9619 = vmatprep.mubr.msk.bf16.mxu0 %vm780_vm2, %v2615_v37  ;;  %v2650_v37 = vrot.slane %v11724_v47, 3  ;;  %v11010_v47 = vld [vmem:[%s11152_s16 + $0x1c] sm:$0xf] }
 0x1e8   : > { %v9507_v19 = vpop.f32.mrb[48].mxu0 }
 0x1e9   : > { %v1688_v31 = vpop.f32.mrb[49].mxu0  ;;  %v11008_v19 = vld [vmem:[%s11152_s16 + $0x14] sm:$0xf] }
 0x1ea   : > { %v11923_v45 = vadd.f32 %v1688_v31, %v11786_v0  ;;  %v9508_v4 = vpop.f32.mrb[50].mxu0  ;;  %v2621_v0 = vsel %vm2604_vm6, %v2618_v24, %v2620_v48  ;;  %v2653_v24 = vsel %vm2604_vm6, %v2650_v37, %v2652_v34  ;;  %v11009_v31 = vld [vmem:[%s11152_s16 + $0x18] sm:$0xf]  ;;  %v3620_v48 = vsel %vm853_vm0, %v3546_v30, 0  ;;  %v11015_v30 = vld [vmem:[%s11152_s16 + $0x30] sm:$0xf] }
 0x1eb   : > { %v1691_v25 = vpop.f32.mrb[51].mxu0  ;;  %v11011_v4 = vld [vmem:[%s11152_s16 + $0x20] sm:$0xf] }
 0x1ec   : > { %v11928_v60 = vadd.f32 %v1691_v25, %v11799_v32  ;;  %v2626_v32 = vrot.slane %v11337_v58, 3  ;;  %v2632_v58 = vrot.slane %v11412_v63, 3  ;;  %v2642_v63 = vrot.slane %v11320_v29, 3  ;;  %v11013_v25 = vld [vmem:[%s11152_s16 + $0x28] sm:$0xf] }
 0x1ed   : > { %9620 = vmatmul.mubr.msk.bf16.gmra.mrb[8].mxu0 %vm780_vm2, %v2617_v54  ;;  %v2648_v29 = vrot.slane %v11371_v13, 3  ;;  %v11984_v13 = vcombine.low %v11008_v19, %v11009_v31  ;;  %v11991_v54 = vcombine.low %v11010_v47, %v11011_v4  ;;  %v11036_v47 = vld [vmem:[%s11152_s16 + $0x94] sm:$0xf]  ;;  %v11037_v4 = vld [vmem:[%s11152_s16 + $0x98] sm:$0xf] }
 0x1ee   : > { %9623 = vmatprep.mubr.msk.bf16.mxu0 %vm780_vm2, %v2619_v26  ;;  %v2627_v57 = vsel %vm2604_vm6, %v2624_v5, %v2626_v32  ;;  %v2629_v52 = vsel %vm2604_vm6, %v2626_v32, %v2628_v62  ;;  %v2633_v38 = vsel %vm2604_vm6, %v2630_v17, %v2632_v58  ;;  %v2635_v14 = vsel %vm2604_vm6, %v2632_v58, %v2634_v33  ;;  %v11017_v5 = vld [vmem:[%s11152_s16 + $0x38] sm:$0xf]  ;;  %v11018_v62 = vld [vmem:[%s11152_s16 + $0x3c] sm:$0xf]  ;;  %v11019_v17 = vld [vmem:[%s11152_s16 + $0x40] sm:$0xf] }
 0x1ef   : > { %v2643_v22 = vsel %vm2604_vm6, %v2640_v39, %v2642_v63  ;;  %v2645_v8 = vsel %vm2604_vm6, %v2642_v63, %v2644_v42  ;;  %v2649_v46 = vsel %vm2604_vm6, %v2646_v44, %v2648_v29  ;;  %v2651_v16 = vsel %vm2604_vm6, %v2648_v29, %v2650_v37  ;;  %v11020_v33 = vld [vmem:[%s11152_s16 + $0x44] sm:$0xf]  ;;  %v11024_v39 = vld [vmem:[%s11152_s16 + $0x54] sm:$0xf]  ;;  %v11025_v63 = vld [vmem:[%s11152_s16 + $0x58] sm:$0xf] }
 0x1f0   : > { %v11995_v26 = vcombine.low %v11012_v41, %v11013_v25  ;;  %v11028_v44 = vld [vmem:[%s11152_s16 + $0x64] sm:$0xf]  ;;  %v11030_v29 = vld [vmem:[%s11152_s16 + $0x6c] sm:$0xf]  ;;  %v11038_v41 = vld [vmem:[%s11152_s16 + $0x9c] sm:$0xf] }
 0x1f1   : > { %v12067_v37 = vcombine.low %v11030_v29, %v11380_v35  ;;  %v11033_v35 = vld [vmem:[%s11152_s16 + $0x88] sm:$0xf]  ;;  %v11039_v25 = vld [vmem:[%s11152_s16 + $0xa0] sm:$0xf]  ;;  %v3382_v29 = vshll.u32 %v11991_v54, 16 }
 0x1f5   : > { %9624 = vmatmul.mubr.msk.bf16.gmra.mrb[12].mxu0 %vm780_vm2, %v2621_v0  ;;  %v12013_v0 = vcombine.low %v11014_v50, %v11015_v30  ;;  %v11040_v50 = vld [vmem:[%s11152_s16 + $0xa4] sm:$0xf]  ;;  %v11041_v30 = vld [vmem:[%s11152_s16 + $0xa8] sm:$0xf] }
 0x1f6   : > { %9627 = vmatprep.mubr.msk.bf16.mxu0 %vm780_vm2, %v2623_v49  ;;  %v11016_v49 = vld [vmem:[%s11152_s16 + $0x34] sm:$0xf] }
 0x1f7   : > { %v12017_v32 = vcombine.low %v11016_v49, %v11017_v5  ;;  %v12107_v49 = vcombine.low %v11040_v50, %v11041_v30  ;;  %v418_v5 = vld [vmem:[%s13864_s1 + $0x10] sm:$0xff]  ;;  %v3393_v50 = vshrl.u32 %v11995_v26, 16  ;;  %v3396_v30 = vshll.u32 %v12013_v0, 16 }
 0x1fd   : > { %9628 = vmatmul.mubr.msk.bf16.gmra.mrb[16].mxu0 %vm780_vm2, %v2625_v11 }
 0x1fe   : > { %9631 = vmatprep.mubr.msk.bf16.mxu0 %vm780_vm2, %v2627_v57 }
 0x205   : > { %9632 = vmatmul.mubr.msk.bf16.gmra.mrb[20].mxu0 %vm780_vm2, %v2629_v52  ;;  %v12025_v52 = vcombine.low %v11018_v62, %v11019_v17  ;;  %v11042_v62 = vld [vmem:[%s11152_s16 + $0xac] sm:$0xf]  ;;  %v11043_v17 = vld [vmem:[%s11152_s16 + $0xb0] sm:$0xf] }
 0x206   : > { %9635 = vmatprep.mubr.msk.bf16.mxu0 %vm780_vm2, %v2631_v51 }
 0x20d   : > { %9636 = vmatmul.mubr.msk.bf16.gmra.mrb[24].mxu0 %vm780_vm2, %v2633_v38  ;;  %v11021_v38 = vld [vmem:[%s11152_s16 + $0x48] sm:$0xf] }
 0x20e   : > { %9639 = vmatprep.mubr.msk.bf16.mxu0 %vm780_vm2, %v2635_v14  ;;  %v12032_v14 = vcombine.low %v11020_v33, %v11021_v38  ;;  %v11044_v33 = vld [vmem:[%s11152_s16 + $0xb4] sm:$0xf]  ;;  %v11045_v38 = vld [vmem:[%s11152_s16 + $0xb8] sm:$0xf] }
 0x215   : > { %9640 = vmatmul.mubr.msk.bf16.gmra.mrb[28].mxu0 %vm780_vm2, %v2637_v20  ;;  %v11023_v20 = vld [vmem:[%s11152_s16 + $0x50] sm:$0xf] }
 0x216   : > { %9643 = vmatprep.mubr.msk.bf16.mxu0 %vm780_vm2, %v2639_v12 }
 0x21d   : > { %9644 = vmatmul.mubr.msk.bf16.gmra.mrb[32].mxu0 %vm780_vm2, %v2641_v15  ;;  %v12047_v15 = vcombine.low %v11024_v39, %v11025_v63  ;;  %v3378_v39 = vshll.u32 %v11984_v13, 16  ;;  %v11046_v63 = vld [vmem:[%s11152_s16 + $0xbc] sm:$0xf] }
 0x21e   : > { %9647 = vmatprep.mubr.msk.bf16.mxu0 %vm780_vm2, %v2643_v22  ;;  %v11027_v22 = vld [vmem:[%s11152_s16 + $0x60] sm:$0xf] }
 0x225   : > { %9648 = vmatmul.mubr.msk.bf16.gmra.mrb[36].mxu0 %vm780_vm2, %v2645_v8  ;;  %v11029_v8 = vld [vmem:[%s11152_s16 + $0x68] sm:$0xf] }
 0x226   : > { %9651 = vmatprep.mubr.msk.bf16.mxu0 %vm780_vm2, %v2647_v18  ;;  %v12059_v18 = vcombine.low %v11028_v44, %v11029_v8  ;;  %v3376_v44 = vshrl.u32 %v11984_v13, 16  ;;  %v3380_v8 = vrot.slane %v3378_v39, 1 }
 0x22d   : > { %9652 = vmatmul.mubr.msk.bf16.gmra.mrb[40].mxu0 %vm780_vm2, %v2649_v46  ;;  %v12071_v46 = vcombine.low %v11383_v10, %v11389_v36  ;;  %v11034_v10 = vld [vmem:[%s11152_s16 + $0x8c] sm:$0xf]  ;;  %v11035_v36 = vld [vmem:[%s11152_s16 + $0x90] sm:$0xf] }
 0x22e   : > { %9655 = vmatprep.mubr.msk.bf16.mxu0 %vm780_vm2, %v2651_v16  ;;  %v11031_v16 = vld [vmem:[%s11152_s16 + $0x80] sm:$0xf]  ;;  %v12091_v31 = vcombine.low %v11034_v10, %v11035_v36  ;;  %v12165_v10 = vld [vmem:[%s11152_s16 + $0xcc] sm:$0xff]   ;;  %v3389_v36 = vshll.u32 %v11995_v26, 16 }
 0x22f   : > { %v12079_v34 = vcombine.low %v11392_v28, %v11031_v16  ;;  %v12095_v28 = vcombine.low %v11036_v47, %v11037_v4  ;;  %v421_v16 = vld [vmem:[%s13864_s1 + $0x28] sm:$0xff]  ;;  %v424_v4 = vld [vmem:[%s13864_s1 + $0x40] sm:$0xff] }
 0x230   : > { %v425_v47 = vld [vmem:[%s13864_s1 + $0x48] sm:$0xff] }
 0x235   : > { %9656 = vmatmul.mubr.msk.bf16.gmra.mrb[60].mxu0 %vm780_vm2, %v2653_v24  ;;  %v11032_v24 = vld [vmem:[%s11152_s16 + $0x84] sm:$0xf] }
 0x236   : > { %9661 = vmatprep.mubr.msk.bf16.mxu0 %vm780_vm2, %v11984_v13  ;;  %v12083_v19 = vcombine.low %v11032_v24, %v11033_v35  ;;  %v420_v24 = vld [vmem:[%s13864_s1 + $0x20] sm:$0xff]  ;;  %v3384_v35 = vrot.slane %v3382_v29, 1  ;;  %v3407_v29 = vshrl.u32 %v12017_v32, 16 }
 0x23d   : > { %9662 = vmatmul.mubr.msk.bf16.vlgmr.msra.gmra.mrb[0].mxu0 %vm780_vm2, %v11991_v54 }
 0x23e   : > { %9710 = vmatpush3.bf16.msra.mxu0 %v3620_v48  ;;  %9665 = vmatprep.mubr.msk.bf16.mxu0 %vm780_vm2, %v11995_v26  ;;  %v12103_v48 = vcombine.low %v11038_v41, %v11039_v25  ;;  %v3386_v41 = vshrl.u32 %v11991_v54, 16 }
 0x23f   : > { %10912 = vmatprep.subr.msk.bf16.mxu0 %vm853_vm0, %v12003_v61 }
 0x245   : > { %9666 = vmatmul.mubr.msk.bf16.gmra.mrb[4].mxu0 %vm780_vm2, %v12013_v0 }
 0x246   : > { %9669 = vmatprep.mubr.msk.bf16.mxu0 %vm780_vm2, %v12017_v32 }
 0x248   : > { %v9557_v11 = vpop.f32.mrb[52].mxu0 }
 0x249   : > { %v2090_v57 = vpop.f32.mrb[53].mxu0  ;;  %v416_v11 = vld [vmem:[%s13864_s1] sm:$0xff] }
 0x24a   : > { %v12028_v51 = vadd.f32 %v2090_v57, %v11923_v45  ;;  %v9558_v58 = vpop.f32.mrb[54].mxu0  ;;  %v11022_v45 = vld [vmem:[%s11152_s16 + $0x4c] sm:$0xf]  ;;  %v11072_v57 = vmov 0  }
 0x24b   : > { %v2093_v7 = vpop.f32.mrb[55].mxu0  ;;  %v12043_v12 = vcombine.low %v11022_v45, %v11023_v20  ;;  %10951 = vset.pattern.permute.xlu1 %v11072_v57  ;;  %10950 = vset.pattern.permute.xlu0 %v11072_v57  ;;  %v12121_v58 = vcombine.low %v11042_v62, %v11043_v17  ;;  %v419_v45 = vld [vmem:[%s13864_s1 + $0x18] sm:$0xff]  ;;  %v417_v20 = vld [vmem:[%s13864_s1 + $0x8] sm:$0xff]  ;;  %v426_v57 = vld [vmem:[%s13864_s1 + $0x50] sm:$0xff]  ;;  %v3388_v62 = vor.u32 %v3386_v41, %v3384_v35 }
 0x24c   : > { %v12035_v9 = vadd.f32 %v2093_v7, %v11928_v60  ;;  %v11026_v60 = vld [vmem:[%s11152_s16 + $0x5c] sm:$0xf]  ;;  %4440 = vperm.xlu1 %10951, %v418_v5   ;;  %4430 = vperm.xlu0 %10950, %v416_v11   ;;  %v12125_v7 = vcombine.low %v11044_v33, %v11045_v38  ;;  %v3391_v5 = vrot.slane %v3389_v36, 1  ;;  %v3398_v33 = vrot.slane %v3396_v30, 1 }
 0x24d   : > { %9670 = vmatmul.mubr.msk.bf16.gmra.mrb[8].mxu0 %vm780_vm2, %v12025_v52  ;;  %v12055_v42 = vcombine.low %v11026_v60, %v11027_v22  ;;  %v12140_v60 = vcombine.low %v11046_v63, %v11715_v56  ;;  %v12144_v22 = vcombine.low %v11718_v55, %v11878_v43  ;;  %v423_v56 = vld [vmem:[%s13864_s1 + $0x38] sm:$0xff]  ;;  %v422_v55 = vld [vmem:[%s13864_s1 + $0x30] sm:$0xff]  ;;  %v3381_v43 = vor.u32 %v3380_v8, %v3376_v44 }
 0x24e   : > { %9673 = vmatprep.mubr.msk.bf16.mxu0 %vm780_vm2, %v12032_v14  ;;  %v427_v11 = vld [vmem:[%s13864_s1 + $0x58] sm:$0xff]  ;;  %v3395_v17 = vor.u32 %v3393_v50, %v3391_v5  ;;  %v3403_v38 = vshll.u32 %v12017_v32, 16  ;;  %v3392_v39 = vsel %vm584_vm1, %v3388_v62, %v3391_v5  ;;  %v3400_v63 = vshrl.u32 %v12013_v0, 16  ;;  %v434_v62 = vld [vmem:[%s13864_s1 + $0x90] sm:$0xff] }
 0x24f   : > { %v3385_v25 = vsel %vm584_vm1, %v3381_v43, %v3384_v35  ;;  %v4012_v44 = vsel %vm853_vm0, %v12003_v61, 0  ;;  %v3417_v36 = vshll.u32 %v12032_v14, 16  ;;  %v3421_v30 = vshrl.u32 %v12032_v14, 16 }
 0x250   : > { %4445 = vperm.xlu1 %10951, %v419_v45   ;;  %4435 = vperm.xlu0 %10950, %v417_v20   ;;  %v429_v45 = vld [vmem:[%s13864_s1 + $0x68] sm:$0xff]  ;;  %v428_v20 = vld [vmem:[%s13864_s1 + $0x60] sm:$0xff]  ;;  %v3399_v8 = vsel %vm584_vm1, %v3395_v17, %v3398_v33  ;;  %v3402_v61 = vor.u32 %v3400_v63, %v3398_v33  ;;  %v3424_v5 = vshll.u32 %v12043_v12, 16 }
 0x251   : > { %v437_v63 = vld [vmem:[%s13864_s1 + $0xa8] sm:$0xff] }
 0x254   : > { %4455 = vperm.xlu1 %10951, %v421_v16   ;;  %4450 = vperm.xlu0 %10950, %v420_v24   ;;  %v3410_v16 = vshll.u32 %v12025_v52, 16  ;;  %v3405_v24 = vrot.slane %v3403_v38, 1  ;;  %v3426_v38 = vrot.slane %v3424_v5, 1 }
 0x255   : > { %9674 = vmatmul.mubr.msk.bf16.gmra.mrb[12].mxu0 %vm780_vm2, %v12043_v12 }
 0x256   : > { %9677 = vmatprep.mubr.msk.bf16.mxu0 %vm780_vm2, %v12047_v15  ;;  %v3409_v43 = vor.u32 %v3407_v29, %v3405_v24  ;;  %v3412_v35 = vrot.slane %v3410_v16, 1  ;;  %v3406_v41 = vsel %vm584_vm1, %v3402_v61, %v3405_v24  ;;  %v3428_v24 = vshrl.u32 %v12043_v12, 16 }
 0x257   : > { %v3435_v61 = vshrl.u32 %v12047_v15, 16 }
 0x258   : > { %4465 = vperm.xlu1 %10951, %v423_v56   ;;  %4460 = vperm.xlu0 %10950, %v422_v55   ;;  %v431_v56 = vld [vmem:[%s13864_s1 + $0x78] sm:$0xff]  ;;  %v430_v55 = vld [vmem:[%s13864_s1 + $0x70] sm:$0xff]  ;;  %v3413_v50 = vsel %vm584_vm1, %v3409_v43, %v3412_v35  ;;  %v3438_v43 = vshll.u32 %v12055_v42, 16 }
 0x25c   : > { %4475 = vperm.xlu1 %10951, %v425_v47   ;;  %4470 = vperm.xlu0 %10950, %v424_v4   ;;  %v433_v47 = vld [vmem:[%s13864_s1 + $0x88] sm:$0xff]  ;;  %v432_v4 = vld [vmem:[%s13864_s1 + $0x80] sm:$0xff] }
 0x25d   : > { %9678 = vmatmul.mubr.msk.bf16.gmra.mrb[16].mxu0 %vm780_vm2, %v12055_v42 }
 0x25e   : > { %9681 = vmatprep.mubr.msk.bf16.mxu0 %vm780_vm2, %v12059_v18 }
 0x260   : > { %4485 = vperm.xlu1 %10951, %v427_v11   ;;  %4480 = vperm.xlu0 %10950, %v426_v57   ;;  %v3419_v11 = vrot.slane %v3417_v36, 1  ;;  %v435_v57 = vld [vmem:[%s13864_s1 + $0x98] sm:$0xff] }
 0x261   : > { %v439_v36 = vld [vmem:[%s13864_s1 + $0xb8] sm:$0xff] }
 0x262   : > { %v3423_v33 = vor.u32 %v3421_v30, %v3419_v11  ;;  %v440_v30 = vld [vmem:[%s13864_s1 + $0xc0] sm:$0xff] }
 0x264   : > { %4495 = vperm.xlu1 %10951, %v429_v45   ;;  %4490 = vperm.xlu0 %10950, %v428_v20  }
 0x265   : > { %9682 = vmatmul.mubr.msk.bf16.gmra.mrb[20].mxu0 %vm780_vm2, %v12067_v37 }
 0x266   : > { %9685 = vmatprep.mubr.msk.bf16.mxu0 %vm780_vm2, %v12071_v46 }
 0x268   : > { %4505 = vperm.xlu1 %10951, %v431_v56   ;;  %4500 = vperm.xlu0 %10950, %v430_v55   ;;  %v3427_v55 = vsel %vm584_vm1, %v3423_v33, %v3426_v38 }
 0x26c   : > { %4515 = vperm.xlu1 %10951, %v433_v47   ;;  %4510 = vperm.xlu0 %10950, %v432_v4   ;;  %v438_v47 = vld [vmem:[%s13864_s1 + $0xb0] sm:$0xff]  ;;  %v3430_v4 = vor.u32 %v3428_v24, %v3426_v38  ;;  %v443_v38 = vld [vmem:[%s13864_s1 + $0xd8] sm:$0xff] }
 0x26d   : > { %9686 = vmatmul.mubr.msk.bf16.gmra.mrb[24].mxu0 %vm780_vm2, %v12079_v34 }
 0x26e   : > { %9689 = vmatprep.mubr.msk.bf16.mxu0 %vm780_vm2, %v12083_v19 }
 0x270   : > { %4525 = vperm.xlu1 %10951, %v435_v57   ;;  %4520 = vperm.xlu0 %10950, %v434_v62   ;;  %v3449_v62 = vshrl.u32 %v12059_v18, 16 }
 0x274   : > { %4535 = vperm.xlu1 %10951, %v437_v63  }
 0x275   : > { %9690 = vmatmul.mubr.msk.bf16.gmra.mrb[28].mxu0 %vm780_vm2, %v12091_v31 }
 0x276   : > { %9693 = vmatprep.mubr.msk.bf16.mxu0 %vm780_vm2, %v12095_v28 }
 0x278   : > { %4545 = vperm.xlu1 %10951, %v439_v36   ;;  %v447_v36 = vld [vmem:[%s13864_s1 + $0xf8] sm:$0xff] }
 0x27d   : > { %9694 = vmatmul.mubr.msk.bf16.gmra.mrb[32].mxu0 %vm780_vm2, %v12103_v48 }
 0x27e   : > { %9697 = vmatprep.mubr.msk.bf16.mxu0 %vm780_vm2, %v12107_v49 }
 0x285   : > { %9698 = vmatmul.mubr.msk.bf16.gmra.mrb[36].mxu0 %vm780_vm2, %v12121_v58 }
 0x286   : > { %9701 = vmatprep.mubr.msk.bf16.mxu0 %vm780_vm2, %v12125_v7 }
 0x28d   : > { %9702 = vmatmul.mubr.msk.bf16.gmra.mrb[40].mxu0 %vm780_vm2, %v12140_v60 }
 0x28e   : > { %9705 = vmatprep.mubr.msk.bf16.mxu0 %vm780_vm2, %v12144_v22 }
 0x295   : > { %9706 = vmatmul.mubr.msk.bf16.gmra.mrb[64].mxu0 %vm780_vm2, %v12165_v10 }
 0x296   : > { %9711 = vmatprep.mubr.msk.bf16.mxu0 %vm780_vm2, %v3385_v25  ;;  %v3414_v25 = vshrl.u32 %v12025_v52, 16 }
 0x298   : > { %v3416_v17 = vor.u32 %v3414_v25, %v3412_v35  ;;  %v3440_v25 = vrot.slane %v3438_v43, 1  ;;  %v3466_v43 = vshll.u32 %v12079_v34, 16 }
 0x29a   : > { %v3420_v16 = vsel %vm584_vm1, %v3416_v17, %v3419_v11  ;;  %v3442_v11 = vshrl.u32 %v12055_v42, 16  ;;  %v3452_v17 = vshll.u32 %v12067_v37, 16 }
 0x29c   : > { %v3454_v63 = vrot.slane %v3452_v17, 1  ;;  %v3480_v17 = vshll.u32 %v12091_v31, 16 }
 0x29d   : > { %9712 = vmatmul.mubr.msk.bf16.vlgmr.msra.gmra.mrb[0].mxu0 %vm780_vm2, %v3392_v39  ;;  %v3431_v39 = vshll.u32 %v12047_v15, 16 }
 0x29e   : > { %9760 = vmatpush3.bf16.msra.mxu0 %v4012_v44  ;;  %9715 = vmatprep.mubr.msk.bf16.mxu0 %vm780_vm2, %v3399_v8  ;;  %v436_v44 = vld [vmem:[%s13864_s1 + $0xa0] sm:$0xff] }
 0x29f   : > { %4530 = vperm.xlu0 %10950, %v436_v44   ;;  %v3459_v44 = vshll.u32 %v12071_v46, 16 }
 0x2a3   : > { %4540 = vperm.xlu0 %10950, %v438_v47   ;;  %v446_v47 = vld [vmem:[%s13864_s1 + $0xf0] sm:$0xff] }
 0x2a5   : > { %9716 = vmatmul.mubr.msk.bf16.gmra.mrb[4].mxu0 %vm780_vm2, %v3406_v41 }
 0x2a6   : > { %9719 = vmatprep.mubr.msk.bf16.mxu0 %vm780_vm2, %v3413_v50  ;;  %v441_v50 = vld [vmem:[%s13864_s1 + $0xc8] sm:$0xff] }
 0x2a7   : > { %4555 = vperm.xlu1 %10951, %v441_v50   ;;  %4550 = vperm.xlu0 %10950, %v440_v30   ;;  %v449_v50 = vld [vmem:[%s13864_s1 + $0x108] sm:$0xff]  ;;  %v448_v30 = vld [vmem:[%s13864_s1 + $0x100] sm:$0xff] }
 0x2a8   : > { %v9607_v45 = vpop.f32.mrb[56].mxu0 }
 0x2a9   : > { %v2544_v20 = vpop.f32.mrb[57].mxu0  ;;  %v442_v45 = vld [vmem:[%s13864_s1 + $0xd0] sm:$0xff] }
 0x2aa   : > { %v12237_v8 = vadd.f32 %v2544_v20, %v12028_v51  ;;  %v9608_v29 = vpop.f32.mrb[58].mxu0  ;;  %v3433_v51 = vrot.slane %v3431_v39, 1  ;;  %v3444_v20 = vor.u32 %v3442_v11, %v3440_v25  ;;  %v3470_v11 = vshrl.u32 %v12079_v34, 16 }
 0x2ab   : > { %v2547_v56 = vpop.f32.mrb[59].mxu0  ;;  %4565 = vperm.xlu1 %10951, %v443_v38   ;;  %4560 = vperm.xlu0 %10950, %v442_v45   ;;  %v445_v29 = vld [vmem:[%s13864_s1 + $0xe8] sm:$0xff]  ;;  %v451_v38 = vld [vmem:[%s13864_s1 + $0x118] sm:$0xff]  ;;  %v450_v45 = vld [vmem:[%s13864_s1 + $0x110] sm:$0xff] }
 0x2ac   : > { %v12245_v35 = vadd.f32 %v2547_v56, %v12035_v9  ;;  %v3437_v41 = vor.u32 %v3435_v61, %v3433_v51  ;;  %v3445_v9 = vshll.u32 %v12059_v18, 16  ;;  %v3434_v5 = vsel %vm584_vm1, %v3430_v4, %v3433_v51 }
 0x2ad   : > { %9720 = vmatmul.mubr.msk.bf16.gmra.mrb[8].mxu0 %vm780_vm2, %v3420_v16  ;;  %v444_v16 = vld [vmem:[%s13864_s1 + $0xe0] sm:$0xff]  ;;  %v3456_v56 = vshrl.u32 %v12067_v37, 16  ;;  %v3463_v61 = vshrl.u32 %v12071_v46, 16  ;;  %v3461_v51 = vrot.slane %v3459_v44, 1  ;;  %v3487_v44 = vshll.u32 %v12095_v28, 16 }
 0x2ae   : > { %9723 = vmatprep.mubr.msk.bf16.mxu0 %vm780_vm2, %v3427_v55  ;;  %v3441_v57 = vsel %vm584_vm1, %v3437_v41, %v3440_v25  ;;  %v3447_v33 = vrot.slane %v3445_v9, 1  ;;  %v3468_v25 = vrot.slane %v3466_v43, 1  ;;  %v3473_v9 = vshll.u32 %v12083_v19, 16 }
 0x2af   : > { %4575 = vperm.xlu1 %10951, %v445_v29   ;;  %4570 = vperm.xlu0 %10950, %v444_v16   ;;  %v3458_v4 = vor.u32 %v3456_v56, %v3454_v63  ;;  %v3465_v41 = vor.u32 %v3463_v61, %v3461_v51  ;;  %v453_v29 = vld [vmem:[%s13864_s1 + $0x128] sm:$0xff]  ;;  %v452_v16 = vld [vmem:[%s13864_s1 + $0x120] sm:$0xff]  ;;  %v3484_v56 = vshrl.u32 %v12091_v31, 16  ;;  %v3491_v61 = vshrl.u32 %v12095_v28, 16 }
 0x2b0   : > { %v3451_v39 = vor.u32 %v3449_v62, %v3447_v33  ;;  %v3448_v24 = vsel %vm584_vm1, %v3444_v20, %v3447_v33  ;;  %v3477_v62 = vshrl.u32 %v12083_v19, 16  ;;  %v3475_v33 = vrot.slane %v3473_v9, 1 }
 0x2b1   : > { %v3472_v20 = vor.u32 %v3470_v11, %v3468_v25  ;;  %v3494_v43 = vshll.u32 %v12103_v48, 16  ;;  %v3501_v9 = vshll.u32 %v12107_v49, 16  ;;  %v3498_v11 = vshrl.u32 %v12103_v48, 16 }
 0x2b2   : > { %v3455_v55 = vsel %vm584_vm1, %v3451_v39, %v3454_v63  ;;  %v3479_v39 = vor.u32 %v3477_v62, %v3475_v33  ;;  %v3482_v63 = vrot.slane %v3480_v17, 1  ;;  %v3505_v62 = vshrl.u32 %v12107_v49, 16 }
 0x2b3   : > { %4585 = vperm.xlu1 %10951, %v447_v36   ;;  %4580 = vperm.xlu0 %10950, %v446_v47   ;;  %v455_v36 = vld [vmem:[%s13864_s1 + $0x138] sm:$0xff]  ;;  %v454_v47 = vld [vmem:[%s13864_s1 + $0x130] sm:$0xff]  ;;  %v3508_v17 = vshll.u32 %v12121_v58, 16 }
 0x2b5   : > { %9724 = vmatmul.mubr.msk.bf16.gmra.mrb[12].mxu0 %vm780_vm2, %v3434_v5  ;;  %v3462_v5 = vsel %vm584_vm1, %v3458_v4, %v3461_v51  ;;  %v3489_v51 = vrot.slane %v3487_v44, 1  ;;  %v3486_v4 = vor.u32 %v3484_v56, %v3482_v63  ;;  %v3515_v44 = vshll.u32 %v12125_v7, 16 }
 0x2b6   : > { %9727 = vmatprep.mubr.msk.bf16.mxu0 %vm780_vm2, %v3441_v57  ;;  %v3469_v57 = vsel %vm584_vm1, %v3465_v41, %v3468_v25  ;;  %v3496_v25 = vrot.slane %v3494_v43, 1  ;;  %v3512_v56 = vshrl.u32 %v12121_v58, 16  ;;  %v3522_v43 = vshll.u32 %v12140_v60, 16 }
 0x2b7   : > { %4595 = vperm.xlu1 %10951, %v449_v50   ;;  %4590 = vperm.xlu0 %10950, %v448_v30   ;;  %v3493_v41 = vor.u32 %v3491_v61, %v3489_v51  ;;  %v457_v50 = vld [vmem:[%s13864_s1 + $0x148] sm:$0xff]  ;;  %v456_v30 = vld [vmem:[%s13864_s1 + $0x140] sm:$0xff]  ;;  %v3519_v61 = vshrl.u32 %v12125_v7, 16 }
 0x2bb   : > { %4605 = vperm.xlu1 %10951, %v451_v38   ;;  %4600 = vperm.xlu0 %10950, %v450_v45   ;;  %v459_v38 = vld [vmem:[%s13864_s1 + $0x158] sm:$0xff]  ;;  %v458_v45 = vld [vmem:[%s13864_s1 + $0x150] sm:$0xff] }
 0x2bd   : > { %9728 = vmatmul.mubr.msk.bf16.gmra.mrb[16].mxu0 %vm780_vm2, %v3448_v24  ;;  %v3476_v24 = vsel %vm584_vm1, %v3472_v20, %v3475_v33  ;;  %v3503_v33 = vrot.slane %v3501_v9, 1  ;;  %v3500_v20 = vor.u32 %v3498_v11, %v3496_v25  ;;  %v3526_v9 = vshrl.u32 %v12140_v60, 16 }
 0x2be   : > { %9731 = vmatprep.mubr.msk.bf16.mxu0 %vm780_vm2, %v3455_v55  ;;  %v3483_v55 = vsel %vm584_vm1, %v3479_v39, %v3482_v63  ;;  %v3510_v63 = vrot.slane %v3508_v17, 1 }
 0x2bf   : > { %4615 = vperm.xlu1 %10951, %v453_v29   ;;  %4610 = vperm.xlu0 %10950, %v452_v16   ;;  %v3507_v39 = vor.u32 %v3505_v62, %v3503_v33  ;;  %v461_v29 = vld [vmem:[%s13864_s1 + $0x168] sm:$0xff]  ;;  %v460_v16 = vld [vmem:[%s13864_s1 + $0x160] sm:$0xff] }
 0x2c3   : > { %4625 = vperm.xlu1 %10951, %v455_v36   ;;  %4620 = vperm.xlu0 %10950, %v454_v47   ;;  %v3514_v36 = vor.u32 %v3512_v56, %v3510_v63  ;;  %v3901_v56 = vrot.slane %v12025_v52, 1 }
 0x2c5   : > { %9732 = vmatmul.mubr.msk.bf16.gmra.mrb[20].mxu0 %vm780_vm2, %v3462_v5  ;;  %v3490_v5 = vsel %vm584_vm1, %v3486_v4, %v3489_v51  ;;  %v3517_v51 = vrot.slane %v3515_v44, 1  ;;  %v3524_v4 = vrot.slane %v3522_v43, 1 }
 0x2c6   : > { %9735 = vmatprep.mubr.msk.bf16.mxu0 %vm780_vm2, %v3469_v57  ;;  %v3497_v57 = vsel %vm584_vm1, %v3493_v41, %v3496_v25  ;;  %v3529_v41 = vshll.u32 %v12144_v22, 16 }
 0x2c7   : > { %4635 = vperm.xlu1 %10951, %v457_v50   ;;  %4630 = vperm.xlu0 %10950, %v456_v30   ;;  %v3521_v47 = vor.u32 %v3519_v61, %v3517_v51  ;;  %v3518_v25 = vsel %vm584_vm1, %v3514_v36, %v3517_v51  ;;  %v3533_v30 = vshrl.u32 %v12144_v22, 16  ;;  %v3905_v61 = vrot.slane %v12043_v12, 1 }
 0x2c8   : > { %v3531_v11 = vrot.slane %v3529_v41, 1  ;;  %v3909_v12 = vrot.slane %v12055_v42, 1 }
 0x2c9   : > { %v3525_v50 = vsel %vm584_vm1, %v3521_v47, %v3524_v4 }
 0x2ca   : > { %v3535_v62 = vor.u32 %v3533_v30, %v3531_v11  ;;  %v3917_v30 = vrot.slane %v12079_v34, 1 }
 0x2cb   : > { %4645 = vperm.xlu1 %10951, %v459_v38   ;;  %4640 = vperm.xlu0 %10950, %v458_v45   ;;  %v3540_v45 = vshrl.u32 %v12165_v10, 16 }
 0x2cd   : > { %9736 = vmatmul.mubr.msk.bf16.gmra.mrb[24].mxu0 %vm780_vm2, %v3476_v24  ;;  %v3504_v24 = vsel %vm584_vm1, %v3500_v20, %v3503_v33  ;;  %v3892_v20 = vrot.slane %v11984_v13, 1 }
 0x2ce   : > { %9739 = vmatprep.mubr.msk.bf16.mxu0 %vm780_vm2, %v3483_v55  ;;  %v3511_v55 = vsel %vm584_vm1, %v3507_v39, %v3510_v63  ;;  %v3893_v39 = vrot.slane %v11991_v54, 1  ;;  %v3899_v54 = vrot.slane %v12017_v32, 1 }
 0x2cf   : > { %4655 = vperm.xlu1 %10951, %v461_v29   ;;  %4650 = vperm.xlu0 %10950, %v460_v16   ;;  %v3895_v29 = vrot.slane %v11995_v26, 1  ;;  %v3897_v16 = vrot.slane %v12013_v0, 1 }
 0x2d0   : > { %v12385_v44 = vsel %vm1355_vm3, %v3892_v20, %v3893_v39  ;;  %v12408_v0 = vsel %vm1355_vm3, %v3899_v54, %v3901_v56  ;;  %v3935_v20 = vrot.slane %v12144_v22, 1 }
 0x2d1   : > { %14013 = vst [vmem:[#allocation4_spill] sm:$0xff] %v12385_v44  ;;  %v12396_v13 = vsel %vm1355_vm3, %v3895_v29, %v3897_v16  ;;  %v12405_v26 = vsel %vm1355_vm3, %v3897_v16, %v3899_v54  ;;  %14017 = vst [vmem:[#allocation8_spill] sm:$0xff] %v12408_v0 }
 0x2d2   : > { %14015 = vst [vmem:[#allocation6_spill] sm:$0xff] %v12396_v13  ;;  %14016 = vst [vmem:[#allocation7_spill] sm:$0xff] %v12405_v26 }
 0x2d5   : > { %9740 = vmatmul.mubr.msk.bf16.gmra.mrb[28].mxu0 %vm780_vm2, %v3490_v5  ;;  %v3536_v5 = vshll.u32 %v12165_v10, 16 }
 0x2d6   : > { %9743 = vmatprep.mubr.msk.bf16.mxu0 %vm780_vm2, %v3497_v57  ;;  %v3528_v57 = vor.u32 %v3526_v9, %v3524_v4  ;;  %v3913_v9 = vrot.slane %v12067_v37, 1 }
 0x2d7   : > { %v3538_v17 = vrot.slane %v3536_v5, 1  ;;  %v3919_v5 = vrot.slane %v12083_v19, 1 }
 0x2d8   : > { %v3532_v33 = vsel %vm584_vm1, %v3528_v57, %v3531_v11  ;;  %v3921_v11 = vrot.slane %v12091_v31, 1  ;;  %v3923_v57 = vrot.slane %v12095_v28, 1 }
 0x2d9   : > { %v3539_v38 = vsel %vm584_vm1, %v3535_v62, %v3538_v17  ;;  %v3542_v63 = vor.u32 %v3540_v45, %v3538_v17  ;;  %v3925_v62 = vrot.slane %v12103_v48, 1  ;;  %v3927_v17 = vrot.slane %v12107_v49, 1 }
 0x2da   : > { %v12472_v34 = vsel %vm1355_vm3, %v3919_v5, %v3921_v11  ;;  %v12481_v19 = vsel %vm1355_vm3, %v3921_v11, %v3923_v57  ;;  %v3933_v49 = vrot.slane %v12140_v60, 1 }
 0x2db   : > { %14027 = vst [vmem:[#allocation18_spill] sm:$0xff] %v12472_v34  ;;  %14028 = vst [vmem:[#allocation19_spill] sm:$0xff] %v12481_v19  ;;  %v12484_v31 = vsel %vm1355_vm3, %v3923_v57, %v3925_v62  ;;  %v12495_v28 = vsel %vm1355_vm3, %v3925_v62, %v3927_v17 }
 0x2dc   : > { %14029 = vst [vmem:[#allocation20_spill] sm:$0xff] %v12484_v31  ;;  %14031 = vst [vmem:[#allocation22_spill] sm:$0xff] %v12495_v28 }
 0x2dd   : > { %9744 = vmatmul.mubr.msk.bf16.gmra.mrb[32].mxu0 %vm780_vm2, %v3504_v24  ;;  %v12393_v24 = vsel %vm1355_vm3, %v3893_v39, %v3895_v29  ;;  %v3937_v39 = vrot.slane %v12165_v10, 1 }
 0x2de   : > { %9747 = vmatprep.mubr.msk.bf16.mxu0 %vm780_vm2, %v3511_v55  ;;  %14014 = vst [vmem:[#allocation5_spill] sm:$0xff] %v12393_v24  ;;  %v3903_v55 = vrot.slane %v12032_v14, 1  ;;  %v3907_v14 = vrot.slane %v12047_v15, 1 }
 0x2df   : > { %v3938_v29 = vsel %vm1355_vm3, %v3935_v20, %v3937_v39 }
 0x2e0   : > { %v12420_v36 = vsel %vm1355_vm3, %v3901_v56, %v3903_v55  ;;  %v12423_v4 = vsel %vm1355_vm3, %v3903_v55, %v3905_v61 }
 0x2e1   : > { %14018 = vst [vmem:[#allocation9_spill] sm:$0xff] %v12420_v36  ;;  %14019 = vst [vmem:[#allocation10_spill] sm:$0xff] %v12423_v4 }
 0x2e5   : > { %9748 = vmatmul.mubr.msk.bf16.gmra.mrb[36].mxu0 %vm780_vm2, %v3518_v25  ;;  %v12436_v25 = vsel %vm1355_vm3, %v3907_v14, %v3909_v12 }
 0x2e6   : > { %9751 = vmatprep.mubr.msk.bf16.mxu0 %vm780_vm2, %v3525_v50  ;;  %14021 = vst [vmem:[#allocation12_spill] sm:$0xff] %v12436_v25  ;;  %v3915_v50 = vrot.slane %v12071_v46, 1  ;;  %v12469_v46 = vsel %vm1355_vm3, %v3917_v30, %v3919_v5 }
 0x2e7   : > { %14026 = vst [vmem:[#allocation17_spill] sm:$0xff] %v12469_v46 }
 0x2e8   : > { %v12460_v37 = vsel %vm1355_vm3, %v3915_v50, %v3917_v30 }
 0x2e9   : > { %14025 = vst [vmem:[#allocation16_spill] sm:$0xff] %v12460_v37 }
 0x2ed   : > { %9752 = vmatmul.mubr.msk.bf16.gmra.mrb[40].mxu0 %vm780_vm2, %v3532_v33  ;;  %v12492_v33 = vrot.slane %v12121_v58, 1 }
 0x2ee   : > { %9755 = vmatprep.mubr.msk.bf16.mxu0 %vm780_vm2, %v3539_v38  ;;  %v3931_v38 = vrot.slane %v12125_v7, 1  ;;  %v4728_v7 = vld [vmem:[%s13867_s4 + $0x4] sm:$0xf] }
 0x2ef   : > { %14030 = vst [vmem:[#allocation21_spill] sm:$0xff] %v12492_v33  ;;  %v12499_v48 = vsel %vm1355_vm3, %v3927_v17, %v12492_v33  ;;  %10913 = vmatprep.subr.msk.bf16.mxu1 %vm4954_vm7, %v4728_v7  ;;  %v4956_v60 = vsel %vm4954_vm7, %v4728_v7, 0 }
 0x2f0   : > { %14032 = vst [vmem:[#allocation23_spill] sm:$0xff] %v12499_v48  ;;  %v3932_v58 = vsel %vm1355_vm3, %v12492_v33, %v3931_v38  ;;  %v3934_v45 = vsel %vm1355_vm3, %v3931_v38, %v3933_v49  ;;  %9810 = vmatpush3.bf16.msra.mxu1 %v4956_v60 }
 0x2f5   : > { %9756 = vmatmul.mubr.msk.bf16.gmra.mrb[68].mxu0 %vm780_vm2, %v3542_v63  ;;  %v3936_v63 = vsel %vm1355_vm3, %v3933_v49, %v3935_v20  ;;  %v12555_v49 = vld [vmem:[%s13866_s3] ss:$0 sm:$0xff] }
 0x2f6   : > { %9761 = vmatprep.mubr.msk.bf16.mxu0 %vm780_vm2, %v12385_v44 }
 0x2fd   : > { %9762 = vmatmul.mubr.msk.bf16.vlgmr.msra.gmra.mrb[0].mxu0 %vm780_vm2, %v12393_v24 }
 0x2fe   : > { %9765 = vmatprep.mubr.msk.bf16.mxu0 %vm780_vm2, %v12396_v13 }
 0x305   : > { %9766 = vmatmul.mubr.msk.bf16.gmra.mrb[4].mxu0 %vm780_vm2, %v12405_v26 }
 0x306   : > { %9769 = vmatprep.mubr.msk.bf16.mxu0 %vm780_vm2, %v12408_v0 }
 0x308   : > { %v9657_v43 = vpop.f32.mrb[60].mxu0 }
 0x309   : > { %v2943_v32 = vpop.f32.mrb[61].mxu0  ;;  %v4441_v43 = vpop.permute.xlu1 %4440 }
 0x30a   : > { %v12417_v52 = vadd.f32 %v2943_v32, %v12237_v8  ;;  %v9658_v51 = vpop.f32.mrb[62].mxu0  ;;  %v12433_v8 = vsel %vm1355_vm3, %v3905_v61, %v3907_v14  ;;  %v12528_v61 = vld [vmem:[%s13867_s4] sm:$0xf]  ;;  %v4431_v32 = vpop.permute.xlu0 %4430 }
 0x30b   : > { %v2946_v47 = vpop.f32.mrb[63].mxu0  ;;  %14020 = vst [vmem:[#allocation11_spill] sm:$0xff] %v12433_v8  ;;  %10914 = vmatprep.subr.msk.bf16.mxu1 %vm4954_vm7, %v12528_v61 }
 0x30c   : > { %v3001_v41 = vadd.f32 %v2946_v47, %v12245_v35  ;;  %v3911_v35 = vrot.slane %v12059_v18, 1  ;;  %v12457_v18 = vsel %vm1355_vm3, %v3913_v9, %v3915_v50 }
 0x30d   : > { %9770 = vmatmul.mubr.msk.bf16.gmra.mrb[8].mxu0 %vm780_vm2, %v12420_v36  ;;  %14024 = vst [vmem:[#allocation15_spill] sm:$0xff] %v12457_v18  ;;  %v4446_v51 = vpop.permute.xlu1 %4445 }
 0x30e   : > { %9773 = vmatprep.mubr.msk.bf16.mxu0 %vm780_vm2, %v12423_v4  ;;  %v12445_v15 = vsel %vm1355_vm3, %v3909_v12, %v3911_v35  ;;  %v12448_v42 = vsel %vm1355_vm3, %v3911_v35, %v3913_v9  ;;  %v4436_v47 = vpop.permute.xlu0 %4435 }
 0x30f   : > { %14022 = vst [vmem:[#allocation13_spill] sm:$0xff] %v12445_v15  ;;  %14023 = vst [vmem:[#allocation14_spill] sm:$0xff] %v12448_v42 }
 0x311   : > { %v12532_v14 = vpop.permute.xlu1 %4455 }
 0x312   : > { %v12534_v12 = vpop.permute.xlu0 %4450 }
 0x315   : > { %9774 = vmatmul.mubr.msk.bf16.gmra.mrb[12].mxu0 %vm780_vm2, %v12433_v8 }
 0x316   : > { %9777 = vmatprep.mubr.msk.bf16.mxu0 %vm780_vm2, %v12436_v25  ;;  %v12538_v35 = vpop.permute.xlu0 %4460 }
 0x31a   : > { %v12542_v9 = vpop.permute.xlu0 %4470 }
 0x31d   : > { %9778 = vmatmul.mubr.msk.bf16.gmra.mrb[16].mxu0 %vm780_vm2, %v12445_v15 }
 0x31e   : > { %9781 = vmatprep.mubr.msk.bf16.mxu0 %vm780_vm2, %v12448_v42  ;;  %v12546_v11 = vpop.permute.xlu0 %4480 }
 0x325   : > { %9782 = vmatmul.mubr.msk.bf16.gmra.mrb[20].mxu0 %vm780_vm2, %v12457_v18 }
 0x326   : > { %9785 = vmatprep.mubr.msk.bf16.mxu0 %vm780_vm2, %v12460_v37 }
 0x32d   : > { %9786 = vmatmul.mubr.msk.bf16.gmra.mrb[24].mxu0 %vm780_vm2, %v12469_v46 }
 0x32e   : > { %9789 = vmatprep.mubr.msk.bf16.mxu0 %vm780_vm2, %v12472_v34 }
 0x335   : > { %9790 = vmatmul.mubr.msk.bf16.gmra.mrb[28].mxu0 %vm780_vm2, %v12481_v19 }
 0x336   : > { %9793 = vmatprep.mubr.msk.bf16.mxu0 %vm780_vm2, %v12484_v31 }
 0x33d   : > { %9794 = vmatmul.mubr.msk.bf16.gmra.mrb[32].mxu0 %vm780_vm2, %v12495_v28 }
 0x33e   : > { %9797 = vmatprep.mubr.msk.bf16.mxu0 %vm780_vm2, %v12499_v48 }
 0x345   : > { %9798 = vmatmul.mubr.msk.bf16.gmra.mrb[36].mxu0 %vm780_vm2, %v3932_v58 }
 0x346   : > { %9801 = vmatprep.mubr.msk.bf16.mxu0 %vm780_vm2, %v3934_v45  ;;  %v12559_v45 = vpop.permute.xlu0 %4490 }
 0x34d   : > { %9802 = vmatmul.mubr.msk.bf16.gmra.mrb[40].mxu0 %vm780_vm2, %v3936_v63 }
 0x34e   : > { %9805 = vmatprep.mubr.msk.bf16.mxu0 %vm780_vm2, %v3938_v29 }
 0x355   : > { %9806 = vmatmul.mubr.msk.bf16.gmra.mrb[72].mxu0 %vm780_vm2, %v3937_v39 }
 0x368   : > { %v9707_v22 = vpop.f32.mrb[64].mxu0 }
 0x369   : > { %v3316_v10 = vpop.f32.mrb[65].mxu0 }
 0x36a   : > { %v3373_v16 = vadd.f32 %v3316_v10, %v12417_v52  ;;  %v9708_v54 = vpop.f32.mrb[66].mxu0  ;;  %v12536_v52 = vpop.permute.xlu1 %4465 }
 0x36b   : > { %v3319_v56 = vpop.f32.mrb[67].mxu0 }
 0x36c   : > { %v3374_v55 = vadd.f32 %v3319_v56, %v3001_v41 }
 0x36e   : > { %v12540_v41 = vpop.permute.xlu1 %4475 }
 0x372   : > { %v12544_v30 = vpop.permute.xlu1 %4485 }
 0x376   : > { %v12557_v58 = vpop.permute.xlu1 %4495 }
 0x37a   : > { %v12565_v56 = vpop.permute.xlu1 %4505 }
 0x37e   : > { %v12571_v37 = vpop.permute.xlu1 %4515 }
 0x3c8   : > { %v9757_v50 = vpop.f32.mrb[68].mxu0 }
 0x3c9   : > { %v3832_v5 = vpop.f32.mrb[69].mxu0 }
 0x3ca   : > { %v12548_v57 = vadd.f32 %v3832_v5, %v3373_v16  ;;  %v9758_v62 = vpop.f32.mrb[70].mxu0  ;;  %v12567_v5 = vpop.permute.xlu0 %4500 }
 0x3cb   : > { %v3835_v17 = vpop.f32.mrb[71].mxu0 }
 0x3cc   : > { %v12550_v38 = vadd.f32 %v3835_v17, %v3374_v55 }
 0x3d0   : > { %v9763_v20 = vpop.f32.mrb[0].mxu0 }
 0x3d1   : > { %v4292_v39 = vadd.f32 %v9763_v20, %v12555_v49  ;;  %v4048_v63 = vpop.f32.mrb[1].mxu0 }
 0x3d2   : > { %v4290_v29 = vadd.f32 %v12555_v49, %v4048_v63  ;;  %v9764_v7 = vpop.f32.mrb[2].mxu0 }
 0x3d3   : > { %v4338_v60 = vmul.f32 0.2, %v4292_v39  ;;  %v4293_v22 = vadd.f32 %v9764_v7, %v12555_v49  ;;  %v4051_v10 = vpop.f32.mrb[3].mxu0 }
 0x3d4   : > { %v4336_v16 = vmul.f32 0.2, %v4290_v29  ;;  %v4291_v54 = vadd.f32 %v12555_v49, %v4051_v10 }
 0x3d5   : > { %v4384_v55 = vmax.f32 %v4292_v39, %v4338_v60  ;;  %v4339_v50 = vmul.f32 0.2, %v4293_v22 }
 0x3d6   : > { %v4382_v62 = vmax.f32 %v4290_v29, %v4336_v16  ;;  %v4337_v17 = vmul.f32 0.2, %v4291_v54  ;;  %v12576_v16 = vpop.permute.xlu0 %4510 }
 0x3d7   : > { %v4385_v20 = vmax.f32 %v4293_v22, %v4339_v50  ;;  %v4660_v63 = vmul.f32 %v4441_v43, %v4384_v55 }
 0x3d8   : > { %v4383_v33 = vmax.f32 %v4291_v54, %v4337_v17  ;;  %v9767_v48 = vpop.f32.mrb[4].mxu0  ;;  %v4658_v19 = vmul.f32 %v4431_v32, %v4382_v62 }
 0x3d9   : > { %v4661_v28 = vmul.f32 %v4446_v51, %v4385_v20  ;;  %v4296_v31 = vadd.f32 %v9767_v48, %v12555_v49  ;;  %v4064_v7 = vpop.f32.mrb[5].mxu0 }
 0x3da   : > { %v4659_v34 = vmul.f32 %v4436_v47, %v4383_v33  ;;  %v4294_v10 = vadd.f32 %v12555_v49, %v4064_v7  ;;  %v9768_v46 = vpop.f32.mrb[6].mxu0 }
 0x3db   : > { %v12573_v39 = vpack.c.bf16 %v4661_v28, %v4660_v63  ;;  %v4342_v60 = vmul.f32 0.2, %v4296_v31  ;;  %v4297_v29 = vadd.f32 %v9768_v46, %v12555_v49  ;;  %v4067_v22 = vpop.f32.mrb[7].mxu0 }
 0x3dc   : > { %v12578_v43 = vpack.c.bf16 %v4659_v34, %v4658_v19  ;;  %v4340_v51 = vmul.f32 0.2, %v4294_v10  ;;  %v4295_v48 = vadd.f32 %v12555_v49, %v4067_v22  ;;  %v12584_v34 = vpop.permute.xlu1 %4525 }
 0x3dd   : > { %v4388_v32 = vmax.f32 %v4296_v31, %v4342_v60  ;;  %v4343_v33 = vmul.f32 0.2, %v4297_v29  ;;  %v13917_v47 = vshll.u32 %v12573_v39, 16  ;;  %v12591_v60 = vpop.permute.xlu0 %4520 }
 0x3de   : > { %v4386_v54 = vmax.f32 %v4294_v10, %v4340_v51  ;;  %v4341_v55 = vmul.f32 0.2, %v4295_v48  ;;  %v4732_v28 = vshll.u32 %v12578_v43, 16  ;;  %v4730_v46 = vshrl.u32 %v12578_v43, 16 }
 0x3df   : > { %v4389_v50 = vmax.f32 %v4297_v29, %v4343_v33  ;;  %v4664_v19 = vmul.f32 %v12538_v35, %v4388_v32  ;;  %v4739_v10 = vrot.slane %v13917_v47, 1 }
 0x3e0   : > { %v4387_v62 = vmax.f32 %v4295_v48, %v4341_v55  ;;  %v9771_v17 = vpop.f32.mrb[8].mxu0  ;;  %v4734_v20 = vrot.slane %v4732_v28, 1  ;;  %v4662_v29 = vmul.f32 %v12534_v12, %v4386_v54 }
 0x3e1   : > { %v4665_v31 = vmul.f32 %v12536_v52, %v4389_v50  ;;  %v4300_v63 = vadd.f32 %v9771_v17, %v12555_v49  ;;  %v4080_v7 = vpop.f32.mrb[9].mxu0 }
 0x3e2   : > { %v4663_v22 = vmul.f32 %v12532_v14, %v4387_v62  ;;  %v4298_v51 = vadd.f32 %v12555_v49, %v4080_v7  ;;  %v9772_v48 = vpop.f32.mrb[10].mxu0  ;;  %v4735_v33 = vor.u32 %v4734_v20, %v4730_v46  ;;  %v13918_v14 = vshrl.u32 %v12573_v39, 16 }
 0x3e3   : > { %v12596_v55 = vpack.c.bf16 %v4665_v31, %v4664_v19  ;;  %v4346_v35 = vmul.f32 0.2, %v4300_v63  ;;  %v4301_v52 = vadd.f32 %v9772_v48, %v12555_v49  ;;  %v4083_v32 = vpop.f32.mrb[11].mxu0  ;;  %v12611_v31 = vpop.permute.xlu1 %4535 }
 0x3e4   : > { %v12599_v28 = vpack.c.bf16 %v4663_v22, %v4662_v29  ;;  %v4344_v50 = vmul.f32 0.2, %v4298_v51  ;;  %v4299_v17 = vadd.f32 %v12555_v49, %v4083_v32  ;;  %v4740_v47 = vsel %vm584_vm1, %v4735_v33, %v4739_v10  ;;  %v12617_v22 = vpop.permute.xlu0 %4530 }
 0x3e5   : > { %v4392_v12 = vmax.f32 %v4300_v63, %v4346_v35  ;;  %v4347_v54 = vmul.f32 0.2, %v4301_v52  ;;  %9811 = vmatprep.mubr.msk.bf16.mxu1 %vm4893_vm8, %v4740_v47  ;;  %v12606_v62 = vshll.u32 %v12596_v55, 16  ;;  %v4743_v29 = vor.u32 %v13918_v14, %v4739_v10 }
 0x3e6   : > { %v4390_v46 = vmax.f32 %v4298_v51, %v4344_v50  ;;  %v4345_v20 = vmul.f32 0.2, %v4299_v17  ;;  %v12609_v19 = vshll.u32 %v12599_v28, 16  ;;  %v5192_v63 = vsel %vm4954_vm7, %v12528_v61, 0 }
 0x3e7   : > { %v4393_v7 = vmax.f32 %v4301_v52, %v4347_v54  ;;  %v4668_v47 = vmul.f32 %v12546_v11, %v4392_v12  ;;  %v12622_v35 = vshrl.u32 %v12599_v28, 16  ;;  %v4755_v61 = vrot.slane %v12606_v62, 1 }
 0x3e8   : > { %v4391_v48 = vmax.f32 %v4299_v17, %v4345_v20  ;;  %v9775_v33 = vpop.f32.mrb[12].mxu0  ;;  %v4747_v51 = vrot.slane %v12609_v19, 1  ;;  %v4666_v32 = vmul.f32 %v12542_v9, %v4390_v46  ;;  %v12635_v9 = vld [vmem:[%s13867_s4 + $0x8] sm:$0xf] }
 0x3e9   : > { %v4669_v52 = vmul.f32 %v12544_v30, %v4393_v7  ;;  %v4304_v10 = vadd.f32 %v9775_v33, %v12555_v49  ;;  %v4096_v50 = vpop.f32.mrb[13].mxu0 }
 0x3ea   : > { %v4667_v54 = vmul.f32 %v12540_v41, %v4391_v48  ;;  %v4302_v11 = vadd.f32 %v12555_v49, %v4096_v50  ;;  %v9776_v17 = vpop.f32.mrb[14].mxu0  ;;  %v4748_v12 = vsel %vm584_vm1, %v4743_v29, %v4747_v51  ;;  %v4751_v20 = vor.u32 %v12622_v35, %v4747_v51  ;;  %v12645_v50 = vpop.permute.xlu1 %4545 }
 0x3eb   : > { %v12637_v30 = vpack.c.bf16 %v4669_v52, %v4668_v47  ;;  %v4350_v46 = vmul.f32 0.2, %v4304_v10  ;;  %v4305_v7 = vadd.f32 %v9776_v17, %v12555_v49  ;;  %v4099_v33 = vpop.f32.mrb[15].mxu0  ;;  %9812 = vmatmul.mubr.msk.bf16.vlgmr.msra.gmra.mrb[16].mxu1 %vm4893_vm8, %v4748_v12  ;;  %v12649_v47 = vshrl.u32 %v12596_v55, 16 }
 0x3ec   : > { %v12641_v41 = vpack.c.bf16 %v4667_v54, %v4666_v32  ;;  %v4348_v48 = vmul.f32 0.2, %v4302_v11  ;;  %v4303_v29 = vadd.f32 %v12555_v49, %v4099_v33  ;;  %v4756_v51 = vsel %vm584_vm1, %v4751_v20, %v4755_v61  ;;  %9852 = vmatpush3.bf16.msra.mxu1 %v5192_v63  ;;  %v12656_v32 = vpop.permute.xlu0 %4540 }
 0x3ed   : > { %v4396_v14 = vmax.f32 %v4304_v10, %v4350_v46  ;;  %v4351_v18 = vmul.f32 0.2, %v4305_v7  ;;  %9815 = vmatprep.mubr.msk.bf16.mxu1 %vm4893_vm8, %v4756_v51  ;;  %v12652_v52 = vshll.u32 %v12637_v30, 16  ;;  %10915 = vmatprep.subr.msk.bf16.mxu1 %vm4954_vm7, %v12635_v9  ;;  %v4759_v12 = vor.u32 %v12649_v47, %v4755_v61 }
 0x3ee   : > { %v4394_v54 = vmax.f32 %v4302_v11, %v4348_v48  ;;  %v4349_v17 = vmul.f32 0.2, %v4303_v29  ;;  %v12659_v63 = vshll.u32 %v12641_v41, 16  ;;  %v12665_v42 = vshrl.u32 %v12641_v41, 16 }
 0x3ef   : > { %14033 = vst [vmem:[#allocation24_spill] sm:$0xff] %v12652_v52  ;;  %v4397_v10 = vmax.f32 %v4305_v7, %v4351_v18  ;;  %v4672_v20 = vmul.f32 %v12567_v5, %v4396_v14  ;;  %v4771_v18 = vrot.slane %v12652_v52, 1 }
 0x3f0   : > { %v4395_v46 = vmax.f32 %v4303_v29, %v4349_v17  ;;  %v9779_v33 = vpop.f32.mrb[16].mxu0  ;;  %v4763_v51 = vrot.slane %v12659_v63, 1  ;;  %v4670_v15 = vmul.f32 %v12559_v45, %v4394_v54  ;;  %v12675_v17 = vpop.permute.xlu1 %4555 }
 0x3f1   : > { %v4673_v11 = vmul.f32 %v12565_v56, %v4397_v10  ;;  %v4308_v48 = vadd.f32 %v9779_v33, %v12555_v49  ;;  %v4112_v25 = vpop.f32.mrb[17].mxu0  ;;  %v12681_v10 = vpop.permute.xlu0 %4550 }
 0x3f2   : > { %v4671_v61 = vmul.f32 %v12557_v58, %v4395_v46  ;;  %v4306_v5 = vadd.f32 %v12555_v49, %v4112_v25  ;;  %v9780_v14 = vpop.f32.mrb[18].mxu0  ;;  %v4764_v7 = vsel %vm584_vm1, %v4759_v12, %v4763_v51  ;;  %v4767_v29 = vor.u32 %v12665_v42, %v4763_v51 }
 0x3f3   : > { %v12677_v8 = vpack.c.bf16 %v4673_v11, %v4672_v20  ;;  %v4354_v45 = vmul.f32 0.2, %v4308_v48  ;;  %v4309_v56 = vadd.f32 %v9780_v14, %v12555_v49  ;;  %v4115_v54 = vpop.f32.mrb[19].mxu0  ;;  %9816 = vmatmul.mubr.msk.bf16.gmra.mrb[20].mxu1 %vm4893_vm8, %v4764_v7  ;;  %v12689_v20 = vshrl.u32 %v12637_v30, 16 }
 0x3f4   : > { %v12683_v58 = vpack.c.bf16 %v4671_v61, %v4670_v15  ;;  %v4352_v25 = vmul.f32 0.2, %v4306_v5  ;;  %v4307_v46 = vadd.f32 %v12555_v49, %v4115_v54  ;;  %v4772_v12 = vsel %vm584_vm1, %v4767_v29, %v4771_v18  ;;  %v12703_v36 = vpop.permute.xlu1 %4565 }
 0x3f5   : > { %v4400_v33 = vmax.f32 %v4308_v48, %v4354_v45  ;;  %v4355_v51 = vmul.f32 0.2, %v4309_v56  ;;  %9819 = vmatprep.mubr.msk.bf16.mxu1 %vm4893_vm8, %v4772_v12  ;;  %v12692_v11 = vshll.u32 %v12677_v8, 16  ;;  %v4775_v54 = vor.u32 %v12689_v20, %v4771_v18 }
 0x3f6   : > { %v4398_v14 = vmax.f32 %v4306_v5, %v4352_v25  ;;  %v4353_v7 = vmul.f32 0.2, %v4307_v46  ;;  %v12695_v15 = vshll.u32 %v12683_v58, 16  ;;  %v12701_v4 = vshrl.u32 %v12683_v58, 16 }
 0x3f7   : > { %14034 = vst [vmem:[#allocation25_spill] sm:$0xff] %v12692_v11  ;;  %v4401_v61 = vmax.f32 %v4309_v56, %v4355_v51  ;;  %v4676_v29 = vmul.f32 %v12591_v60, %v4400_v33  ;;  %v4787_v18 = vrot.slane %v12692_v11, 1  ;;  %v12709_v51 = vpop.permute.xlu0 %4560 }
 0x3f8   : > { %14035 = vst [vmem:[#allocation26_spill] sm:$0xff] %v12695_v15  ;;  %v4399_v48 = vmax.f32 %v4307_v46, %v4353_v7  ;;  %v9783_v45 = vpop.f32.mrb[20].mxu0  ;;  %v4779_v12 = vrot.slane %v12695_v15, 1  ;;  %14036 = vst [vmem:[#allocation27_spill] sm:$0xff] %v12701_v4  ;;  %v4674_v5 = vmul.f32 %v12576_v16, %v4398_v14 }
 0x3f9   : > { %v4677_v25 = vmul.f32 %v12584_v34, %v4401_v61  ;;  %v4312_v0 = vadd.f32 %v9783_v45, %v12555_v49  ;;  %v4128_v56 = vpop.f32.mrb[21].mxu0 }
 0x3fa   : > { %v4675_v60 = vmul.f32 %v12571_v37, %v4399_v48  ;;  %v4310_v46 = vadd.f32 %v12555_v49, %v4128_v56  ;;  %v9784_v33 = vpop.f32.mrb[22].mxu0  ;;  %v4780_v7 = vsel %vm584_vm1, %v4775_v54, %v4779_v12  ;;  %v4783_v26 = vor.u32 %v12701_v4, %v4779_v12 }
 0x3fb   : > { %v12715_v13 = vpack.c.bf16 %v4677_v25, %v4676_v29  ;;  %v4358_v16 = vmul.f32 0.2, %v4312_v0  ;;  %v4313_v34 = vadd.f32 %v9784_v33, %v12555_v49  ;;  %v4131_v14 = vpop.f32.mrb[23].mxu0  ;;  %9820 = vmatmul.mubr.msk.bf16.gmra.mrb[24].mxu1 %vm4893_vm8, %v4780_v7  ;;  %v12725_v54 = vshrl.u32 %v12677_v8, 16 }
 0x3fc   : > { %v12719_v61 = vpack.c.bf16 %v4675_v60, %v4674_v5  ;;  %v4356_v45 = vmul.f32 0.2, %v4310_v46  ;;  %v4311_v37 = vadd.f32 %v12555_v49, %v4131_v14  ;;  %v4788_v48 = vsel %vm584_vm1, %v4783_v26, %v4787_v18  ;;  %v12733_v60 = vpop.permute.xlu1 %4575 }
 0x3fd   : > { %v4404_v56 = vmax.f32 %v4312_v0, %v4358_v16  ;;  %v4359_v24 = vmul.f32 0.2, %v4313_v34  ;;  %9823 = vmatprep.mubr.msk.bf16.mxu1 %vm4893_vm8, %v4788_v48  ;;  %14037 = vst [vmem:[#allocation28_spill] sm:$0xff] %v12725_v54  ;;  %v12728_v29 = vshll.u32 %v12715_v13, 16  ;;  %v4791_v26 = vor.u32 %v12725_v54, %v4787_v18  ;;  %v12736_v0 = vpop.permute.xlu0 %4570 }
 0x3fe   : > { %v4402_v12 = vmax.f32 %v4310_v46, %v4356_v45  ;;  %v4357_v25 = vmul.f32 0.2, %v4311_v37  ;;  %v12731_v5 = vshll.u32 %v12719_v61, 16  ;;  %v12741_v44 = vshrl.u32 %v12719_v61, 16 }
 0x3ff   : > { %14038 = vst [vmem:[#allocation29_spill] sm:$0xff] %v12728_v29  ;;  %v4405_v33 = vmax.f32 %v4313_v34, %v4359_v24  ;;  %v4680_v7 = vmul.f32 %v12656_v32, %v4404_v56  ;;  %v4803_v18 = vrot.slane %v12728_v29, 1 }
 0x400   : > { %14039 = vst [vmem:[#allocation30_spill] sm:$0xff] %v12731_v5  ;;  %v4403_v16 = vmax.f32 %v4311_v37, %v4357_v25  ;;  %v9787_v14 = vpop.f32.mrb[24].mxu0  ;;  %v4795_v48 = vrot.slane %v12731_v5, 1  ;;  %14040 = vst [vmem:[#allocation31_spill] sm:$0xff] %v12741_v44  ;;  %v4678_v46 = vmul.f32 %v12617_v22, %v4402_v12 }
 0x401   : > { %v4681_v45 = vmul.f32 %v12645_v50, %v4405_v33  ;;  %v4316_v11 = vadd.f32 %v9787_v14, %v12555_v49  ;;  %v4144_v24 = vpop.f32.mrb[25].mxu0  ;;  %v4586_v14 = vpop.permute.xlu1 %4585 }
 0x402   : > { %v4679_v34 = vmul.f32 %v12611_v31, %v4403_v16  ;;  %v4314_v32 = vadd.f32 %v12555_v49, %v4144_v24  ;;  %v9788_v37 = vpop.f32.mrb[26].mxu0  ;;  %v4796_v56 = vsel %vm584_vm1, %v4791_v26, %v4795_v48  ;;  %v4799_v25 = vor.u32 %v12741_v44, %v4795_v48 }
 0x403   : > { %v12751_v5 = vpack.c.bf16 %v4681_v45, %v4680_v7  ;;  %v4362_v54 = vmul.f32 0.2, %v4316_v11  ;;  %v4317_v22 = vadd.f32 %v9788_v37, %v12555_v49  ;;  %v4147_v50 = vpop.f32.mrb[27].mxu0  ;;  %9824 = vmatmul.mubr.msk.bf16.gmra.mrb[28].mxu1 %vm4893_vm8, %v4796_v56  ;;  %v12761_v7 = vshrl.u32 %v12715_v13, 16  ;;  %v4581_v45 = vpop.permute.xlu0 %4580 }
 0x404   : > { %v12755_v12 = vpack.c.bf16 %v4679_v34, %v4678_v46  ;;  %v4360_v33 = vmul.f32 0.2, %v4314_v32  ;;  %v4315_v31 = vadd.f32 %v12555_v49, %v4147_v50  ;;  %v4804_v16 = vsel %vm584_vm1, %v4799_v25, %v4803_v18 }
 0x405   : > { %v4408_v24 = vmax.f32 %v4316_v11, %v4362_v54  ;;  %v4363_v26 = vmul.f32 0.2, %v4317_v22  ;;  %9827 = vmatprep.mubr.msk.bf16.mxu1 %vm4893_vm8, %v4804_v16  ;;  %14041 = vst [vmem:[#allocation32_spill] sm:$0xff] %v12761_v7  ;;  %v12764_v48 = vshll.u32 %v12751_v5, 16  ;;  %v4807_v25 = vor.u32 %v12761_v7, %v4803_v18 }
 0x406   : > { %v4406_v37 = vmax.f32 %v4314_v32, %v4360_v33  ;;  %v4361_v46 = vmul.f32 0.2, %v4315_v31  ;;  %v12767_v34 = vshll.u32 %v12755_v12, 16  ;;  %v12773_v29 = vshrl.u32 %v12755_v12, 16 }
 0x407   : > { %14042 = vst [vmem:[#allocation33_spill] sm:$0xff] %v12764_v48  ;;  %v4409_v56 = vmax.f32 %v4317_v22, %v4363_v26  ;;  %v4684_v11 = vmul.f32 %v12709_v51, %v4408_v24  ;;  %v4819_v22 = vrot.slane %v12764_v48, 1 }
 0x408   : > { %14043 = vst [vmem:[#allocation34_spill] sm:$0xff] %v12767_v34  ;;  %v4407_v54 = vmax.f32 %v4315_v31, %v4361_v46  ;;  %v9791_v50 = vpop.f32.mrb[28].mxu0  ;;  %v4811_v16 = vrot.slane %v12767_v34, 1  ;;  %14044 = vst [vmem:[#allocation35_spill] sm:$0xff] %v12773_v29  ;;  %v4682_v44 = vmul.f32 %v12681_v10, %v4406_v37  ;;  %v12783_v46 = vpop.permute.xlu1 %4595 }
 0x409   : > { %v4685_v32 = vmul.f32 %v12703_v36, %v4409_v56  ;;  %v4320_v33 = vadd.f32 %v9791_v50, %v12555_v49  ;;  %v4160_v15 = vpop.f32.mrb[29].mxu0  ;;  %v12789_v56 = vpop.permute.xlu0 %4590 }
 0x40a   : > { %v4683_v18 = vmul.f32 %v12675_v17, %v4407_v54  ;;  %v4318_v51 = vadd.f32 %v12555_v49, %v4160_v15  ;;  %v9792_v31 = vpop.f32.mrb[30].mxu0  ;;  %v4812_v24 = vsel %vm584_vm1, %v4807_v25, %v4811_v16  ;;  %v4815_v26 = vor.u32 %v12773_v29, %v4811_v16 }
 0x40b   : > { %v12785_v34 = vpack.c.bf16 %v4685_v32, %v4684_v11  ;;  %v4366_v10 = vmul.f32 0.2, %v4320_v33  ;;  %v4321_v36 = vadd.f32 %v9792_v31, %v12555_v49  ;;  %v4163_v37 = vpop.f32.mrb[31].mxu0  ;;  %9828 = vmatmul.mubr.msk.bf16.gmra.mrb[32].mxu1 %vm4893_vm8, %v4812_v24  ;;  %v12797_v11 = vshrl.u32 %v12751_v5, 16 }
 0x40c   : > { %v12791_v17 = vpack.c.bf16 %v4683_v18, %v4682_v44  ;;  %v4364_v15 = vmul.f32 0.2, %v4318_v51  ;;  %v4319_v54 = vadd.f32 %v12555_v49, %v4163_v37  ;;  %v4820_v25 = vsel %vm584_vm1, %v4815_v26, %v4819_v22  ;;  %v4606_v29 = vpop.permute.xlu1 %4605 }
 0x40d   : > { %v4412_v50 = vmax.f32 %v4320_v33, %v4366_v10  ;;  %v4367_v16 = vmul.f32 0.2, %v4321_v36  ;;  %9831 = vmatprep.mubr.msk.bf16.mxu1 %vm4893_vm8, %v4820_v25  ;;  %v12800_v32 = vshll.u32 %v12785_v34, 16  ;;  %v4823_v37 = vor.u32 %v12797_v11, %v4819_v22 }
 0x40e   : > { %v4410_v31 = vmax.f32 %v4318_v51, %v4364_v15  ;;  %v4365_v24 = vmul.f32 0.2, %v4319_v54  ;;  %v12803_v44 = vshll.u32 %v12791_v17, 16  ;;  %v12808_v25 = vshrl.u32 %v12791_v17, 16 }
 0x40f   : > { %14045 = vst [vmem:[#allocation36_spill] sm:$0xff] %v12800_v32  ;;  %v4413_v18 = vmax.f32 %v4321_v36, %v4367_v16  ;;  %v4688_v48 = vmul.f32 %v4581_v45, %v4412_v50  ;;  %v4835_v52 = vrot.slane %v12800_v32, 1  ;;  %v4601_v36 = vpop.permute.xlu0 %4600 }
 0x410   : > { %14046 = vst [vmem:[#allocation37_spill] sm:$0xff] %v12803_v44  ;;  %v4411_v26 = vmax.f32 %v4319_v54, %v4365_v24  ;;  %v9795_v33 = vpop.f32.mrb[32].mxu0  ;;  %v4827_v10 = vrot.slane %v12803_v44, 1  ;;  %14047 = vst [vmem:[#allocation38_spill] sm:$0xff] %v12808_v25  ;;  %v4686_v7 = vmul.f32 %v12736_v0, %v4410_v31 }
 0x411   : > { %v4689_v4 = vmul.f32 %v4586_v14, %v4413_v18  ;;  %v10231_v51 = vadd.f32 %v9795_v33, %v11593_v53  ;;  %v4176_v15 = vpop.f32.mrb[33].mxu0 }
 0x412   : > { %v4687_v22 = vmul.f32 %v12733_v60, %v4411_v26  ;;  %v10232_v45 = vadd.f32 %v4176_v15, %v11595_v3  ;;  %v9796_v54 = vpop.f32.mrb[34].mxu0  ;;  %v4828_v50 = vsel %vm584_vm1, %v4823_v37, %v4827_v10  ;;  %v4831_v16 = vor.u32 %v12808_v25, %v4827_v10 }
 0x413   : > { %v12817_v24 = vpack.c.bf16 %v4689_v4, %v4688_v48  ;;  %v4324_v0 = vadd.f32 %v10231_v51, %v12555_v49  ;;  %v10233_v14 = vadd.f32 %v9796_v54, %v11598_v21  ;;  %v4179_v53 = vpop.f32.mrb[35].mxu0  ;;  %9832 = vmatmul.mubr.msk.bf16.gmra.mrb[36].mxu1 %vm4893_vm8, %v4828_v50  ;;  %v4611_v15 = vpop.permute.xlu0 %4610 }
 0x414   : > { %v12822_v31 = vpack.c.bf16 %v4687_v22, %v4686_v7  ;;  %v4322_v60 = vadd.f32 %v10232_v45, %v12555_v49  ;;  %v10234_v3 = vadd.f32 %v4179_v53, %v11601_v1  ;;  %v4836_v18 = vsel %vm584_vm1, %v4831_v16, %v4835_v52  ;;  %v12839_v1 = vpop.permute.xlu1 %4615 }
 0x415   : > { %v4370_v37 = vmul.f32 0.2, %v4324_v0  ;;  %v4325_v26 = vadd.f32 %v10233_v14, %v12555_v49  ;;  %9835 = vmatprep.mubr.msk.bf16.mxu1 %vm4893_vm8, %v4836_v18  ;;  %v12830_v4 = vshll.u32 %v12817_v24, 16  ;;  %v12834_v7 = vshrl.u32 %v12785_v34, 16 }
 0x416   : > { %v4368_v21 = vmul.f32 0.2, %v4322_v60  ;;  %v4323_v48 = vadd.f32 %v10234_v3, %v12555_v49  ;;  %v12837_v33 = vshll.u32 %v12822_v31, 16  ;;  %v12845_v18 = vshrl.u32 %v12822_v31, 16 }
 0x417   : > { %v4416_v10 = vmax.f32 %v4324_v0, %v4370_v37  ;;  %v4371_v51 = vmul.f32 0.2, %v4325_v26  ;;  %v4839_v50 = vor.u32 %v12834_v7, %v4835_v52  ;;  %v4851_v32 = vrot.slane %v12830_v4, 1 }
 0x418   : > { %14048 = vst [vmem:[#allocation39_spill] sm:$0xff] %v12837_v33  ;;  %v4414_v22 = vmax.f32 %v4322_v60, %v4368_v21  ;;  %v4369_v45 = vmul.f32 0.2, %v4323_v48  ;;  %v9799_v54 = vpop.f32.mrb[36].mxu0  ;;  %v4843_v16 = vrot.slane %v12837_v33, 1  ;;  %14049 = vst [vmem:[#allocation40_spill] sm:$0xff] %v12845_v18 }
 0x419   : > { %v4417_v14 = vmax.f32 %v4325_v26, %v4371_v51  ;;  %v10235_v53 = vadd.f32 %v9799_v54, %v11607_v27  ;;  %v4192_v3 = vpop.f32.mrb[37].mxu0  ;;  %v4692_v44 = vmul.f32 %v4601_v36, %v4416_v10  ;;  %v4626_v10 = vpop.permute.xlu1 %4625 }
 0x41a   : > { %v4415_v0 = vmax.f32 %v4323_v48, %v4369_v45  ;;  %v10236_v37 = vadd.f32 %v4192_v3, %v11609_v59  ;;  %v9800_v60 = vpop.f32.mrb[38].mxu0  ;;  %v4844_v21 = vsel %vm584_vm1, %v4839_v50, %v4843_v16  ;;  %v4847_v27 = vor.u32 %v12845_v18, %v4843_v16 }
 0x41b   : > { %v4693_v25 = vmul.f32 %v4606_v29, %v4417_v14  ;;  %v4328_v52 = vadd.f32 %v10235_v53, %v12555_v49  ;;  %v10237_v26 = vadd.f32 %v9800_v60, %v11611_v2  ;;  %v4195_v51 = vpop.f32.mrb[39].mxu0  ;;  %9836 = vmatmul.mubr.msk.bf16.gmra.mrb[40].mxu1 %vm4893_vm8, %v4844_v21  ;;  %v4690_v54 = vmul.f32 %v12789_v56, %v4414_v22  ;;  %v4621_v14 = vpop.permute.xlu0 %4620 }
 0x41c   : > { %v4691_v36 = vmul.f32 %v12783_v46, %v4415_v0  ;;  %v4326_v48 = vadd.f32 %v10236_v37, %v12555_v49  ;;  %v10238_v59 = vadd.f32 %v4195_v51, %v11614_v6  ;;  %v4852_v2 = vsel %vm584_vm1, %v4847_v27, %v4851_v32 }
 0x41d   : > { %v12858_v45 = vpack.c.bf16 %v4693_v25, %v4692_v44  ;;  %v4374_v29 = vmul.f32 0.2, %v4328_v52  ;;  %v4329_v50 = vadd.f32 %v10237_v26, %v12555_v49  ;;  %9839 = vmatprep.mubr.msk.bf16.mxu1 %vm4893_vm8, %v4852_v2  ;;  %v12867_v46 = vshrl.u32 %v12817_v24, 16 }
 0x41e   : > { %v12862_v53 = vpack.c.bf16 %v4691_v36, %v4690_v54  ;;  %v4372_v16 = vmul.f32 0.2, %v4326_v48  ;;  %v4327_v56 = vadd.f32 %v10238_v59, %v12555_v49 }
 0x41f   : > { %v4420_v6 = vmax.f32 %v4328_v52, %v4374_v29  ;;  %v4375_v22 = vmul.f32 0.2, %v4329_v50  ;;  %v12870_v44 = vshll.u32 %v12858_v45, 16  ;;  %v4855_v37 = vor.u32 %v12867_v46, %v4851_v32  ;;  %v4636_v32 = vpop.permute.xlu1 %4635 }
 0x420   : > { %v4418_v25 = vmax.f32 %v4326_v48, %v4372_v16  ;;  %v4373_v3 = vmul.f32 0.2, %v4327_v56  ;;  %v9803_v0 = vpop.f32.mrb[40].mxu0  ;;  %v12874_v60 = vshll.u32 %v12862_v53, 16  ;;  %v12878_v54 = vshrl.u32 %v12862_v53, 16 }
 0x421   : > { %14050 = vst [vmem:[#allocation41_spill] sm:$0xff] %v12870_v44  ;;  %v4696_v21 = vmul.f32 %v4621_v14, %v4420_v6  ;;  %v4421_v26 = vmax.f32 %v4329_v50, %v4375_v22  ;;  %v10239_v51 = vadd.f32 %v9803_v0, %v11625_v23  ;;  %v4208_v27 = vpop.f32.mrb[41].mxu0  ;;  %v4867_v29 = vrot.slane %v12870_v44, 1  ;;  %v14053_v50 = vld [vmem:[#allocation2_spill] sm:$0xff]  ;;  %v4631_v22 = vpop.permute.xlu0 %4630 }
 0x422   : > { %14051 = vst [vmem:[#allocation42_spill] sm:$0xff] %v12874_v60  ;;  %14052 = vst [vmem:[#allocation43_spill] sm:$0xff] %v12878_v54  ;;  %v4419_v52 = vmax.f32 %v4327_v56, %v4373_v3  ;;  %v10240_v36 = vadd.f32 %v4208_v27, %v11627_v40  ;;  %v9804_v59 = vpop.f32.mrb[42].mxu0  ;;  %v4859_v48 = vrot.slane %v12874_v60, 1  ;;  %v4694_v2 = vmul.f32 %v4611_v15, %v4418_v25  ;;  %v14054_v3 = vld [vmem:[#allocation3_spill] sm:$0xff] }
 0x423   : > { %v4697_v16 = vmul.f32 %v4626_v10, %v4421_v26  ;;  %v4332_v14 = vadd.f32 %v10239_v51, %v12555_v49  ;;  %v10241_v6 = vadd.f32 %v9804_v59, %v14053_v50  ;;  %v4211_v23 = vpop.f32.mrb[43].mxu0 }
 0x424   : > { %v4695_v0 = vmul.f32 %v12839_v1, %v4419_v52  ;;  %v4330_v56 = vadd.f32 %v10240_v36, %v12555_v49  ;;  %v10242_v40 = vadd.f32 %v4211_v23, %v14054_v3  ;;  %v4860_v27 = vsel %vm584_vm1, %v4855_v37, %v4859_v48 }
 0x425   : > { %v12889_v60 = vpack.c.bf16 %v4697_v16, %v4696_v21  ;;  %v4378_v44 = vmul.f32 0.2, %v4332_v14  ;;  %v4333_v15 = vadd.f32 %v10241_v6, %v12555_v49  ;;  %9840 = vmatmul.mubr.msk.bf16.gmra.mrb[44].mxu1 %vm4893_vm8, %v4860_v27  ;;  %v4863_v10 = vor.u32 %v12878_v54, %v4859_v48  ;;  %v4646_v48 = vpop.permute.xlu1 %4645 }
 0x426   : > { %v12894_v25 = vpack.c.bf16 %v4695_v0, %v4694_v2  ;;  %v4376_v26 = vmul.f32 0.2, %v4330_v56  ;;  %v4331_v1 = vadd.f32 %v10242_v40, %v12555_v49  ;;  %v12900_v16 = vshrl.u32 %v12858_v45, 16 }
 0x427   : > { %v4424_v51 = vmax.f32 %v4332_v14, %v4378_v44  ;;  %v4379_v52 = vmul.f32 0.2, %v4333_v15  ;;  %v4868_v36 = vsel %vm584_vm1, %v4863_v10, %v4867_v29  ;;  %v12906_v23 = vshll.u32 %v12889_v60, 16  ;;  %v4641_v44 = vpop.permute.xlu0 %4640 }
 0x428   : > { %v4422_v59 = vmax.f32 %v4330_v56, %v4376_v26  ;;  %v4377_v37 = vmul.f32 0.2, %v4331_v1  ;;  %9843 = vmatprep.mubr.msk.bf16.mxu1 %vm4893_vm8, %v4868_v36  ;;  %v9807_v21 = vpop.f32.mrb[72].mxu0  ;;  %v12903_v50 = vshll.u32 %v12894_v25, 16  ;;  %v4871_v3 = vor.u32 %v12900_v16, %v4867_v29 }
 0x429   : > { %v4425_v2 = vmax.f32 %v4333_v15, %v4379_v52  ;;  %v4224_v6 = vpop.f32.mrb[73].mxu0  ;;  %v4700_v27 = vmul.f32 %v4641_v44, %v4424_v51  ;;  %v12912_v21 = vshrl.u32 %v12894_v25, 16 }
 0x42a   : > { %v4423_v14 = vmax.f32 %v4331_v1, %v4377_v37  ;;  %v4281_v0 = vadd.f32 %v4224_v6, %v12548_v57  ;;  %v9808_v56 = vpop.f32.mrb[74].mxu0  ;;  %v4875_v40 = vrot.slane %v12903_v50, 1  ;;  %v4698_v10 = vmul.f32 %v4631_v22, %v4422_v59 }
 0x42b   : > { %v4701_v26 = vmul.f32 %v4646_v48, %v4425_v2  ;;  %v4227_v36 = vpop.f32.mrb[75].mxu0  ;;  %v4883_v22 = vrot.slane %v12906_v23, 1  ;;  %v4656_v56 = vpop.permute.xlu1 %4655 }
 0x42c   : > { %v4699_v15 = vmul.f32 %v4636_v32, %v4423_v14  ;;  %v4334_v52 = vadd.f32 %v12555_v49, %v4281_v0  ;;  %v4282_v54 = vadd.f32 %v4227_v36, %v12550_v38  ;;  %v4876_v1 = vsel %vm584_vm1, %v4871_v3, %v4875_v40  ;;  %v4651_v3 = vpop.permute.xlu0 %4650 }
 0x42d   : > { %v12917_v57 = vpack.c.bf16 %v4701_v26, %v4700_v27  ;;  %9844 = vmatmul.mubr.msk.bf16.gmra.mrb[48].mxu1 %vm4893_vm8, %v4876_v1  ;;  %v4879_v29 = vor.u32 %v12912_v21, %v4875_v40  ;;  %v12928_v38 = vshrl.u32 %v12889_v60, 16  ;;  %v5746_v26 = vld [vmem:[%s13867_s4 + $0xc] sm:$0xf]  ;;  %v7220_v1 = vrot.slane %v12906_v23, 5 }
 0x42e   : > { %v12922_v51 = vpack.c.bf16 %v4699_v15, %v4698_v10  ;;  %v4380_v59 = vmul.f32 0.2, %v4334_v52  ;;  %v4335_v37 = vadd.f32 %v12555_v49, %v4282_v54  ;;  %v5511_v10 = vsel %vm4954_vm7, %v12635_v9, 0 }
 0x42f   : > { %v4884_v32 = vsel %vm584_vm1, %v4879_v29, %v4883_v22  ;;  %v4887_v14 = vor.u32 %v12928_v38, %v4883_v22  ;;  %v13969_v36 = vshrl.u32 %v12917_v57, 16  ;;  %v13968_v15 = vshll.u32 %v12917_v57, 16 }
 0x430   : > { %v4426_v48 = vmax.f32 %v4334_v52, %v4380_v59  ;;  %v4381_v2 = vmul.f32 0.2, %v4335_v37  ;;  %9847 = vmatprep.mubr.msk.bf16.mxu1 %vm4893_vm8, %v4884_v32  ;;  %v12931_v6 = vshll.u32 %v12922_v51, 16  ;;  %v13970_v9 = vshrl.u32 %v12922_v51, 16 }
 0x431   : > { %v7219_v52 = vrot.slane %v12928_v38, 4  ;;  %v7227_v59 = vrot.slane %v13969_v36, 4 }
 0x432   : > { %v4427_v44 = vmax.f32 %v4335_v37, %v4381_v2  ;;  %v4891_v0 = vrot.slane %v12931_v6, 1  ;;  %v4702_v49 = vmul.f32 %v4651_v3, %v4426_v48  ;;  %v7223_v29 = vrot.slane %v13970_v9, 4 }
 0x433   : > { %v7224_v22 = vrot.slane %v12931_v6, 5  ;;  %v7228_v37 = vrot.slane %v13968_v15, 5  ;;  %v12991_v32 = vor.u32 %v7220_v1, %v7219_v52  ;;  %v5410_v52 = vrot.slane %v12573_v39, 1 }
 0x434   : > { %v4703_v54 = vmul.f32 %v4656_v56, %v4427_v44  ;;  %v4892_v40 = vsel %vm584_vm1, %v4887_v14, %v4891_v0  ;;  %v6097_v15 = vrot.slane %v12665_v42, 2 }
 0x435   : > { %9848 = vmatmul.mubr.msk.bf16.gmra.mrb[52].mxu1 %vm4893_vm8, %v4892_v40  ;;  %14055 = vst [vmem:[#allocation2_spill] sm:$0xff] %v12991_v32  ;;  %v7225_v48 = vor.u32 %v7224_v22, %v7223_v29  ;;  %v7229_v44 = vor.u32 %v7228_v37, %v7227_v59  ;;  %v13967_v29 = vrot.slane %v12917_v57, 5  ;;  %v5414_v37 = vrot.slane %v12596_v55, 1 }
 0x436   : > { %v12937_v27 = vpack.c.bf16 %v4703_v54, %v4702_v49  ;;  %9853 = vmatprep.mubr.msk.bf16.mxu1 %vm4893_vm8, %v12578_v43 }
 0x437   : > { %v12997_v0 = vsel %vm7151_vm9, %v12991_v32, %v7225_v48  ;;  %v13000_v3 = vsel %vm7151_vm9, %v7225_v48, %v7229_v44  ;;  %v5850_v48 = vsel %vm4954_vm7, %v5746_v26, 0 }
 0x438   : > { %v7232_v2 = vshrl.u32 %v12937_v27, 16  ;;  %v7235_v14 = vshll.u32 %v12937_v27, 16  ;;  %14056 = vst [vmem:[#allocation3_spill] sm:$0xff] %v12997_v0  ;;  %14057 = vst [vmem:[#allocation44_spill] sm:$0xff] %v13000_v3  ;;  %v7577_v22 = vrot.slane %v12937_v27, 5 }
 0x43a   : > { %v7234_v56 = vrot.slane %v7232_v2, 4  ;;  %v7237_v49 = vrot.slane %v7235_v14, 5  ;;  %v13020_v59 = vsel %vm7537_vm10, %v13967_v29, %v7577_v22  ;;  %v6094_v29 = vrot.slane %v12606_v62, 3 }
 0x43b   : > { %14059 = vst [vmem:[#allocation46_spill] sm:$0xff] %v13020_v59  ;;  %v14066_v59 = vld [vmem:[#allocation25_spill] sm:$0xff] }
 0x43c   : > { %v7238_v54 = vor.u32 %v7237_v49, %v7234_v56  ;;  %v5416_v56 = vrot.slane %v12641_v41, 1 }
 0x43d   : > { %9854 = vmatmul.mubr.msk.bf16.vlgmr.msra.gmra.mrb[16].mxu1 %vm4893_vm8, %v12573_v39 }
 0x43e   : > { %9894 = vmatpush3.bf16.msra.mxu1 %v5511_v10  ;;  %9857 = vmatprep.mubr.msk.bf16.mxu1 %vm4893_vm8, %v12599_v28  ;;  %v13007_v40 = vsel %vm7151_vm9, %v7229_v44, %v7238_v54  ;;  %v5409_v10 = vrot.slane %v12578_v43, 1  ;;  %v5412_v43 = vrot.slane %v12599_v28, 1  ;;  %v13029_v44 = vld [vmem:[%s13867_s4 + $0x10] sm:$0xf]  ;;  %v5417_v49 = vsel %vm1355_vm3, %v5414_v37, %v5416_v56 }
 0x43f   : > { %10916 = vmatprep.subr.msk.bf16.mxu1 %vm4954_vm7, %v5746_v26  ;;  %14058 = vst [vmem:[#allocation45_spill] sm:$0xff] %v13007_v40  ;;  %v5418_v26 = vrot.slane %v12637_v30, 1  ;;  %v14067_v40 = vld [vmem:[#allocation31_spill] sm:$0xff] }
 0x440   : > { %v5411_v1 = vsel %vm1355_vm3, %v5409_v10, %v5410_v52  ;;  %v5413_v2 = vsel %vm1355_vm3, %v5410_v52, %v5412_v43  ;;  %v5415_v14 = vsel %vm1355_vm3, %v5412_v43, %v5414_v37  ;;  %v5420_v10 = vrot.slane %v12683_v58, 1 }
 0x441   : > { %v5419_v54 = vsel %vm1355_vm3, %v5416_v56, %v5418_v26  ;;  %v5422_v52 = vrot.slane %v12677_v8, 1  ;;  %v5424_v43 = vrot.slane %v12719_v61, 1  ;;  %v5426_v37 = vrot.slane %v12715_v13, 1 }
 0x442   : > { %v5430_v56 = vrot.slane %v12751_v5, 1  ;;  %v6113_v3 = vrot.slane %v14067_v40, 2 }
 0x443   : > { %v5423_v22 = vsel %vm1355_vm3, %v5420_v10, %v5422_v52 }
 0x445   : > { %9858 = vmatmul.mubr.msk.bf16.gmra.mrb[20].mxu1 %vm4893_vm8, %v12596_v55 }
 0x446   : > { %9861 = vmatprep.mubr.msk.bf16.mxu1 %vm4893_vm8, %v12641_v41 }
 0x44d   : > { %9862 = vmatmul.mubr.msk.bf16.gmra.mrb[24].mxu1 %vm4893_vm8, %v12637_v30 }
 0x44e   : > { %9865 = vmatprep.mubr.msk.bf16.mxu1 %vm4893_vm8, %v12683_v58 }
 0x455   : > { %9866 = vmatmul.mubr.msk.bf16.gmra.mrb[28].mxu1 %vm4893_vm8, %v12677_v8 }
 0x456   : > { %9869 = vmatprep.mubr.msk.bf16.mxu1 %vm4893_vm8, %v12719_v61 }
 0x45d   : > { %9870 = vmatmul.mubr.msk.bf16.gmra.mrb[32].mxu1 %vm4893_vm8, %v12715_v13 }
 0x45e   : > { %9873 = vmatprep.mubr.msk.bf16.mxu1 %vm4893_vm8, %v12755_v12 }
 0x465   : > { %9874 = vmatmul.mubr.msk.bf16.gmra.mrb[36].mxu1 %vm4893_vm8, %v12751_v5 }
 0x466   : > { %9877 = vmatprep.mubr.msk.bf16.mxu1 %vm4893_vm8, %v12791_v17 }
 0x46d   : > { %9878 = vmatmul.mubr.msk.bf16.gmra.mrb[40].mxu1 %vm4893_vm8, %v12785_v34 }
 0x46e   : > { %9881 = vmatprep.mubr.msk.bf16.mxu1 %vm4893_vm8, %v12822_v31 }
 0x475   : > { %9882 = vmatmul.mubr.msk.bf16.gmra.mrb[44].mxu1 %vm4893_vm8, %v12817_v24 }
 0x476   : > { %9885 = vmatprep.mubr.msk.bf16.mxu1 %vm4893_vm8, %v12862_v53 }
 0x47d   : > { %9886 = vmatmul.mubr.msk.bf16.gmra.mrb[48].mxu1 %vm4893_vm8, %v12858_v45 }
 0x47e   : > { %9889 = vmatprep.mubr.msk.bf16.mxu1 %vm4893_vm8, %v12894_v25 }
 0x485   : > { %9890 = vmatmul.mubr.msk.bf16.gmra.mrb[52].mxu1 %vm4893_vm8, %v12889_v60 }
 0x486   : > { %9895 = vmatprep.mubr.msk.bf16.mxu1 %vm4893_vm8, %v5411_v1  ;;  %v5421_v1 = vsel %vm1355_vm3, %v5418_v26, %v5420_v10  ;;  %v5434_v10 = vrot.slane %v12785_v34, 1 }
 0x48d   : > { %9896 = vmatmul.mubr.msk.bf16.vlgmr.msra.gmra.mrb[16].mxu1 %vm4893_vm8, %v5413_v2  ;;  %v5427_v2 = vsel %vm1355_vm3, %v5424_v43, %v5426_v37 }
 0x48e   : > { %9936 = vmatpush3.bf16.msra.mxu1 %v5850_v48  ;;  %9899 = vmatprep.mubr.msk.bf16.mxu1 %vm4893_vm8, %v5415_v14  ;;  %v5425_v48 = vsel %vm1355_vm3, %v5422_v52, %v5424_v43  ;;  %v5428_v14 = vrot.slane %v12755_v12, 1  ;;  %v5438_v43 = vrot.slane %v12817_v24, 1 }
 0x48f   : > { %10917 = vmatprep.subr.msk.bf16.mxu1 %vm4954_vm7, %v13029_v44 }
 0x490   : > { %v5429_v26 = vsel %vm1355_vm3, %v5426_v37, %v5428_v14 }
 0x495   : > { %9900 = vmatmul.mubr.msk.bf16.gmra.mrb[20].mxu1 %vm4893_vm8, %v5417_v49  ;;  %v5431_v49 = vsel %vm1355_vm3, %v5428_v14, %v5430_v56  ;;  %v5442_v14 = vrot.slane %v12858_v45, 1 }
 0x496   : > { %9903 = vmatprep.mubr.msk.bf16.mxu1 %vm4893_vm8, %v5419_v54  ;;  %v5432_v54 = vrot.slane %v12791_v17, 1 }
 0x498   : > { %v5433_v52 = vsel %vm1355_vm3, %v5430_v56, %v5432_v54 }
 0x49d   : > { %9904 = vmatmul.mubr.msk.bf16.gmra.mrb[24].mxu1 %vm4893_vm8, %v5421_v1  ;;  %v5435_v1 = vsel %vm1355_vm3, %v5432_v54, %v5434_v10  ;;  %v5446_v54 = vrot.slane %v12889_v60, 1 }
 0x49e   : > { %9907 = vmatprep.mubr.msk.bf16.mxu1 %vm4893_vm8, %v5423_v22  ;;  %v5436_v22 = vrot.slane %v12822_v31, 1 }
 0x4a0   : > { %v5437_v37 = vsel %vm1355_vm3, %v5434_v10, %v5436_v22 }
 0x4a5   : > { %9908 = vmatmul.mubr.msk.bf16.gmra.mrb[28].mxu1 %vm4893_vm8, %v5425_v48  ;;  %v5439_v48 = vsel %vm1355_vm3, %v5436_v22, %v5438_v43  ;;  %v5749_v22 = vrot.slane %v12599_v28, 2 }
 0x4a6   : > { %9911 = vmatprep.mubr.msk.bf16.mxu1 %vm4893_vm8, %v5427_v2  ;;  %v5440_v2 = vrot.slane %v12862_v53, 1 }
 0x4a8   : > { %v5441_v56 = vsel %vm1355_vm3, %v5438_v43, %v5440_v2  ;;  %v5748_v43 = vrot.slane %v12573_v39, 2 }
 0x4ad   : > { %9912 = vmatmul.mubr.msk.bf16.gmra.mrb[32].mxu1 %vm4893_vm8, %v5429_v26  ;;  %v5443_v26 = vsel %vm1355_vm3, %v5440_v2, %v5442_v14  ;;  %v5751_v2 = vrot.slane %v12596_v55, 2 }
 0x4ae   : > { %9915 = vmatprep.mubr.msk.bf16.mxu1 %vm4893_vm8, %v5431_v49  ;;  %v5444_v49 = vrot.slane %v12894_v25, 1 }
 0x4b0   : > { %v5445_v10 = vsel %vm1355_vm3, %v5442_v14, %v5444_v49  ;;  %v5753_v14 = vrot.slane %v12641_v41, 2 }
 0x4b5   : > { %9916 = vmatmul.mubr.msk.bf16.gmra.mrb[36].mxu1 %vm4893_vm8, %v5433_v52  ;;  %v5447_v52 = vsel %vm1355_vm3, %v5444_v49, %v5446_v54  ;;  %v13099_v49 = vld [vmem:[%s13867_s4 + $0x14] sm:$0xf] }
 0x4b6   : > { %9919 = vmatprep.mubr.msk.bf16.mxu1 %vm4893_vm8, %v5435_v1  ;;  %v5448_v1 = vrot.slane %v12922_v51, 1 }
 0x4bd   : > { %9920 = vmatmul.mubr.msk.bf16.gmra.mrb[40].mxu1 %vm4893_vm8, %v5437_v37  ;;  %v5449_v37 = vsel %vm1355_vm3, %v5446_v54, %v5448_v1  ;;  %v5754_v54 = vsel %vm1753_vm4, %v5751_v2, %v5753_v14 }
 0x4be   : > { %9923 = vmatprep.mubr.msk.bf16.mxu1 %vm4893_vm8, %v5439_v48  ;;  %v5750_v48 = vsel %vm1753_vm4, %v5748_v43, %v5749_v22  ;;  %v5761_v43 = vrot.slane %v12719_v61, 2 }
 0x4c5   : > { %9924 = vmatmul.mubr.msk.bf16.gmra.mrb[44].mxu1 %vm4893_vm8, %v5441_v56  ;;  %v6237_v56 = vsel %vm4954_vm7, %v13029_v44, 0  ;;  %v5757_v44 = vrot.slane %v12683_v58, 2 }
 0x4c6   : > { %9927 = vmatprep.mubr.msk.bf16.mxu1 %vm4893_vm8, %v5443_v26  ;;  %v5752_v26 = vsel %vm1753_vm4, %v5749_v22, %v5751_v2  ;;  %v5759_v22 = vrot.slane %v12677_v8, 2  ;;  %v5763_v2 = vrot.slane %v12715_v13, 2 }
 0x4cd   : > { %9928 = vmatmul.mubr.msk.bf16.gmra.mrb[48].mxu1 %vm4893_vm8, %v5445_v10  ;;  %v5755_v10 = vrot.slane %v12637_v30, 2 }
 0x4ce   : > { %9931 = vmatprep.mubr.msk.bf16.mxu1 %vm4893_vm8, %v5447_v52 }
 0x4cf   : > { %v5756_v52 = vsel %vm1753_vm4, %v5753_v14, %v5755_v10  ;;  %v5758_v1 = vsel %vm1753_vm4, %v5755_v10, %v5757_v44  ;;  %v5765_v14 = vrot.slane %v12755_v12, 2  ;;  %v5769_v10 = vrot.slane %v12791_v17, 2 }
 0x4d5   : > { %9932 = vmatmul.mubr.msk.bf16.gmra.mrb[52].mxu1 %vm4893_vm8, %v5449_v37  ;;  %v5760_v37 = vsel %vm1753_vm4, %v5757_v44, %v5759_v22 }
 0x4d6   : > { %9937 = vmatprep.mubr.msk.bf16.mxu1 %vm4893_vm8, %v5750_v48  ;;  %v5762_v48 = vsel %vm1753_vm4, %v5759_v22, %v5761_v43  ;;  %v5773_v22 = vrot.slane %v12822_v31, 2 }
 0x4dd   : > { %9938 = vmatmul.mubr.msk.bf16.vlgmr.msra.gmra.mrb[16].mxu1 %vm4893_vm8, %v5752_v26  ;;  %v5766_v26 = vsel %vm1753_vm4, %v5763_v2, %v5765_v14 }
 0x4de   : > { %9978 = vmatpush3.bf16.msra.mxu1 %v6237_v56  ;;  %9941 = vmatprep.mubr.msk.bf16.mxu1 %vm4893_vm8, %v5754_v54  ;;  %v5764_v56 = vsel %vm1753_vm4, %v5761_v43, %v5763_v2  ;;  %v5767_v54 = vrot.slane %v12751_v5, 2  ;;  %v5777_v2 = vrot.slane %v12862_v53, 2 }
 0x4df   : > { %10918 = vmatprep.subr.msk.bf16.mxu1 %vm4954_vm7, %v13099_v49 }
 0x4e0   : > { %v5768_v44 = vsel %vm1753_vm4, %v5765_v14, %v5767_v54 }
 0x4e5   : > { %9942 = vmatmul.mubr.msk.bf16.gmra.mrb[20].mxu1 %vm4893_vm8, %v5756_v52  ;;  %v5770_v52 = vsel %vm1753_vm4, %v5767_v54, %v5769_v10  ;;  %v5781_v54 = vrot.slane %v12894_v25, 2 }
 0x4e6   : > { %9945 = vmatprep.mubr.msk.bf16.mxu1 %vm4893_vm8, %v5758_v1  ;;  %v5771_v1 = vrot.slane %v12785_v34, 2 }
 0x4e8   : > { %v5772_v43 = vsel %vm1753_vm4, %v5769_v10, %v5771_v1 }
 0x4ed   : > { %9946 = vmatmul.mubr.msk.bf16.gmra.mrb[24].mxu1 %vm4893_vm8, %v5760_v37  ;;  %v5774_v37 = vsel %vm1753_vm4, %v5771_v1, %v5773_v22  ;;  %v5785_v1 = vrot.slane %v12922_v51, 2 }
 0x4ee   : > { %9949 = vmatprep.mubr.msk.bf16.mxu1 %vm4893_vm8, %v5762_v48  ;;  %v5775_v48 = vrot.slane %v12817_v24, 2 }
 0x4f0   : > { %v5776_v14 = vsel %vm1753_vm4, %v5773_v22, %v5775_v48 }
 0x4f5   : > { %9950 = vmatmul.mubr.msk.bf16.gmra.mrb[28].mxu1 %vm4893_vm8, %v5764_v56  ;;  %v5778_v56 = vsel %vm1753_vm4, %v5775_v48, %v5777_v2  ;;  %v6090_v48 = vrot.slane %v12609_v19, 3 }
 0x4f6   : > { %9953 = vmatprep.mubr.msk.bf16.mxu1 %vm4893_vm8, %v5766_v26  ;;  %v5779_v26 = vrot.slane %v12858_v45, 2 }
 0x4f8   : > { %v5780_v10 = vsel %vm1753_vm4, %v5777_v2, %v5779_v26  ;;  %v14060_v2 = vshrl.u32 %v12573_v39, 16 }
 0x4fd   : > { %9954 = vmatmul.mubr.msk.bf16.gmra.mrb[32].mxu1 %vm4893_vm8, %v5768_v44  ;;  %v5782_v44 = vsel %vm1753_vm4, %v5779_v26, %v5781_v54 }
 0x4fe   : > { %9957 = vmatprep.mubr.msk.bf16.mxu1 %vm4893_vm8, %v5770_v52  ;;  %v5783_v52 = vrot.slane %v12889_v60, 2 }
 0x500   : > { %v5784_v22 = vsel %vm1753_vm4, %v5781_v54, %v5783_v52 }
 0x505   : > { %9958 = vmatmul.mubr.msk.bf16.gmra.mrb[36].mxu1 %vm4893_vm8, %v5772_v43  ;;  %v5786_v43 = vsel %vm1753_vm4, %v5783_v52, %v5785_v1  ;;  %v6093_v52 = vrot.slane %v12649_v47, 2 }
 0x506   : > { %9961 = vmatprep.mubr.msk.bf16.mxu1 %vm4893_vm8, %v5774_v37  ;;  %v6089_v37 = vrot.slane %v12622_v35, 2 }
 0x50d   : > { %9962 = vmatmul.mubr.msk.bf16.gmra.mrb[40].mxu1 %vm4893_vm8, %v5776_v14  ;;  %v6086_v14 = vrot.slane %v14060_v2, 2  ;;  %v6098_v2 = vrot.slane %v12659_v63, 3 }
 0x50e   : > { %9965 = vmatprep.mubr.msk.bf16.mxu1 %vm4893_vm8, %v5778_v56  ;;  %v14061_v56 = vshll.u32 %v12573_v39, 16 }
 0x50f   : > { %v6099_v36 = vor.u32 %v6098_v2, %v6097_v15  ;;  %v14065_v2 = vld [vmem:[#allocation28_spill] sm:$0xff] }
 0x510   : > { %v6087_v26 = vrot.slane %v14061_v56, 3  ;;  %v6095_v56 = vor.u32 %v6094_v29, %v6093_v52  ;;  %v14063_v29 = vld [vmem:[#allocation27_spill] sm:$0xff]  ;;  %v6109_v9 = vrot.slane %v14065_v2, 2  ;;  %v14072_v2 = vld [vmem:[#allocation34_spill] sm:$0xff] }
 0x511   : > { %v6105_v15 = vrot.slane %v14063_v29, 2  ;;  %v6122_v40 = vrot.slane %v14072_v2, 3 }
 0x512   : > { %v6088_v54 = vor.u32 %v6087_v26, %v6086_v14  ;;  %v14062_v14 = vld [vmem:[#allocation24_spill] sm:$0xff] }
 0x513   : > { %v6102_v26 = vrot.slane %v14062_v14, 3 }
 0x515   : > { %9966 = vmatmul.mubr.msk.bf16.gmra.mrb[44].mxu1 %vm4893_vm8, %v5780_v10  ;;  %v5787_v10 = vrot.slane %v12917_v57, 2 }
 0x516   : > { %9969 = vmatprep.mubr.msk.bf16.mxu1 %vm4893_vm8, %v5782_v44  ;;  %v6091_v44 = vor.u32 %v6090_v48, %v6089_v37  ;;  %v6575_v37 = vsel %vm4954_vm7, %v13099_v49, 0  ;;  %v6101_v48 = vrot.slane %v12689_v20, 2 }
 0x518   : > { %v6103_v49 = vor.u32 %v6102_v26, %v6101_v48  ;;  %v14069_v26 = vld [vmem:[#allocation32_spill] sm:$0xff] }
 0x51d   : > { %9970 = vmatmul.mubr.msk.bf16.gmra.mrb[48].mxu1 %vm4893_vm8, %v5784_v22  ;;  %v5788_v22 = vsel %vm1753_vm4, %v5785_v1, %v5787_v10  ;;  %v6096_v1 = vsel %vm2153_vm5, %v6091_v44, %v6095_v56  ;;  %v13177_v10 = vld [vmem:[%s13867_s4 + $0x18] sm:$0xf] }
 0x51e   : > { %9973 = vmatprep.mubr.msk.bf16.mxu1 %vm4893_vm8, %v5786_v43  ;;  %v6092_v43 = vsel %vm2153_vm5, %v6088_v54, %v6091_v44  ;;  %v6100_v54 = vsel %vm2153_vm5, %v6095_v56, %v6099_v36 }
 0x525   : > { %9974 = vmatmul.mubr.msk.bf16.gmra.mrb[52].mxu1 %vm4893_vm8, %v5788_v22  ;;  %v14064_v22 = vld [vmem:[#allocation26_spill] sm:$0xff] }
 0x526   : > { %9979 = vmatprep.mubr.msk.bf16.mxu1 %vm4893_vm8, %v6092_v43  ;;  %v6106_v52 = vrot.slane %v14064_v22, 3  ;;  %v6104_v43 = vsel %vm2153_vm5, %v6099_v36, %v6103_v49  ;;  %v6117_v36 = vrot.slane %v14069_v26, 2 }
 0x528   : > { %v6107_v44 = vor.u32 %v6106_v52, %v6105_v15  ;;  %v14070_v15 = vld [vmem:[#allocation29_spill] sm:$0xff] }
 0x529   : > { %v6118_v52 = vrot.slane %v14070_v15, 3  ;;  %v14075_v15 = vld [vmem:[#allocation37_spill] sm:$0xff] }
 0x52a   : > { %v6108_v56 = vsel %vm2153_vm5, %v6103_v49, %v6107_v44 }
 0x52d   : > { %9980 = vmatmul.mubr.msk.bf16.vlgmr.msra.gmra.mrb[16].mxu1 %vm4893_vm8, %v6096_v1  ;;  %v6110_v1 = vrot.slane %v14066_v59, 3  ;;  %v14071_v59 = vld [vmem:[#allocation35_spill] sm:$0xff] }
 0x52e   : > { %10020 = vmatpush3.bf16.msra.mxu1 %v6575_v37  ;;  %9983 = vmatprep.mubr.msk.bf16.mxu1 %vm4893_vm8, %v6100_v54  ;;  %v14068_v37 = vld [vmem:[#allocation30_spill] sm:$0xff]  ;;  %v6121_v49 = vrot.slane %v14071_v59, 2  ;;  %v6130_v59 = vrot.slane %v14075_v15, 3 }
 0x52f   : > { %10919 = vmatprep.subr.msk.bf16.mxu1 %vm4954_vm7, %v13177_v10  ;;  %v6114_v0 = vrot.slane %v14068_v37, 3  ;;  %v6111_v54 = vor.u32 %v6110_v1, %v6109_v9  ;;  %v6119_v37 = vor.u32 %v6118_v52, %v6117_v36  ;;  %v14076_v36 = vld [vmem:[#allocation36_spill] sm:$0xff] }
 0x530   : > { %v6134_v52 = vrot.slane %v14076_v36, 3 }
 0x531   : > { %v6115_v32 = vor.u32 %v6114_v0, %v6113_v3  ;;  %v6112_v48 = vsel %vm2153_vm5, %v6107_v44, %v6111_v54  ;;  %v6125_v0 = vrot.slane %v12797_v11, 2  ;;  %v14073_v3 = vld [vmem:[#allocation33_spill] sm:$0xff] }
 0x532   : > { %v6126_v44 = vrot.slane %v14073_v3, 3 }
 0x533   : > { %v6120_v9 = vsel %vm2153_vm5, %v6115_v32, %v6119_v37 }
 0x534   : > { %v6127_v2 = vor.u32 %v6126_v44, %v6125_v0  ;;  %v6142_v0 = vrot.slane %v12830_v4, 3 }
 0x535   : > { %9984 = vmatmul.mubr.msk.bf16.gmra.mrb[20].mxu1 %vm4893_vm8, %v6104_v43  ;;  %v6116_v43 = vsel %vm2153_vm5, %v6111_v54, %v6115_v32  ;;  %v6133_v32 = vrot.slane %v12834_v7, 2 }
 0x536   : > { %9987 = vmatprep.mubr.msk.bf16.mxu1 %vm4893_vm8, %v6108_v56  ;;  %v6123_v56 = vor.u32 %v6122_v40, %v6121_v49 }
 0x537   : > { %v6135_v15 = vor.u32 %v6134_v52, %v6133_v32  ;;  %v14079_v52 = vld [vmem:[#allocation41_spill] sm:$0xff] }
 0x538   : > { %v6124_v1 = vsel %vm2153_vm5, %v6119_v37, %v6123_v56  ;;  %v6128_v40 = vsel %vm2153_vm5, %v6123_v56, %v6127_v2  ;;  %v6137_v37 = vrot.slane %v12845_v18, 2  ;;  %v6141_v56 = vrot.slane %v12867_v46, 2 }
 0x53d   : > { %9988 = vmatmul.mubr.msk.bf16.gmra.mrb[24].mxu1 %vm4893_vm8, %v6112_v48  ;;  %v14074_v48 = vld [vmem:[#allocation38_spill] sm:$0xff] }
 0x53e   : > { %9991 = vmatprep.mubr.msk.bf16.mxu1 %vm4893_vm8, %v6116_v43  ;;  %v6129_v54 = vrot.slane %v14074_v48, 2 }
 0x540   : > { %v6131_v43 = vor.u32 %v6130_v59, %v6129_v54  ;;  %v14077_v54 = vld [vmem:[#allocation43_spill] sm:$0xff] }
 0x542   : > { %v6132_v49 = vsel %vm2153_vm5, %v6127_v2, %v6131_v43  ;;  %v6136_v59 = vsel %vm2153_vm5, %v6131_v43, %v6135_v15  ;;  %v6145_v2 = vrot.slane %v14077_v54, 2  ;;  %v6149_v43 = vrot.slane %v12900_v16, 2 }
 0x545   : > { %9992 = vmatmul.mubr.msk.bf16.gmra.mrb[28].mxu1 %vm4893_vm8, %v6120_v9  ;;  %v6138_v9 = vrot.slane %v12837_v33, 3  ;;  %v6143_v33 = vor.u32 %v6142_v0, %v6141_v56  ;;  %v6158_v56 = vrot.slane %v12906_v23, 3  ;;  %v14082_v23 = vshll.u32 %v12917_v57, 16 }
 0x546   : > { %9995 = vmatprep.mubr.msk.bf16.mxu1 %vm4893_vm8, %v6124_v1 }
 0x547   : > { %v6139_v1 = vor.u32 %v6138_v9, %v6137_v37  ;;  %v6150_v37 = vrot.slane %v14079_v52, 3 }
 0x549   : > { %v6140_v44 = vsel %vm2153_vm5, %v6135_v15, %v6139_v1  ;;  %v6144_v32 = vsel %vm2153_vm5, %v6139_v1, %v6143_v33  ;;  %v6153_v15 = vrot.slane %v12912_v21, 2  ;;  %v6157_v1 = vrot.slane %v12928_v38, 2 }
 0x54d   : > { %9996 = vmatmul.mubr.msk.bf16.gmra.mrb[32].mxu1 %vm4893_vm8, %v6128_v40  ;;  %v14078_v40 = vld [vmem:[#allocation42_spill] sm:$0xff] }
 0x54e   : > { %9999 = vmatprep.mubr.msk.bf16.mxu1 %vm4893_vm8, %v6132_v49  ;;  %v6146_v18 = vrot.slane %v14078_v40, 3  ;;  %v6151_v40 = vor.u32 %v6150_v37, %v6149_v43 }
 0x550   : > { %v6147_v49 = vor.u32 %v6146_v18, %v6145_v2 }
 0x552   : > { %v6148_v9 = vsel %vm2153_vm5, %v6143_v33, %v6147_v49  ;;  %v6152_v18 = vsel %vm2153_vm5, %v6147_v49, %v6151_v40  ;;  %v14080_v33 = vshrl.u32 %v12922_v51, 16  ;;  %v14081_v49 = vshrl.u32 %v12917_v57, 16 }
 0x554   : > { %v6163_v2 = vrot.slane %v14080_v33, 2  ;;  %v6170_v38 = vrot.slane %v14081_v49, 2  ;;  %v6915_v33 = vsel %vm4954_vm7, %v13177_v10, 0  ;;  %v6482_v10 = vrot.slane %v12683_v58, 3 }
 0x555   : > { %10000 = vmatmul.mubr.msk.bf16.gmra.mrb[36].mxu1 %vm4893_vm8, %v6136_v59  ;;  %v6154_v59 = vrot.slane %v12903_v50, 3  ;;  %v6484_v49 = vrot.slane %v12677_v8, 3 }
 0x556   : > { %10003 = vmatprep.mubr.msk.bf16.mxu1 %vm4893_vm8, %v6140_v44 }
 0x557   : > { %v6155_v44 = vor.u32 %v6154_v59, %v6153_v15  ;;  %v6173_v15 = vrot.slane %v14082_v23, 3  ;;  %v6485_v23 = vsel %vm2604_vm6, %v6482_v10, %v6484_v49 }
 0x559   : > { %v6156_v0 = vsel %vm2153_vm5, %v6151_v40, %v6155_v44  ;;  %v6174_v59 = vor.u32 %v6173_v15, %v6170_v38  ;;  %v6486_v38 = vrot.slane %v12719_v61, 3 }
 0x55b   : > { %v6487_v15 = vsel %vm2604_vm6, %v6484_v49, %v6486_v38 }
 0x55d   : > { %10004 = vmatmul.mubr.msk.bf16.gmra.mrb[40].mxu1 %vm4893_vm8, %v6144_v32  ;;  %v6164_v32 = vrot.slane %v12931_v6, 3  ;;  %v6474_v6 = vrot.slane %v12599_v28, 3 }
 0x55e   : > { %10007 = vmatprep.mubr.msk.bf16.mxu1 %vm4893_vm8, %v6148_v9  ;;  %v6159_v9 = vor.u32 %v6158_v56, %v6157_v1  ;;  %v6476_v56 = vrot.slane %v12596_v55, 3 }
 0x55f   : > { %v6165_v43 = vor.u32 %v6164_v32, %v6163_v2 }
 0x560   : > { %v6160_v37 = vsel %vm2153_vm5, %v6155_v44, %v6159_v9  ;;  %v6477_v2 = vsel %vm2604_vm6, %v6474_v6, %v6476_v56 }
 0x561   : > { %v6166_v40 = vsel %vm2153_vm5, %v6159_v9, %v6165_v43  ;;  %v6175_v1 = vsel %vm2153_vm5, %v6165_v43, %v6174_v59  ;;  %v6480_v9 = vrot.slane %v12637_v30, 3  ;;  %v6490_v59 = vrot.slane %v12755_v12, 3 }
 0x565   : > { %10008 = vmatmul.mubr.msk.bf16.gmra.mrb[44].mxu1 %vm4893_vm8, %v6152_v18  ;;  %v6473_v18 = vrot.slane %v12573_v39, 3  ;;  %v13265_v39 = vld [vmem:[%s13867_s4 + $0x1c] sm:$0xf] }
 0x566   : > { %10011 = vmatprep.mubr.msk.bf16.mxu1 %vm4893_vm8, %v6156_v0  ;;  %v6478_v0 = vrot.slane %v12641_v41, 3 }
 0x567   : > { %v6475_v44 = vsel %vm2604_vm6, %v6473_v18, %v6474_v6 }
 0x568   : > { %v6479_v32 = vsel %vm2604_vm6, %v6476_v56, %v6478_v0  ;;  %v6481_v43 = vsel %vm2604_vm6, %v6478_v0, %v6480_v9 }
 0x56d   : > { %10012 = vmatmul.mubr.msk.bf16.gmra.mrb[48].mxu1 %vm4893_vm8, %v6160_v37  ;;  %v6483_v37 = vsel %vm2604_vm6, %v6480_v9, %v6482_v10  ;;  %v6500_v10 = vrot.slane %v12817_v24, 3 }
 0x56e   : > { %10015 = vmatprep.mubr.msk.bf16.mxu1 %vm4893_vm8, %v6166_v40  ;;  %v6488_v40 = vrot.slane %v12715_v13, 3 }
 0x570   : > { %v6489_v6 = vsel %vm2604_vm6, %v6486_v38, %v6488_v40  ;;  %v6491_v18 = vsel %vm2604_vm6, %v6488_v40, %v6490_v59  ;;  %v6504_v38 = vrot.slane %v12858_v45, 3 }
 0x575   : > { %10016 = vmatmul.mubr.msk.bf16.gmra.mrb[52].mxu1 %vm4893_vm8, %v6175_v1  ;;  %v6492_v1 = vrot.slane %v12751_v5, 3 }
 0x576   : > { %10021 = vmatprep.mubr.msk.bf16.mxu1 %vm4893_vm8, %v6475_v44  ;;  %v6494_v44 = vrot.slane %v12791_v17, 3 }
 0x577   : > { %v6493_v56 = vsel %vm2604_vm6, %v6490_v59, %v6492_v1  ;;  %v6508_v59 = vrot.slane %v12889_v60, 3 }
 0x578   : > { %v6495_v0 = vsel %vm2604_vm6, %v6492_v1, %v6494_v44 }
 0x57d   : > { %10022 = vmatmul.mubr.msk.bf16.vlgmr.msra.gmra.mrb[16].mxu1 %vm4893_vm8, %v6477_v2  ;;  %v6498_v2 = vrot.slane %v12822_v31, 3 }
 0x57e   : > { %10062 = vmatpush3.bf16.msra.mxu1 %v6915_v33  ;;  %10025 = vmatprep.mubr.msk.bf16.mxu1 %vm4893_vm8, %v6479_v32  ;;  %v6496_v33 = vrot.slane %v12785_v34, 3 }
 0x57f   : > { %10920 = vmatprep.subr.msk.bf16.mxu1 %vm4954_vm7, %v13265_v39 }
 0x580   : > { %v6497_v32 = vsel %vm2604_vm6, %v6494_v44, %v6496_v33  ;;  %v6499_v9 = vsel %vm2604_vm6, %v6496_v33, %v6498_v2  ;;  %v6512_v44 = vrot.slane %v12917_v57, 3 }
 0x585   : > { %10026 = vmatmul.mubr.msk.bf16.gmra.mrb[20].mxu1 %vm4893_vm8, %v6481_v43  ;;  %v6502_v43 = vrot.slane %v12862_v53, 3 }
 0x586   : > { %10029 = vmatprep.mubr.msk.bf16.mxu1 %vm4893_vm8, %v6483_v37  ;;  %v6501_v37 = vsel %vm2604_vm6, %v6498_v2, %v6500_v10 }
 0x587   : > { %v6503_v49 = vsel %vm2604_vm6, %v6500_v10, %v6502_v43  ;;  %v7301_v10 = vsel %vm4954_vm7, %v13265_v39, 0  ;;  %v6822_v39 = vrot.slane %v12677_v8, 4 }
 0x58d   : > { %10030 = vmatmul.mubr.msk.bf16.gmra.mrb[24].mxu1 %vm4893_vm8, %v6485_v23  ;;  %v6506_v23 = vrot.slane %v12894_v25, 3 }
 0x58e   : > { %10033 = vmatprep.mubr.msk.bf16.mxu1 %vm4893_vm8, %v6487_v15  ;;  %v6505_v15 = vsel %vm2604_vm6, %v6502_v43, %v6504_v38 }
 0x58f   : > { %v6507_v40 = vsel %vm2604_vm6, %v6504_v38, %v6506_v23  ;;  %v6820_v38 = vrot.slane %v12683_v58, 4 }
 0x595   : > { %10034 = vmatmul.mubr.msk.bf16.gmra.mrb[28].mxu1 %vm4893_vm8, %v6489_v6  ;;  %v6510_v6 = vrot.slane %v12922_v51, 3 }
 0x596   : > { %10037 = vmatprep.mubr.msk.bf16.mxu1 %vm4893_vm8, %v6491_v18  ;;  %v6509_v18 = vsel %vm2604_vm6, %v6506_v23, %v6508_v59 }
 0x597   : > { %v6511_v1 = vsel %vm2604_vm6, %v6508_v59, %v6510_v6  ;;  %v6513_v33 = vsel %vm2604_vm6, %v6510_v6, %v6512_v44  ;;  %v6826_v59 = vrot.slane %v12715_v13, 4  ;;  %v6830_v44 = vrot.slane %v12751_v5, 4 }
 0x59d   : > { %10038 = vmatmul.mubr.msk.bf16.gmra.mrb[32].mxu1 %vm4893_vm8, %v6493_v56  ;;  %v6813_v56 = vrot.slane %v12599_v28, 4 }
 0x59e   : > { %10041 = vmatprep.mubr.msk.bf16.mxu1 %vm4893_vm8, %v6495_v0  ;;  %v6814_v0 = vrot.slane %v12596_v55, 4 }
 0x5a0   : > { %v6815_v2 = vsel %vm4954_vm7, %v6813_v56, %v6814_v0 }
 0x5a5   : > { %10042 = vmatmul.mubr.msk.bf16.gmra.mrb[36].mxu1 %vm4893_vm8, %v6497_v32  ;;  %v6816_v32 = vrot.slane %v12641_v41, 4 }
 0x5a6   : > { %10045 = vmatprep.mubr.msk.bf16.mxu1 %vm4893_vm8, %v6499_v9  ;;  %v6818_v9 = vrot.slane %v12637_v30, 4 }
 0x5a7   : > { %v6817_v43 = vsel %vm4954_vm7, %v6814_v0, %v6816_v32 }
 0x5a8   : > { %v6821_v23 = vsel %vm4954_vm7, %v6818_v9, %v6820_v38 }
 0x5ad   : > { %10046 = vmatmul.mubr.msk.bf16.gmra.mrb[40].mxu1 %vm4893_vm8, %v6501_v37  ;;  %v13335_v37 = vld [vmem:[%s13867_s4 + $0x20] sm:$0xf] }
 0x5ae   : > { %10049 = vmatprep.mubr.msk.bf16.mxu1 %vm4893_vm8, %v6503_v49  ;;  %v6819_v49 = vsel %vm4954_vm7, %v6816_v32, %v6818_v9 }
 0x5b5   : > { %10050 = vmatmul.mubr.msk.bf16.gmra.mrb[44].mxu1 %vm4893_vm8, %v6505_v15  ;;  %v6823_v15 = vsel %vm4954_vm7, %v6820_v38, %v6822_v39 }
 0x5b6   : > { %10053 = vmatprep.mubr.msk.bf16.mxu1 %vm4893_vm8, %v6507_v40  ;;  %v6824_v40 = vrot.slane %v12719_v61, 4 }
 0x5b8   : > { %v6825_v6 = vsel %vm4954_vm7, %v6822_v39, %v6824_v40  ;;  %v6840_v39 = vrot.slane %v12862_v53, 4 }
 0x5bd   : > { %10054 = vmatmul.mubr.msk.bf16.gmra.mrb[48].mxu1 %vm4893_vm8, %v6509_v18  ;;  %v6827_v18 = vsel %vm4954_vm7, %v6824_v40, %v6826_v59 }
 0x5be   : > { %10057 = vmatprep.mubr.msk.bf16.mxu1 %vm4893_vm8, %v6511_v1  ;;  %v6828_v1 = vrot.slane %v12755_v12, 4 }
 0x5c0   : > { %v6829_v56 = vsel %vm4954_vm7, %v6826_v59, %v6828_v1  ;;  %v6831_v0 = vsel %vm4954_vm7, %v6828_v1, %v6830_v44  ;;  %v6844_v59 = vrot.slane %v12894_v25, 4 }
 0x5c5   : > { %10058 = vmatmul.mubr.msk.bf16.gmra.mrb[52].mxu1 %vm4893_vm8, %v6513_v33  ;;  %v6832_v33 = vrot.slane %v12791_v17, 4 }
 0x5c6   : > { %10063 = vmatprep.mubr.msk.bf16.mxu1 %vm4893_vm8, %v6815_v2  ;;  %v6834_v2 = vrot.slane %v12785_v34, 4 }
 0x5c7   : > { %v6833_v32 = vsel %vm4954_vm7, %v6830_v44, %v6832_v33  ;;  %v6848_v44 = vrot.slane %v12922_v51, 4 }
 0x5c8   : > { %v6835_v9 = vsel %vm4954_vm7, %v6832_v33, %v6834_v2  ;;  %v7152_v33 = vrot.slane %v12622_v35, 4  ;;  %v7159_v35 = vrot.slane %v12665_v42, 4  ;;  %v7167_v42 = vrot.slane %v14063_v29, 4 }
 0x5cd   : > { %10064 = vmatmul.mubr.msk.bf16.vlgmr.msra.gmra.mrb[16].mxu1 %vm4893_vm8, %v6817_v43  ;;  %v6838_v43 = vrot.slane %v12817_v24, 4 }
 0x5ce   : > { %10104 = vmatpush3.bf16.msra.mxu1 %v7301_v10  ;;  %10067 = vmatprep.mubr.msk.bf16.mxu1 %vm4893_vm8, %v6819_v49  ;;  %v6836_v10 = vrot.slane %v12822_v31, 4 }
 0x5cf   : > { %10921 = vmatprep.subr.msk.bf16.mxu1 %vm4954_vm7, %v13335_v37 }
 0x5d0   : > { %v6837_v49 = vsel %vm4954_vm7, %v6834_v2, %v6836_v10  ;;  %v6839_v38 = vsel %vm4954_vm7, %v6836_v10, %v6838_v43  ;;  %v7156_v10 = vrot.slane %v12606_v62, 5  ;;  %v7164_v62 = vrot.slane %v14062_v14, 5  ;;  %v14083_v14 = vld [vmem:[#allocation28_spill] sm:$0xff] }
 0x5d5   : > { %10068 = vmatmul.mubr.msk.bf16.gmra.mrb[20].mxu1 %vm4893_vm8, %v6821_v23  ;;  %v6842_v23 = vrot.slane %v12858_v45, 4 }
 0x5d6   : > { %10071 = vmatprep.mubr.msk.bf16.mxu1 %vm4893_vm8, %v6823_v15  ;;  %v6841_v15 = vsel %vm4954_vm7, %v6838_v43, %v6840_v39  ;;  %v6852_v43 = vrot.slane %v12937_v27, 4 }
 0x5d7   : > { %v6843_v40 = vsel %vm4954_vm7, %v6840_v39, %v6842_v23 }
 0x5dd   : > { %10072 = vmatmul.mubr.msk.bf16.gmra.mrb[24].mxu1 %vm4893_vm8, %v6825_v6  ;;  %v6846_v6 = vrot.slane %v12889_v60, 4 }
 0x5de   : > { %10075 = vmatprep.mubr.msk.bf16.mxu1 %vm4893_vm8, %v6827_v18  ;;  %v6845_v18 = vsel %vm4954_vm7, %v6842_v23, %v6844_v59  ;;  %v7160_v23 = vrot.slane %v12659_v63, 5  ;;  %v7168_v63 = vrot.slane %v14064_v22, 5 }
 0x5df   : > { %v6847_v1 = vsel %vm4954_vm7, %v6844_v59, %v6846_v6 }
 0x5e0   : > { %v7169_v29 = vor.u32 %v7168_v63, %v7167_v42  ;;  %v7191_v42 = vrot.slane %v14074_v48, 4  ;;  %v14090_v63 = vld [vmem:[#allocation37_spill] sm:$0xff] }
 0x5e5   : > { %10076 = vmatmul.mubr.msk.bf16.gmra.mrb[28].mxu1 %vm4893_vm8, %v6829_v56  ;;  %v6850_v56 = vrot.slane %v12917_v57, 4 }
 0x5e6   : > { %10079 = vmatprep.mubr.msk.bf16.mxu1 %vm4893_vm8, %v6831_v0  ;;  %v6849_v0 = vsel %vm4954_vm7, %v6846_v6, %v6848_v44  ;;  %v13411_v6 = vld [vmem:[%s13869_s6] sm:$0x3] }
 0x5e7   : > { %v6851_v2 = vsel %vm4954_vm7, %v6848_v44, %v6850_v56  ;;  %v6853_v39 = vsel %vm4954_vm7, %v6850_v56, %v6852_v43  ;;  %v14085_v56 = vld [vmem:[#allocation31_spill] sm:$0xff] }
 0x5ed   : > { %10080 = vmatmul.mubr.msk.bf16.gmra.mrb[32].mxu1 %vm4893_vm8, %v6833_v32  ;;  %v7153_v32 = vrot.slane %v12609_v19, 5 }
 0x5ee   : > { %10083 = vmatprep.mubr.msk.bf16.mxu1 %vm4893_vm8, %v6835_v9  ;;  %v7155_v9 = vrot.slane %v12649_v47, 4  ;;  %v7163_v47 = vrot.slane %v12689_v20, 4 }
 0x5f0   : > { %v7165_v27 = vor.u32 %v7164_v62, %v7163_v47 }
 0x5f5   : > { %10084 = vmatmul.mubr.msk.bf16.gmra.mrb[36].mxu1 %vm4893_vm8, %v6837_v49  ;;  %v7154_v49 = vor.u32 %v7153_v32, %v7152_v33  ;;  %v14086_v33 = vld [vmem:[#allocation30_spill] sm:$0xff] }
 0x5f6   : > { %10087 = vmatprep.mubr.msk.bf16.mxu1 %vm4893_vm8, %v6839_v38  ;;  %v7157_v38 = vor.u32 %v7156_v10, %v7155_v9  ;;  %v7179_v9 = vrot.slane %v14069_v26, 4  ;;  %v14087_v10 = vld [vmem:[#allocation29_spill] sm:$0xff]  ;;  %v7188_v26 = vrot.slane %v14073_v3, 5 }
 0x5f7   : > { %v7180_v43 = vrot.slane %v14087_v10, 5 }
 0x5f8   : > { %v7158_v19 = vsel %vm7151_vm9, %v7154_v49, %v7157_v38 }
 0x5fd   : > { %10088 = vmatmul.mubr.msk.bf16.gmra.mrb[40].mxu1 %vm4893_vm8, %v6841_v15  ;;  %v7161_v15 = vor.u32 %v7160_v23, %v7159_v35  ;;  %v14088_v35 = vld [vmem:[#allocation35_spill] sm:$0xff] }
 0x5fe   : > { %10091 = vmatprep.mubr.msk.bf16.mxu1 %vm4893_vm8, %v6843_v40  ;;  %v7640_v40 = vsel %vm4954_vm7, %v13335_v37, 0  ;;  %v7170_v37 = vsel %vm7151_vm9, %v7165_v27, %v7169_v29  ;;  %v7183_v23 = vrot.slane %v14088_v35, 4  ;;  %v7215_v35 = vrot.slane %v12912_v21, 4 }
 0x5ff   : > { %v7162_v59 = vsel %vm7151_vm9, %v7157_v38, %v7161_v15  ;;  %v7166_v20 = vsel %vm7151_vm9, %v7161_v15, %v7165_v27  ;;  %v7181_v38 = vor.u32 %v7180_v43, %v7179_v9  ;;  %v7187_v15 = vrot.slane %v12797_v11, 4  ;;  %v14093_v9 = vld [vmem:[#allocation42_spill] sm:$0xff] }
 0x600   : > { %v7196_v11 = vrot.slane %v14076_v36, 5  ;;  %v7208_v10 = vrot.slane %v14093_v9, 5  ;;  %v7538_v21 = vrot.slane %v12599_v28, 5  ;;  %v7545_v28 = vrot.slane %v12683_v58, 5  ;;  %v14105_v9 = vld [vmem:[#allocation9_spill] sm:$0xff] }
 0x605   : > { %10092 = vmatmul.mubr.msk.bf16.gmra.mrb[44].mxu1 %vm4893_vm8, %v6845_v18  ;;  %v7171_v18 = vrot.slane %v14083_v14, 4 }
 0x606   : > { %10095 = vmatprep.mubr.msk.bf16.mxu1 %vm4893_vm8, %v6847_v1  ;;  %v14084_v1 = vld [vmem:[#allocation25_spill] sm:$0xff] }
 0x607   : > { %v7172_v44 = vrot.slane %v14084_v1, 5 }
 0x609   : > { %v7173_v22 = vor.u32 %v7172_v44, %v7171_v18  ;;  %v7195_v18 = vrot.slane %v12834_v7, 4  ;;  %v7204_v7 = vrot.slane %v12830_v4, 5 }
 0x60b   : > { %v7174_v32 = vsel %vm7151_vm9, %v7169_v29, %v7173_v22  ;;  %v7197_v1 = vor.u32 %v7196_v11, %v7195_v18  ;;  %v14091_v29 = vld [vmem:[#allocation40_spill] sm:$0xff]  ;;  %v7555_v11 = vrot.slane %v12751_v5, 5  ;;  %v7561_v5 = vrot.slane %v12822_v31, 5 }
 0x60d   : > { %10096 = vmatmul.mubr.msk.bf16.gmra.mrb[48].mxu1 %vm4893_vm8, %v6849_v0  ;;  %v7175_v0 = vrot.slane %v14085_v56, 4 }
 0x60e   : > { %10099 = vmatprep.mubr.msk.bf16.mxu1 %vm4893_vm8, %v6851_v2  ;;  %v7176_v2 = vrot.slane %v14086_v33, 5 }
 0x610   : > { %v7177_v49 = vor.u32 %v7176_v2, %v7175_v0  ;;  %v7203_v0 = vrot.slane %v12867_v46, 4  ;;  %v7212_v46 = vrot.slane %v14079_v52, 5  ;;  %v14094_v52 = vld [vmem:[#allocation2_spill] sm:$0xff] }
 0x612   : > { %v7182_v62 = vsel %vm7151_vm9, %v7177_v49, %v7181_v38  ;;  %v7205_v33 = vor.u32 %v7204_v7, %v7203_v0 }
 0x615   : > { %10100 = vmatmul.mubr.msk.bf16.gmra.mrb[52].mxu1 %vm4893_vm8, %v6853_v39  ;;  %v7178_v39 = vsel %vm7151_vm9, %v7173_v22, %v7177_v49  ;;  %v7199_v22 = vrot.slane %v14091_v29, 4  ;;  %v7211_v49 = vrot.slane %v12900_v16, 4  ;;  %v7563_v29 = vrot.slane %v12817_v24, 5 }
 0x616   : > { %10105 = vmatprep.mubr.msk.bf16.mxu1 %vm4893_vm8, %v7158_v19  ;;  %v14089_v19 = vld [vmem:[#allocation34_spill] sm:$0xff]  ;;  %v7569_v24 = vrot.slane %v12894_v25, 5 }
 0x617   : > { %v7184_v47 = vrot.slane %v14089_v19, 5 }
 0x619   : > { %v7185_v27 = vor.u32 %v7184_v47, %v7183_v23 }
 0x61d   : > { %10106 = vmatmul.mubr.msk.bf16.vlgmr.msra.gmra.mrb[16].mxu1 %vm4893_vm8, %v7162_v59  ;;  %v7186_v59 = vsel %vm7151_vm9, %v7181_v38, %v7185_v27  ;;  %v7213_v38 = vor.u32 %v7212_v46, %v7211_v49  ;;  %v14108_v49 = vld [vmem:[#allocation12_spill] sm:$0xff]  ;;  %v14109_v46 = vld [vmem:[#allocation13_spill] sm:$0xff] }
 0x61e   : > { %10146 = vmatpush3.bf16.msra.mxu1 %v7640_v40  ;;  %10109 = vmatprep.mubr.msk.bf16.mxu1 %vm4893_vm8, %v7166_v20  ;;  %v7189_v40 = vor.u32 %v7188_v26, %v7187_v15  ;;  %v7192_v20 = vrot.slane %v14090_v63, 5  ;;  %v7539_v15 = vrot.slane %v12596_v55, 5  ;;  %v14097_v26 = vld [vmem:[#allocation45_spill] sm:$0xff] }
 0x61f   : > { %10922 = vmatprep.subr.msk.bf16.mxu1 %vm853_vm0, %v13411_v6 }
 0x620   : > { %v7190_v14 = vsel %vm7151_vm9, %v7185_v27, %v7189_v40  ;;  %v7193_v3 = vor.u32 %v7192_v20, %v7191_v42  ;;  %v7540_v27 = vsel %vm7537_vm10, %v7538_v21, %v7539_v15  ;;  %v8010_v42 = vsel %vm853_vm0, %v13411_v6, 0  ;;  %v14119_v21 = vld [vmem:[#allocation21_spill] sm:$0xff] }
 0x621   : > { %v7547_v20 = vrot.slane %v12677_v8, 5  ;;  %v7549_v6 = vrot.slane %v12719_v61, 5  ;;  %v7553_v8 = vrot.slane %v12755_v12, 5 }
 0x622   : > { %v7194_v44 = vsel %vm7151_vm9, %v7189_v40, %v7193_v3  ;;  %v7198_v56 = vsel %vm7151_vm9, %v7193_v3, %v7197_v1  ;;  %v7541_v40 = vrot.slane %v12641_v41, 5 }
 0x623   : > { %v7550_v18 = vsel %vm7537_vm10, %v7547_v20, %v7549_v6  ;;  %v7556_v61 = vsel %vm7537_vm10, %v7553_v8, %v7555_v11 }
 0x624   : > { %v7542_v63 = vsel %vm7537_vm10, %v7539_v15, %v7541_v40 }
 0x625   : > { %10110 = vmatmul.mubr.msk.bf16.gmra.mrb[20].mxu1 %vm4893_vm8, %v7170_v37  ;;  %v14092_v37 = vld [vmem:[#allocation39_spill] sm:$0xff] }
 0x626   : > { %10113 = vmatprep.mubr.msk.bf16.mxu1 %vm4893_vm8, %v7174_v32  ;;  %v7200_v48 = vrot.slane %v14092_v37, 5  ;;  %v7207_v32 = vrot.slane %v14077_v54, 4  ;;  %v7216_v54 = vrot.slane %v12903_v50, 5  ;;  %v14096_v50 = vld [vmem:[#allocation44_spill] sm:$0xff]  ;;  %v7567_v37 = vrot.slane %v12858_v45, 5 }
 0x627   : > { %v7573_v45 = vrot.slane %v12922_v51, 5  ;;  %v14102_v51 = vld [vmem:[#allocation6_spill] sm:$0xff] }
 0x628   : > { %v7201_v36 = vor.u32 %v7200_v48, %v7199_v22  ;;  %v7209_v4 = vor.u32 %v7208_v10, %v7207_v32  ;;  %v7217_v19 = vor.u32 %v7216_v54, %v7215_v35  ;;  %v7570_v0 = vsel %vm7537_vm10, %v7567_v37, %v7569_v24  ;;  %v14103_v32 = vld [vmem:[#allocation7_spill] sm:$0xff]  ;;  %v14106_v10 = vld [vmem:[#allocation10_spill] sm:$0xff]  ;;  %v14113_v35 = vld [vmem:[#allocation17_spill] sm:$0xff] }
 0x629   : > { %v14114_v54 = vld [vmem:[#allocation18_spill] sm:$0xff] }
 0x62a   : > { %v7202_v2 = vsel %vm7151_vm9, %v7197_v1, %v7201_v36  ;;  %v7206_v43 = vsel %vm7151_vm9, %v7201_v36, %v7205_v33  ;;  %v7214_v23 = vsel %vm7151_vm9, %v7209_v4, %v7213_v38  ;;  %v7218_v16 = vsel %vm7151_vm9, %v7213_v38, %v7217_v19  ;;  %v14111_v38 = vld [vmem:[#allocation15_spill] sm:$0xff] }
 0x62b   : > { %v7222_v47 = vsel %vm7151_vm9, %v7217_v19, %v14094_v52  ;;  %v7559_v1 = vrot.slane %v12785_v34, 5  ;;  %v7565_v34 = vrot.slane %v12862_v53, 5  ;;  %v14098_v36 = vrot.slane %v12917_v57, 5  ;;  %v14104_v57 = vld [vmem:[#allocation8_spill] sm:$0xff] }
 0x62c   : > { %v14116_v19 = vld [vmem:[#allocation20_spill] sm:$0xff] }
 0x62d   : > { %10114 = vmatmul.mubr.msk.bf16.gmra.mrb[24].mxu1 %vm4893_vm8, %v7178_v39  ;;  %v7210_v39 = vsel %vm7151_vm9, %v7205_v33, %v7209_v4  ;;  %v7562_v22 = vsel %vm7537_vm10, %v7559_v1, %v7561_v5  ;;  %v7566_v48 = vsel %vm7537_vm10, %v7563_v29, %v7565_v34  ;;  %v7568_v31 = vsel %vm7537_vm10, %v7565_v34, %v7567_v37  ;;  %v14100_v33 = vld [vmem:[#allocation4_spill] sm:$0xff]  ;;  %v14110_v4 = vld [vmem:[#allocation14_spill] sm:$0xff] }
 0x62e   : > { %10117 = vmatprep.mubr.msk.bf16.mxu1 %vm4893_vm8, %v7182_v62  ;;  %v14095_v62 = vld [vmem:[#allocation3_spill] sm:$0xff]  ;;  %v7576_v25 = vsel %vm7537_vm10, %v7573_v45, %v14098_v36 }
 0x635   : > { %10118 = vmatmul.mubr.msk.bf16.gmra.mrb[28].mxu1 %vm4893_vm8, %v7186_v59  ;;  %v7543_v59 = vrot.slane %v12637_v30, 5  ;;  %v7548_v30 = vsel %vm7537_vm10, %v7545_v28, %v7547_v20 }
 0x636   : > { %10121 = vmatprep.mubr.msk.bf16.mxu1 %vm4893_vm8, %v7190_v14  ;;  %v7551_v14 = vrot.slane %v12715_v13, 5  ;;  %v7557_v13 = vrot.slane %v12791_v17, 5  ;;  %v7564_v17 = vsel %vm7537_vm10, %v7561_v5, %v7563_v29 }
 0x637   : > { %v7544_v55 = vsel %vm7537_vm10, %v7541_v40, %v7543_v59  ;;  %v7546_v41 = vsel %vm7537_vm10, %v7543_v59, %v7545_v28 }
 0x638   : > { %v7552_v58 = vsel %vm7537_vm10, %v7549_v6, %v7551_v14  ;;  %v7554_v3 = vsel %vm7537_vm10, %v7551_v14, %v7553_v8  ;;  %v7560_v12 = vsel %vm7537_vm10, %v7557_v13, %v7559_v1 }
 0x63d   : > { %10122 = vmatmul.mubr.msk.bf16.gmra.mrb[32].mxu1 %vm4893_vm8, %v7194_v44  ;;  %v7558_v44 = vsel %vm7537_vm10, %v7555_v11, %v7557_v13 }
 0x63e   : > { %10125 = vmatprep.mubr.msk.bf16.mxu1 %vm4893_vm8, %v7198_v56  ;;  %v7571_v56 = vrot.slane %v12889_v60, 5  ;;  %v14099_v60 = vld [vmem:[#allocation46_spill] sm:$0xff] }
 0x640   : > { %v7572_v53 = vsel %vm7537_vm10, %v7569_v24, %v7571_v56  ;;  %v7574_v7 = vsel %vm7537_vm10, %v7571_v56, %v7573_v45 }
 0x645   : > { %10126 = vmatmul.mubr.msk.bf16.gmra.mrb[36].mxu1 %vm4893_vm8, %v7202_v2  ;;  %v14101_v2 = vld [vmem:[#allocation5_spill] sm:$0xff] }
 0x646   : > { %10129 = vmatprep.mubr.msk.bf16.mxu1 %vm4893_vm8, %v7206_v43  ;;  %v14107_v43 = vld [vmem:[#allocation11_spill] sm:$0xff] }
 0x64d   : > { %10130 = vmatmul.mubr.msk.bf16.gmra.mrb[40].mxu1 %vm4893_vm8, %v7210_v39  ;;  %v14112_v39 = vld [vmem:[#allocation16_spill] sm:$0xff] }
 0x64e   : > { %10133 = vmatprep.mubr.msk.bf16.mxu1 %vm4893_vm8, %v7214_v23  ;;  %v14115_v23 = vld [vmem:[#allocation19_spill] sm:$0xff] }
 0x655   : > { %10134 = vmatmul.mubr.msk.bf16.gmra.mrb[44].mxu1 %vm4893_vm8, %v7218_v16  ;;  %v11047_v16 = vld [vmem:[%s11152_s16 + $0xb4] sm:$0xf] }
 0x656   : > { %10137 = vmatprep.mubr.msk.bf16.mxu1 %vm4893_vm8, %v7222_v47  ;;  %v8900_v52 = vcombine.low %v11047_v16, %v11047_v16  ;;  %v14117_v47 = vld [vmem:[#allocation22_spill] sm:$0xff] }
 0x65d   : > { %10138 = vmatmul.mubr.msk.bf16.gmra.mrb[48].mxu1 %vm4893_vm8, %v14095_v62  ;;  %v14118_v62 = vld [vmem:[#allocation23_spill] sm:$0xff] }
 0x65e   : > { %10141 = vmatprep.mubr.msk.bf16.mxu1 %vm4893_vm8, %v14096_v50  ;;  %v8004_v50 = vrot.slane %v8900_v52, 1 }
 0x660   : > { %v8005_v15 = vsel %vm1355_vm3, %v14119_v21, %v8004_v50 }
 0x665   : > { %10142 = vmatmul.mubr.msk.bf16.gmra.mrb[52].mxu1 %vm4893_vm8, %v14097_v26 }
 0x666   : > { %10147 = vmatprep.mubr.msk.bf16.mxu1 %vm4893_vm8, %v7540_v27 }
 0x66d   : > { %10148 = vmatmul.mubr.msk.bf16.vlgmr.msra.gmra.mrb[16].mxu1 %vm4893_vm8, %v7542_v63 }
 0x66e   : > { %10188 = vmatpush3.bf16.msra.mxu1 %v8010_v42  ;;  %10151 = vmatprep.mubr.msk.bf16.mxu1 %vm4893_vm8, %v7544_v55 }
 0x675   : > { %10152 = vmatmul.mubr.msk.bf16.gmra.mrb[20].mxu1 %vm4893_vm8, %v7546_v41 }
 0x676   : > { %10155 = vmatprep.mubr.msk.bf16.mxu1 %vm4893_vm8, %v7548_v30 }
 0x67d   : > { %10156 = vmatmul.mubr.msk.bf16.gmra.mrb[24].mxu1 %vm4893_vm8, %v7550_v18 }
 0x67e   : > { %10159 = vmatprep.mubr.msk.bf16.mxu1 %vm4893_vm8, %v7552_v58 }
 0x685   : > { %10160 = vmatmul.mubr.msk.bf16.gmra.mrb[28].mxu1 %vm4893_vm8, %v7554_v3 }
 0x686   : > { %10163 = vmatprep.mubr.msk.bf16.mxu1 %vm4893_vm8, %v7556_v61 }
 0x68d   : > { %10164 = vmatmul.mubr.msk.bf16.gmra.mrb[32].mxu1 %vm4893_vm8, %v7558_v44 }
 0x68e   : > { %10167 = vmatprep.mubr.msk.bf16.mxu1 %vm4893_vm8, %v7560_v12 }
 0x695   : > { %10168 = vmatmul.mubr.msk.bf16.gmra.mrb[36].mxu1 %vm4893_vm8, %v7562_v22 }
 0x696   : > { %10171 = vmatprep.mubr.msk.bf16.mxu1 %vm4893_vm8, %v7564_v17 }
 0x69d   : > { %10172 = vmatmul.mubr.msk.bf16.gmra.mrb[40].mxu1 %vm4893_vm8, %v7566_v48 }
 0x69e   : > { %10175 = vmatprep.mubr.msk.bf16.mxu1 %vm4893_vm8, %v7568_v31 }
 0x6a5   : > { %10176 = vmatmul.mubr.msk.bf16.gmra.mrb[44].mxu1 %vm4893_vm8, %v7570_v0 }
 0x6a6   : > { %10179 = vmatprep.mubr.msk.bf16.mxu1 %vm4893_vm8, %v7572_v53 }
 0x6ad   : > { %10180 = vmatmul.mubr.msk.bf16.gmra.mrb[48].mxu1 %vm4893_vm8, %v7574_v7  ;;  %v13641_v7 = vld [vmem:[%s13868_s5] ss:$0 sm:$0xff] }
 0x6ae   : > { %10183 = vmatprep.mubr.msk.bf16.mxu1 %vm4893_vm8, %v7576_v25 }
 0x6b5   : > { %10184 = vmatmul.mubr.msk.bf16.gmra.mrb[52].mxu1 %vm4893_vm8, %v14099_v60 }
 0x6b6   : > { %10189 = vmatprep.mubr.msk.bf16.mxu1 %vm780_vm2, %v14100_v33 }
 0x6bd   : > { %10190 = vmatmul.mubr.msk.bf16.vlgmr.msra.gmra.mrb[56].mxu1 %vm780_vm2, %v14101_v2 }
 0x6be   : > { %10193 = vmatprep.mubr.msk.bf16.mxu1 %vm780_vm2, %v14102_v51 }
 0x6c5   : > { %10194 = vmatmul.mubr.msk.bf16.gmra.mrb[60].mxu1 %vm780_vm2, %v14103_v32 }
 0x6c6   : > { %10197 = vmatprep.mubr.msk.bf16.mxu1 %vm780_vm2, %v14104_v57 }
 0x6cd   : > { %10198 = vmatmul.mubr.msk.bf16.gmra.mrb[64].mxu1 %vm780_vm2, %v14105_v9 }
 0x6ce   : > { %10201 = vmatprep.mubr.msk.bf16.mxu1 %vm780_vm2, %v14106_v10 }
 0x6d5   : > { %10202 = vmatmul.mubr.msk.bf16.gmra.mrb[68].mxu1 %vm780_vm2, %v14107_v43 }
 0x6d6   : > { %10205 = vmatprep.mubr.msk.bf16.mxu1 %vm780_vm2, %v14108_v49 }
 0x6dd   : > { %10206 = vmatmul.mubr.msk.bf16.gmra.mrb[72].mxu1 %vm780_vm2, %v14109_v46 }
 0x6de   : > { %10209 = vmatprep.mubr.msk.bf16.mxu1 %vm780_vm2, %v14110_v4 }
 0x6e5   : > { %10210 = vmatmul.mubr.msk.bf16.gmra.mrb[76].mxu1 %vm780_vm2, %v14111_v38 }
 0x6e6   : > { %10213 = vmatprep.mubr.msk.bf16.mxu1 %vm780_vm2, %v14112_v39 }
 0x6ed   : > { %10214 = vmatmul.mubr.msk.bf16.gmra.mrb[80].mxu1 %vm780_vm2, %v14113_v35  ;;  %v13661_v35 = vld [vmem:[%s13870_s7] ss:$0 sm:$0xff] }
 0x6ee   : > { %10217 = vmatprep.mubr.msk.bf16.mxu1 %vm780_vm2, %v14114_v54 }
 0x6f5   : > { %10218 = vmatmul.mubr.msk.bf16.gmra.mrb[84].mxu1 %vm780_vm2, %v14115_v23 }
 0x6f6   : > { %10221 = vmatprep.mubr.msk.bf16.mxu1 %vm780_vm2, %v14116_v19 }
 0x6fd   : > { %10222 = vmatmul.mubr.msk.bf16.gmra.mrb[88].mxu1 %vm780_vm2, %v14117_v47 }
 0x6fe   : > { %10225 = vmatprep.mubr.msk.bf16.mxu1 %vm780_vm2, %v14118_v62 }
 0x705   : > { %10226 = vmatmul.mubr.msk.bf16.gmra.mrb[92].mxu1 %vm780_vm2, %v8005_v15 }
 0x740   : > { %v10149_v26 = vpop.f32.mrb[16].mxu1 }
 0x741   : > { %v7676_v27 = vpop.f32.mrb[17].mxu1  ;;  %v7884_v36 = vadd.f32 %v10149_v26, %v13641_v7 }
 0x742   : > { %v10150_v40 = vpop.f32.mrb[18].mxu1  ;;  %v7882_v25 = vadd.f32 %v13641_v7, %v7676_v27 }
 0x743   : > { %v7679_v59 = vpop.f32.mrb[19].mxu1  ;;  %v7885_v33 = vadd.f32 %v10150_v40, %v13641_v7  ;;  %v7924_v57 = vmul.f32 0.2, %v7884_v36 }
 0x744   : > { %v7883_v51 = vadd.f32 %v13641_v7, %v7679_v59  ;;  %v7922_v10 = vmul.f32 0.2, %v7882_v25 }
 0x745   : > { %v7925_v43 = vmul.f32 0.2, %v7885_v33  ;;  %v7964_v4 = vmax.f32 %v7884_v36, %v7924_v57 }
 0x746   : > { %v7923_v49 = vmul.f32 0.2, %v7883_v51  ;;  %v7962_v54 = vmax.f32 %v7882_v25, %v7922_v10 }
 0x747   : > { %v7965_v52 = vmax.f32 %v7885_v33, %v7925_v43 }
 0x748   : > { %v10153_v42 = vpop.f32.mrb[20].mxu1  ;;  %v7963_v21 = vmax.f32 %v7883_v51, %v7923_v49 }
 0x749   : > { %v7692_v63 = vpop.f32.mrb[21].mxu1  ;;  %v7888_v46 = vadd.f32 %v10153_v42, %v13641_v7 }
 0x74a   : > { %v10154_v55 = vpop.f32.mrb[22].mxu1  ;;  %v7886_v38 = vadd.f32 %v13641_v7, %v7692_v63 }
 0x74b   : > { %v7695_v28 = vpop.f32.mrb[23].mxu1  ;;  %v7889_v23 = vadd.f32 %v10154_v55, %v13641_v7  ;;  %v7928_v15 = vmul.f32 0.2, %v7888_v46 }
 0x74c   : > { %v7887_v47 = vadd.f32 %v13641_v7, %v7695_v28  ;;  %v7926_v59 = vmul.f32 0.2, %v7886_v38 }
 0x74d   : > { %v7929_v55 = vmul.f32 0.2, %v7889_v23  ;;  %v7968_v51 = vmax.f32 %v7888_v46, %v7928_v15 }
 0x74e   : > { %v7927_v36 = vmul.f32 0.2, %v7887_v47  ;;  %v7966_v43 = vmax.f32 %v7886_v38, %v7926_v59 }
 0x750   : > { %v13582_v20 = vpop.f32.mrb[24].mxu1 }
 0x751   : > { %v13584_v41 = vpop.f32.mrb[25].mxu1  ;;  %v7892_v33 = vadd.f32 %v13582_v20, %v13641_v7 }
 0x752   : > { %v13586_v30 = vpop.f32.mrb[26].mxu1  ;;  %v7890_v57 = vadd.f32 %v13641_v7, %v13584_v41 }
 0x753   : > { %v13588_v6 = vpop.f32.mrb[27].mxu1  ;;  %v7893_v49 = vadd.f32 %v13586_v30, %v13641_v7  ;;  %v7932_v41 = vmul.f32 0.2, %v7892_v33 }
 0x754   : > { %v7891_v20 = vadd.f32 %v13641_v7, %v13588_v6 }
 0x755   : > { %v7933_v15 = vmul.f32 0.2, %v7893_v49 }
 0x756   : > { %v7931_v6 = vmul.f32 0.2, %v7891_v20 }
 0x758   : > { %v13590_v14 = vpop.f32.mrb[28].mxu1 }
 0x759   : > { %v13592_v18 = vpop.f32.mrb[29].mxu1 }
 0x75a   : > { %v13594_v58 = vpop.f32.mrb[30].mxu1 }
 0x75b   : > { %v13596_v8 = vpop.f32.mrb[31].mxu1 }
 0x760   : > { %v13598_v11 = vpop.f32.mrb[32].mxu1 }
 0x761   : > { %v13600_v3 = vpop.f32.mrb[33].mxu1 }
 0x762   : > { %v13602_v61 = vpop.f32.mrb[34].mxu1 }
 0x763   : > { %v13604_v13 = vpop.f32.mrb[35].mxu1 }
 0x768   : > { %v13606_v1 = vpop.f32.mrb[36].mxu1 }
 0x769   : > { %v13608_v44 = vpop.f32.mrb[37].mxu1 }
 0x76a   : > { %v13610_v12 = vpop.f32.mrb[38].mxu1 }
 0x76b   : > { %v13612_v5 = vpop.f32.mrb[39].mxu1 }
 0x770   : > { %v13614_v29 = vpop.f32.mrb[40].mxu1 }
 0x771   : > { %v13616_v22 = vpop.f32.mrb[41].mxu1 }
 0x772   : > { %v13618_v17 = vpop.f32.mrb[42].mxu1 }
 0x773   : > { %v13620_v34 = vpop.f32.mrb[43].mxu1 }
 0x778   : > { %v13622_v37 = vpop.f32.mrb[44].mxu1 }
 0x779   : > { %v13624_v48 = vpop.f32.mrb[45].mxu1 }
 0x77a   : > { %v13626_v31 = vpop.f32.mrb[46].mxu1 }
 0x77b   : > { %v13628_v24 = vpop.f32.mrb[47].mxu1 }
 0x780   : > { %v13630_v56 = vpop.f32.mrb[48].mxu1 }
 0x781   : > { %v13632_v0 = vpop.f32.mrb[49].mxu1 }
 0x782   : > { %v13634_v53 = vpop.f32.mrb[50].mxu1 }
 0x783   : > { %v13636_v45 = vpop.f32.mrb[51].mxu1 }
 0x788   : > { %v13645_v60 = vpop.f32.mrb[52].mxu1 }
 0x789   : > { %v13648_v2 = vpop.f32.mrb[53].mxu1 }
 0x78a   : > { %v13651_v32 = vpop.f32.mrb[54].mxu1 }
 0x78b   : > { %v13653_v9 = vpop.f32.mrb[55].mxu1 }
 0x790   : > { %v10191_v39 = vpop.f32.mrb[56].mxu1 }
 0x791   : > { %v8207_v19 = vadd.f32 %v10191_v39, %v7964_v4  ;;  %v8046_v16 = vpop.f32.mrb[57].mxu1 }
 0x792   : > { %v8205_v62 = vadd.f32 %v8046_v16, %v7962_v54  ;;  %v10192_v50 = vpop.f32.mrb[58].mxu1  ;;  %v7969_v54 = vmax.f32 %v7889_v23, %v7929_v55  ;;  %v7967_v16 = vmax.f32 %v7887_v47, %v7927_v36  ;;  %v7973_v36 = vmax.f32 %v7893_v49, %v7933_v15 }
 0x793   : > { %v8254_v26 = vadd.f32 %v13661_v35, %v8207_v19  ;;  %v8208_v27 = vadd.f32 %v10192_v50, %v7965_v52  ;;  %v8049_v40 = vpop.f32.mrb[59].mxu1  ;;  %v7930_v50 = vmul.f32 0.2, %v7890_v57 }
 0x794   : > { %v8252_v42 = vadd.f32 %v13661_v35, %v8205_v62  ;;  %v8206_v63 = vadd.f32 %v8049_v40, %v7963_v21  ;;  %v7894_v40 = vadd.f32 %v13641_v7, %v13592_v18 }
 0x795   : > { %8294 = vst.msk [vmem:[%s13668_s13 + $0x10] sm:$0xff] %vm4893_vm8, %v8254_v26  ;;  %v8255_v28 = vadd.f32 %v13661_v35, %v8208_v27  ;;  %v7896_v26 = vadd.f32 %v13590_v14, %v13641_v7  ;;  %v7972_v27 = vmax.f32 %v7892_v33, %v7932_v41  ;;  %v7895_v14 = vadd.f32 %v13641_v7, %v13596_v8 }
 0x796   : > { %8292 = vst.msk [vmem:[%s13668_s13] sm:$0xff] %vm4893_vm8, %v8252_v42  ;;  %v8253_v25 = vadd.f32 %v13661_v35, %v8206_v63  ;;  %v7970_v42 = vmax.f32 %v7890_v57, %v7930_v50  ;;  %v7897_v63 = vadd.f32 %v13594_v58, %v13641_v7 }
 0x797   : > { %8295 = vst.msk [vmem:[%s13668_s13 + $0x18] sm:$0xff] %vm4893_vm8, %v8255_v28  ;;  %v7936_v18 = vmul.f32 0.2, %v7896_v26  ;;  %v7935_v8 = vmul.f32 0.2, %v7895_v14 }
 0x798   : > { %8293 = vst.msk [vmem:[%s13668_s13 + $0x8] sm:$0xff] %vm4893_vm8, %v8253_v25  ;;  %v10195_v10 = vpop.f32.mrb[60].mxu1 }
 0x799   : > { %v8211_v4 = vadd.f32 %v10195_v10, %v7968_v51  ;;  %v8062_v39 = vpop.f32.mrb[61].mxu1  ;;  %v7971_v51 = vmax.f32 %v7891_v20, %v7931_v6 }
 0x79a   : > { %v8209_v19 = vadd.f32 %v8062_v39, %v7966_v43  ;;  %v10196_v46 = vpop.f32.mrb[62].mxu1 }
 0x79b   : > { %v8258_v52 = vadd.f32 %v13661_v35, %v8211_v4  ;;  %v8212_v38 = vadd.f32 %v10196_v46, %v7969_v54  ;;  %v8065_v62 = vpop.f32.mrb[63].mxu1  ;;  %v7934_v4 = vmul.f32 0.2, %v7894_v40  ;;  %v7937_v54 = vmul.f32 0.2, %v7897_v63 }
 0x79c   : > { %v8256_v30 = vadd.f32 %v13661_v35, %v8209_v19  ;;  %v8210_v21 = vadd.f32 %v8065_v62, %v7967_v16  ;;  %v7900_v19 = vadd.f32 %v13598_v11, %v13641_v7  ;;  %v7976_v46 = vmax.f32 %v7896_v26, %v7936_v18 }
 0x79d   : > { %8298 = vst.msk [vmem:[%s13668_s13 + $0x30] sm:$0xff] %vm4893_vm8, %v8258_v52  ;;  %v8259_v23 = vadd.f32 %v13661_v35, %v8212_v38  ;;  %v7898_v16 = vadd.f32 %v13641_v7, %v13600_v3  ;;  %v7974_v52 = vmax.f32 %v7894_v40, %v7934_v4  ;;  %v7901_v38 = vadd.f32 %v13602_v61, %v13641_v7 }
 0x79e   : > { %8296 = vst.msk [vmem:[%s13668_s13 + $0x20] sm:$0xff] %vm4893_vm8, %v8256_v30  ;;  %v8257_v47 = vadd.f32 %v13661_v35, %v8210_v21  ;;  %v7977_v30 = vmax.f32 %v7897_v63, %v7937_v54  ;;  %v7899_v11 = vadd.f32 %v13641_v7, %v13604_v13  ;;  %v7940_v3 = vmul.f32 0.2, %v7900_v19 }
 0x79f   : > { %8299 = vst.msk [vmem:[%s13668_s13 + $0x38] sm:$0xff] %vm4893_vm8, %v8259_v23  ;;  %v7975_v23 = vmax.f32 %v7895_v14, %v7935_v8 }
 0x7a0   : > { %8297 = vst.msk [vmem:[%s13668_s13 + $0x28] sm:$0xff] %vm4893_vm8, %v8257_v47  ;;  %v10199_v59 = vpop.f32.mrb[64].mxu1  ;;  %v7939_v13 = vmul.f32 0.2, %v7899_v11 }
 0x7a1   : > { %v8215_v55 = vadd.f32 %v10199_v59, %v7972_v27  ;;  %v8078_v28 = vpop.f32.mrb[65].mxu1  ;;  %v7938_v27 = vmul.f32 0.2, %v7898_v16  ;;  %v7941_v59 = vmul.f32 0.2, %v7901_v38 }
 0x7a2   : > { %v8213_v25 = vadd.f32 %v8078_v28, %v7970_v42  ;;  %v10200_v33 = vpop.f32.mrb[66].mxu1  ;;  %v7980_v28 = vmax.f32 %v7900_v19, %v7940_v3  ;;  %v7979_v4 = vmax.f32 %v7899_v11, %v7939_v13  ;;  %v7912_v13 = vadd.f32 %v13622_v37, %v13641_v7 }
 0x7a3   : > { %v8262_v10 = vadd.f32 %v13661_v35, %v8215_v55  ;;  %v8216_v57 = vadd.f32 %v10200_v33, %v7973_v36  ;;  %v8081_v43 = vpop.f32.mrb[67].mxu1  ;;  %v7904_v55 = vadd.f32 %v13606_v1, %v13641_v7  ;;  %v7902_v36 = vadd.f32 %v13641_v7, %v13608_v44 }
 0x7a4   : > { %v8260_v58 = vadd.f32 %v13661_v35, %v8213_v25  ;;  %v8214_v39 = vadd.f32 %v8081_v43, %v7971_v51  ;;  %v7978_v25 = vmax.f32 %v7898_v16, %v7938_v27  ;;  %v7905_v33 = vadd.f32 %v13610_v12, %v13641_v7 }
 0x7a5   : > { %8302 = vst.msk [vmem:[%s13668_s13 + $0x50] sm:$0xff] %vm4893_vm8, %v8262_v10  ;;  %v8263_v49 = vadd.f32 %v13661_v35, %v8216_v57  ;;  %v7981_v10 = vmax.f32 %v7901_v38, %v7941_v59  ;;  %v7903_v1 = vadd.f32 %v13641_v7, %v13612_v5  ;;  %v7944_v44 = vmul.f32 0.2, %v7904_v55 }
 0x7a6   : > { %8300 = vst.msk [vmem:[%s13668_s13 + $0x40] sm:$0xff] %vm4893_vm8, %v8260_v58  ;;  %v8261_v20 = vadd.f32 %v13661_v35, %v8214_v39  ;;  %v7908_v16 = vadd.f32 %v13614_v29, %v13641_v7  ;;  %v7907_v29 = vadd.f32 %v13641_v7, %v13620_v34  ;;  %v7911_v37 = vadd.f32 %v13641_v7, %v13628_v24 }
 0x7a7   : > { %8303 = vst.msk [vmem:[%s13668_s13 + $0x58] sm:$0xff] %vm4893_vm8, %v8263_v49  ;;  %v7942_v49 = vmul.f32 0.2, %v7902_v36  ;;  %v7943_v5 = vmul.f32 0.2, %v7903_v1 }
 0x7a8   : > { %8301 = vst.msk [vmem:[%s13668_s13 + $0x48] sm:$0xff] %vm4893_vm8, %v8261_v20  ;;  %v10203_v41 = vpop.f32.mrb[68].mxu1  ;;  %v7945_v20 = vmul.f32 0.2, %v7905_v33  ;;  %v7947_v34 = vmul.f32 0.2, %v7907_v29 }
 0x7a9   : > { %v8219_v62 = vadd.f32 %v10203_v41, %v7976_v46  ;;  %v8094_v50 = vpop.f32.mrb[69].mxu1  ;;  %v7984_v41 = vmax.f32 %v7904_v55, %v7944_v44  ;;  %v7983_v3 = vmax.f32 %v7903_v1, %v7943_v5  ;;  %v7910_v55 = vadd.f32 %v13641_v7, %v13624_v48 }
 0x7aa   : > { %v8217_v21 = vadd.f32 %v8094_v50, %v7974_v52  ;;  %v10204_v15 = vpop.f32.mrb[70].mxu1  ;;  %v7906_v52 = vadd.f32 %v13641_v7, %v13616_v22  ;;  %v7909_v50 = vadd.f32 %v13618_v17, %v13641_v7  ;;  %v7948_v22 = vmul.f32 0.2, %v7908_v16 }
 0x7ab   : > { %v8266_v6 = vadd.f32 %v13661_v35, %v8219_v62  ;;  %v8220_v47 = vadd.f32 %v10204_v15, %v7977_v30  ;;  %v8097_v26 = vpop.f32.mrb[71].mxu1  ;;  %v7982_v62 = vmax.f32 %v7902_v36, %v7942_v49  ;;  %v7987_v1 = vmax.f32 %v7907_v29, %v7947_v34 }
 0x7ac   : > { %v8264_v61 = vadd.f32 %v13661_v35, %v8217_v21  ;;  %v8218_v40 = vadd.f32 %v8097_v26, %v7975_v23  ;;  %v7985_v21 = vmax.f32 %v7905_v33, %v7945_v20  ;;  %v7946_v27 = vmul.f32 0.2, %v7906_v52 }
 0x7ad   : > { %8306 = vst.msk [vmem:[%s13668_s13 + $0x70] sm:$0xff] %vm4893_vm8, %v8266_v6  ;;  %v8267_v42 = vadd.f32 %v13661_v35, %v8220_v47  ;;  %v7952_v48 = vmul.f32 0.2, %v7912_v13  ;;  %v7950_v44 = vmul.f32 0.2, %v7910_v55  ;;  %v7914_v20 = vadd.f32 %v13641_v7, %v13632_v0 }
 0x7ae   : > { %8304 = vst.msk [vmem:[%s13668_s13 + $0x60] sm:$0xff] %vm4893_vm8, %v8264_v61  ;;  %v8265_v63 = vadd.f32 %v13661_v35, %v8218_v40  ;;  %v7949_v40 = vmul.f32 0.2, %v7909_v50  ;;  %v7986_v36 = vmax.f32 %v7906_v52, %v7946_v27  ;;  %v7951_v24 = vmul.f32 0.2, %v7911_v37 }
 0x7af   : > { %8307 = vst.msk [vmem:[%s13668_s13 + $0x78] sm:$0xff] %vm4893_vm8, %v8267_v42  ;;  %v7990_v5 = vmax.f32 %v7910_v55, %v7950_v44  ;;  %v7954_v29 = vmul.f32 0.2, %v7914_v20 }
 0x7b0   : > { %8305 = vst.msk [vmem:[%s13668_s13 + $0x68] sm:$0xff] %vm4893_vm8, %v8265_v63  ;;  %v10207_v14 = vpop.f32.mrb[72].mxu1  ;;  %v7988_v63 = vmax.f32 %v7908_v16, %v7948_v22 }
 0x7b1   : > { %v8223_v51 = vadd.f32 %v10207_v14, %v7980_v28  ;;  %v8110_v18 = vpop.f32.mrb[73].mxu1  ;;  %v7913_v14 = vadd.f32 %v13626_v31, %v13641_v7 }
 0x7b2   : > { %v8221_v57 = vadd.f32 %v8110_v18, %v7978_v25  ;;  %v10208_v43 = vpop.f32.mrb[74].mxu1 }
 0x7b3   : > { %v8270_v58 = vadd.f32 %v13661_v35, %v8223_v51  ;;  %v8224_v39 = vadd.f32 %v10208_v43, %v7981_v10  ;;  %v8113_v54 = vpop.f32.mrb[75].mxu1  ;;  %v7989_v51 = vmax.f32 %v7909_v50, %v7949_v40  ;;  %v7991_v50 = vmax.f32 %v7911_v37, %v7951_v24 }
 0x7b4   : > { %v8268_v12 = vadd.f32 %v13661_v35, %v8221_v57  ;;  %v8222_v8 = vadd.f32 %v8113_v54, %v7979_v4 }
 0x7b5   : > { %8310 = vst.msk [vmem:[%s13668_s13 + $0x90] sm:$0xff] %vm4893_vm8, %v8270_v58  ;;  %v8271_v19 = vadd.f32 %v13661_v35, %v8224_v39  ;;  %v7953_v39 = vmul.f32 0.2, %v7913_v14 }
 0x7b6   : > { %8308 = vst.msk [vmem:[%s13668_s13 + $0x80] sm:$0xff] %vm4893_vm8, %v8268_v12  ;;  %v8269_v46 = vadd.f32 %v13661_v35, %v8222_v8  ;;  %v7916_v12 = vadd.f32 %v13630_v56, %v13641_v7  ;;  %v7992_v8 = vmax.f32 %v7912_v13, %v7952_v48  ;;  %v7915_v56 = vadd.f32 %v13641_v7, %v13636_v45 }
 0x7b7   : > { %8311 = vst.msk [vmem:[%s13668_s13 + $0x98] sm:$0xff] %vm4893_vm8, %v8271_v19  ;;  %v7993_v52 = vmax.f32 %v7913_v14, %v7953_v39 }
 0x7b8   : > { %8309 = vst.msk [vmem:[%s13668_s13 + $0x88] sm:$0xff] %vm4893_vm8, %v8269_v46  ;;  %v10211_v38 = vpop.f32.mrb[76].mxu1  ;;  %v7917_v46 = vadd.f32 %v13634_v53, %v13641_v7  ;;  %v7956_v0 = vmul.f32 0.2, %v7916_v12  ;;  %v7955_v45 = vmul.f32 0.2, %v7915_v56 }
 0x7b9   : > { %v8227_v30 = vadd.f32 %v10211_v38, %v7984_v41  ;;  %v8126_v11 = vpop.f32.mrb[77].mxu1 }
 0x7ba   : > { %v8225_v15 = vadd.f32 %v8126_v11, %v7982_v62  ;;  %v10212_v23 = vpop.f32.mrb[78].mxu1 }
 0x7bb   : > { %v8274_v6 = vadd.f32 %v13661_v35, %v8227_v30  ;;  %v8228_v47 = vadd.f32 %v10212_v23, %v7985_v21  ;;  %v8129_v26 = vpop.f32.mrb[79].mxu1  ;;  %v7957_v23 = vmul.f32 0.2, %v7917_v46 }
 0x7bc   : > { %v8272_v17 = vadd.f32 %v13661_v35, %v8225_v15  ;;  %v8226_v61 = vadd.f32 %v8129_v26, %v7983_v3  ;;  %v7918_v26 = vadd.f32 %v13641_v7, %v13648_v2 }
 0x7bd   : > { %8314 = vst.msk [vmem:[%s13668_s13 + $0xb0] sm:$0xff] %vm4893_vm8, %v8274_v6  ;;  %v8275_v59 = vadd.f32 %v13661_v35, %v8228_v47  ;;  %v7920_v6 = vadd.f32 %v13645_v60, %v13641_v7  ;;  %v7996_v47 = vmax.f32 %v7916_v12, %v7956_v0  ;;  %v7997_v34 = vmax.f32 %v7917_v46, %v7957_v23 }
 0x7be   : > { %8312 = vst.msk [vmem:[%s13668_s13 + $0xa0] sm:$0xff] %vm4893_vm8, %v8272_v17  ;;  %v8273_v42 = vadd.f32 %v13661_v35, %v8226_v61  ;;  %v7994_v17 = vmax.f32 %v7914_v20, %v7954_v29  ;;  %v7921_v61 = vadd.f32 %v13651_v32, %v13641_v7  ;;  %v7919_v60 = vadd.f32 %v13641_v7, %v13653_v9 }
 0x7bf   : > { %8315 = vst.msk [vmem:[%s13668_s13 + $0xb8] sm:$0xff] %vm4893_vm8, %v8275_v59  ;;  %v7960_v2 = vmul.f32 0.2, %v7920_v6  ;;  %v7958_v14 = vmul.f32 0.2, %v7918_v26 }
 0x7c0   : > { %8313 = vst.msk [vmem:[%s13668_s13 + $0xa8] sm:$0xff] %vm4893_vm8, %v8273_v42  ;;  %v10215_v28 = vpop.f32.mrb[80].mxu1  ;;  %v7959_v7 = vmul.f32 0.2, %v7919_v60 }
 0x7c1   : > { %v8231_v25 = vadd.f32 %v10215_v28, %v7988_v63  ;;  %v8142_v33 = vpop.f32.mrb[81].mxu1  ;;  %v7995_v63 = vmax.f32 %v7915_v56, %v7955_v45  ;;  %v8000_v37 = vmax.f32 %v7920_v6, %v7960_v2 }
 0x7c2   : > { %v8229_v18 = vadd.f32 %v8142_v33, %v7986_v36  ;;  %v10216_v10 = vpop.f32.mrb[82].mxu1  ;;  %v7961_v33 = vmul.f32 0.2, %v7921_v61  ;;  %v7999_v44 = vmax.f32 %v7919_v60, %v7959_v7 }
 0x7c3   : > { %v8278_v57 = vadd.f32 %v13661_v35, %v8231_v25  ;;  %v8232_v43 = vadd.f32 %v10216_v10, %v7989_v51  ;;  %v8145_v4 = vpop.f32.mrb[83].mxu1  ;;  %v7998_v10 = vmax.f32 %v7918_v26, %v7958_v14 }
 0x7c4   : > { %v8276_v31 = vadd.f32 %v13661_v35, %v8229_v18  ;;  %v8230_v58 = vadd.f32 %v8145_v4, %v7987_v1 }
 0x7c5   : > { %8318 = vst.msk [vmem:[%s13668_s13 + $0xd0] sm:$0xff] %vm4893_vm8, %v8278_v57  ;;  %v8279_v54 = vadd.f32 %v13661_v35, %v8232_v43  ;;  %v8001_v57 = vmax.f32 %v7921_v61, %v7961_v33 }
 0x7c6   : > { %8316 = vst.msk [vmem:[%s13668_s13 + $0xc0] sm:$0xff] %vm4893_vm8, %v8276_v31  ;;  %v8277_v49 = vadd.f32 %v13661_v35, %v8230_v58 }
 0x7c7   : > { %8319 = vst.msk [vmem:[%s13668_s13 + $0xd8] sm:$0xff] %vm4893_vm8, %v8279_v54 }
 0x7c8   : > { %8317 = vst.msk [vmem:[%s13668_s13 + $0xc8] sm:$0xff] %vm4893_vm8, %v8277_v49  ;;  %v10219_v19 = vpop.f32.mrb[84].mxu1 }
 0x7c9   : > { %v8235_v16 = vadd.f32 %v10219_v19, %v7992_v8  ;;  %v8158_v41 = vpop.f32.mrb[85].mxu1 }
 0x7ca   : > { %v8233_v38 = vadd.f32 %v8158_v41, %v7990_v5  ;;  %v10220_v62 = vpop.f32.mrb[86].mxu1 }
 0x7cb   : > { %v8282_v30 = vadd.f32 %v13661_v35, %v8235_v16  ;;  %v8236_v11 = vadd.f32 %v10220_v62, %v7993_v52  ;;  %v8161_v21 = vpop.f32.mrb[87].mxu1 }
 0x7cc   : > { %v8280_v53 = vadd.f32 %v13661_v35, %v8233_v38  ;;  %v8234_v15 = vadd.f32 %v8161_v21, %v7991_v50 }
 0x7cd   : > { %8322 = vst.msk [vmem:[%s13668_s13 + $0xf0] sm:$0xff] %vm4893_vm8, %v8282_v30  ;;  %v8283_v3 = vadd.f32 %v13661_v35, %v8236_v11 }
 0x7ce   : > { %8320 = vst.msk [vmem:[%s13668_s13 + $0xe0] sm:$0xff] %vm4893_vm8, %v8280_v53  ;;  %v8281_v22 = vadd.f32 %v13661_v35, %v8234_v15 }
 0x7cf   : > { %8323 = vst.msk [vmem:[%s13668_s13 + $0xf8] sm:$0xff] %vm4893_vm8, %v8283_v3 }
 0x7d0   : > { %8321 = vst.msk [vmem:[%s13668_s13 + $0xe8] sm:$0xff] %vm4893_vm8, %v8281_v22  ;;  %v10223_v27 = vpop.f32.mrb[88].mxu1 }
 0x7d1   : > { %v8239_v40 = vadd.f32 %v10223_v27, %v7996_v47  ;;  %v8174_v59 = vpop.f32.mrb[89].mxu1 }
 0x7d2   : > { %v8237_v42 = vadd.f32 %v8174_v59, %v7994_v17  ;;  %v10224_v13 = vpop.f32.mrb[90].mxu1 }
 0x7d3   : > { %v8286_v55 = vadd.f32 %v13661_v35, %v8239_v40  ;;  %v8240_v28 = vadd.f32 %v10224_v13, %v7997_v34  ;;  %v8177_v36 = vpop.f32.mrb[91].mxu1 }
 0x7d4   : > { %v8284_v32 = vadd.f32 %v13661_v35, %v8237_v42  ;;  %v8238_v25 = vadd.f32 %v8177_v36, %v7995_v63 }
 0x7d5   : > { %8326 = vst.msk [vmem:[%s13668_s13 + $0x110] sm:$0xff] %vm4893_vm8, %v8286_v55  ;;  %v8287_v51 = vadd.f32 %v13661_v35, %v8240_v28 }
 0x7d6   : > { %8324 = vst.msk [vmem:[%s13668_s13 + $0x100] sm:$0xff] %vm4893_vm8, %v8284_v32  ;;  %v8285_v9 = vadd.f32 %v13661_v35, %v8238_v25 }
 0x7d7   : > { %8327 = vst.msk [vmem:[%s13668_s13 + $0x118] sm:$0xff] %vm4893_vm8, %v8287_v51 }
 0x7d8   : > { %8325 = vst.msk [vmem:[%s13668_s13 + $0x108] sm:$0xff] %vm4893_vm8, %v8285_v9  ;;  %v10227_v18 = vpop.f32.mrb[92].mxu1 }
 0x7d9   : > { %v8243_v1 = vadd.f32 %v10227_v18, %v8000_v37  ;;  %v8190_v48 = vpop.f32.mrb[93].mxu1 }
 0x7da   : > { %v8241_v43 = vadd.f32 %v8190_v48, %v7998_v10  ;;  %v10228_v4 = vpop.f32.mrb[94].mxu1 }
 0x7db   : > { %v8290_v31 = vadd.f32 %v13661_v35, %v8243_v1  ;;  %v8244_v58 = vadd.f32 %v10228_v4, %v8001_v57  ;;  %v8193_v39 = vpop.f32.mrb[95].mxu1 }
 0x7dc   : > { %v8288_v54 = vadd.f32 %v13661_v35, %v8241_v43  ;;  %v8242_v24 = vadd.f32 %v8193_v39, %v7999_v44 }
 0x7dd   : > { %8330 = vst.msk [vmem:[%s13668_s13 + $0x130] sm:$0xff] %vm4893_vm8, %v8290_v31  ;;  %v8291_v49 = vadd.f32 %v13661_v35, %v8244_v58 }
 0x7de   : > { %8328 = vst.msk [vmem:[%s13668_s13 + $0x120] sm:$0xff] %vm4893_vm8, %v8288_v54  ;;  %v8289_v12 = vadd.f32 %v13661_v35, %v8242_v24 }
 0x7df   : > { %8331 = vst.msk [vmem:[%s13668_s13 + $0x138] sm:$0xff] %vm4893_vm8, %v8291_v49 }
 0x7e0   : > { %8329 = vst.msk [vmem:[%s13668_s13 + $0x128] sm:$0xff] %vm4893_vm8, %v8289_v12 }
 0x7e1 PF: > { %s18_s29 = sadd.s32 1, %s11070_s29   ;;  %s14120_s27 = smov %s11066_s28 }
 0x7e2   : > { %p15_p5 = scmp.ge.s32.totalorder %s18_s29, 4   ;;  %s14121_s28 = smov %s14123_s30 }
 0x7e4   :  { %17 = sbr.rel (!%p15_p5) target bundleno = 2 (0x2), region = 85 }

</bundles_post_ra>
